<compile_context>
chip_gen: v6e
topology: v6e:2x2x1
jax: 0.10.0
libtpu: 0.0.40
codegen_flags: <defaults>
</compile_context>

<pallas_src>
import jax
import jax.numpy as jnp
from jax.experimental import pallas as pl
from jax.experimental.pallas import tpu as pltpu

EPS = 1e-5
LANE = 128


def _round_up(x, m):
    return (x + m - 1) // m * m


def _choose_tiling(m, target):
    """Row-tile size for the (M, C) matmul stages -> (tm, M_padded).

    Prefer the largest multiple-of-8 divisor of m that is <= target (exact grid, no
    padding).  If only tiny divisors exist, fall back to a large multiple-of-8 tile and
    pad m up to a multiple of it (padded rows are masked out of BN stats downstream)."""
    t = max(8, min(target, _round_up(m, 8)) // 8 * 8)
    floor = max(8, min(128, t))
    cand = t
    while cand >= floor:
        if m % cand == 0:
            return cand, m
        cand -= 8
    return t, _round_up(m, t)


def _pick_band(h, target):
    """Largest divisor of h that is <= target (row-band height for the 3x3 conv)."""
    b = max(1, min(target, h))
    while b > 1 and h % b:
        b -= 1
    return b


def _cparams(n_grid_axes):
    # Per-stage VMEM footprints here are only a few MiB (row-band 3x3, tm-row 1x1
    # stages), so 32 MiB scoped VMEM is safe on v5e/v6e (128 MiB) and v7x (64 MiB).
    return pltpu.CompilerParams(
        dimension_semantics=("parallel",) * n_grid_axes,
        vmem_limit_bytes=32 * 1024 * 1024,
    )


# --------------------------------- kernel bodies ---------------------------------

def _make_conv1_proj_kernel(with_proj):
    """Fused 1x1 conv(s) on one row tile of x: conv1 (+ projection conv when present).

    The x tile is read from HBM once and fed to the MXU at its stored dtype (no f32
    round trip).  Emits y1 / res at the storage dtype plus per-tile f32 BN stats."""

    def kernel(*refs):
        if with_proj:
            x_ref, w1_ref, wp_ref, y1_ref, st1_ref, res_ref, stp_ref = refs
        else:
            x_ref, w1_ref, y1_ref, st1_ref = refs

        x = x_ref[...]
        y1 = jnp.dot(x, w1_ref[...], preferred_element_type=jnp.float32)
        st1_ref[...] = jnp.concatenate(
            [jnp.sum(y1, axis=0, keepdims=True),
             jnp.sum(y1 * y1, axis=0, keepdims=True)], axis=0)[None]
        y1_ref[...] = y1.astype(y1_ref.dtype)

        if with_proj:
            rp = jnp.dot(x, wp_ref[...], preferred_element_type=jnp.float32)
            stp_ref[...] = jnp.concatenate(
                [jnp.sum(rp, axis=0, keepdims=True),
                 jnp.sum(rp * rp, axis=0, keepdims=True)], axis=0)[None]
            res_ref[...] = rp.astype(res_ref.dtype)

    return kernel


def _make_mm_affine_kernel(tm, m_real, mask_rows):
    """1x1 conv on a row tile with the previous BN's scale/shift + ReLU fused onto the
    input, plus per-tile f32 BN partial stats.  Optionally masks rows >= m_real (padded
    rows) so they contribute neither to the output nor to the stats."""

    def kernel(x_ref, scale_ref, shift_ref, w_ref, y_ref, stats_ref):
        x = x_ref[...].astype(jnp.float32)
        x = jnp.maximum(x * scale_ref[...] + shift_ref[...], 0.0)
        if mask_rows:
            rows = (jax.lax.broadcasted_iota(jnp.int32, (tm, 1), 0)
                    + pl.program_id(0) * tm)
            x = jnp.where(rows < m_real, x, 0.0)
        y = jnp.dot(x.astype(w_ref.dtype), w_ref[...],
                    preferred_element_type=jnp.float32)
        stats_ref[...] = jnp.concatenate(
            [jnp.sum(y, axis=0, keepdims=True),
             jnp.sum(y * y, axis=0, keepdims=True)], axis=0)[None]
        y_ref[...] = y.astype(y_ref.dtype)

    return kernel


def _make_conv3x3_band_kernel(band, H, W, C, rows_s):
    """3x3 conv (stride 1, pad 1) over one row-band of one image, with BN1-apply + ReLU
    fused on the input, 9 per-tap MXU matmuls accumulated in f32, and per-band BN stats.

    The band (+1-row halo) of the spatially padded image is written once into a
    padded-width VMEM scratch, so every tap is a contiguous row-offset view of the
    scratch (no per-tap compaction copies, no im2col buffer)."""
    Wp = W + 2
    rows_core = (band + 2) * Wp          # padded-width rows covering band + halo
    L = band * Wp                        # output rows in padded-width space
    step = band * Wp

    def kernel(y1_ref, scale_ref, shift_ref, w2_ref, y2_ref, stats_ref, scr_ref):
        j = pl.program_id(1)
        start = j * step                 # flat padded-image row where this band begins
        if step % 8 == 0:
            start = pl.multiple_of(start, 8)

        # BN1 apply + ReLU on the band (+halo) in f32, cast to the MXU/storage dtype.
        a = y1_ref[0, pl.ds(start, rows_core), :].astype(jnp.float32)
        a = jnp.maximum(a * scale_ref[...] + shift_ref[...], 0.0)
        scr_ref[0:rows_core, :] = a.astype(scr_ref.dtype)
        # Tail rows are only ever read for the discarded junk-column outputs.
        scr_ref[rows_core:rows_s, :] = jnp.zeros((rows_s - rows_core, C), scr_ref.dtype)

        # Re-zero the global-image halo: the jnp.pad zeros would otherwise have become
        # relu(shift) after the fused affine above.
        zrow = jnp.zeros((Wp, C), scr_ref.dtype)
        z2 = jnp.zeros((2, C), scr_ref.dtype)

        @pl.when(j == 0)
        def _():
            scr_ref[0:Wp, :] = zrow                          # top image border

        @pl.when(j == pl.num_programs(1) - 1)
        def _():
            scr_ref[rows_core - Wp:rows_core, :] = zrow      # bottom image border

        scr_ref[0:1, :] = z2[0:1]                            # left border of first row
        for r in range(band + 2):                            # right border of row r and
            base = r * Wp + W + 1                            # left border of row r + 1
            scr_ref[base:base + 2, :] = z2

        # 9 per-tap matmuls (K = C) on contiguous row-offset views of the scratch,
        # accumulated in f32.  Junk outputs at the 2 padded columns are dropped below.
        acc = jnp.zeros((L, C), jnp.float32)
        for ky in range(3):
            for kx in range(3):
                t = ky * 3 + kx
                off = ky * Wp + kx
                acc = acc + jnp.dot(scr_ref[off:off + L, :],
                                    w2_ref[t * C:(t + 1) * C, :],
                                    preferred_element_type=jnp.float32)

        # Compact: drop the 2 junk columns of every padded-width row.
        y2c = jnp.concatenate([acc[h * Wp:h * Wp + W, :] for h in range(band)], axis=0)
        stats_ref[...] = jnp.concatenate(
            [jnp.sum(y2c, axis=0, keepdims=True),
             jnp.sum(y2c * y2c, axis=0, keepdims=True)], axis=0)[None, None]
        y2_ref[...] = y2c.astype(y2_ref.dtype)[None, None]

    return kernel


def _make_final_kernel(identity):
    """BN3 apply + (projection BN apply) + residual add + ReLU."""

    def kernel(*refs):
        if identity:
            y3_ref, s3_ref, h3_ref, res_ref, o_ref = refs
            res = res_ref[...].astype(jnp.float32)
        else:
            y3_ref, s3_ref, h3_ref, res_ref, sp_ref, hp_ref, o_ref = refs
            res = res_ref[...].astype(jnp.float32) * sp_ref[...] + hp_ref[...]
        y3 = y3_ref[...].astype(jnp.float32) * s3_ref[...] + h3_ref[...]
        o_ref[...] = jnp.maximum(y3 + res, 0.0).astype(o_ref.dtype)

    return kernel


# ------------------------------ pallas_call wrappers ------------------------------

def _conv1_proj(x2d, w1, wp, *, tm, out_dtype):
    Mp, Cpi = x2d.shape
    C1 = w1.shape[1]
    nt = Mp // tm
    with_proj = wp is not None

    in_specs = [pl.BlockSpec((tm, Cpi), lambda i: (i, 0)),
                pl.BlockSpec((Cpi, C1), lambda i: (0, 0))]
    inputs = [x2d, w1]
    out_specs = [pl.BlockSpec((tm, C1), lambda i: (i, 0)),
                 pl.BlockSpec((1, 2, C1), lambda i: (i, 0, 0))]
    out_shape = [jax.ShapeDtypeStruct((Mp, C1), out_dtype),
                 jax.ShapeDtypeStruct((nt, 2, C1), jnp.float32)]
    if with_proj:
        Co = wp.shape[1]
        in_specs.append(pl.BlockSpec((Cpi, Co), lambda i: (0, 0)))
        inputs.append(wp)
        out_specs += [pl.BlockSpec((tm, Co), lambda i: (i, 0)),
                      pl.BlockSpec((1, 2, Co), lambda i: (i, 0, 0))]
        out_shape += [jax.ShapeDtypeStruct((Mp, Co), out_dtype),
                      jax.ShapeDtypeStruct((nt, 2, Co), jnp.float32)]

    outs = pl.pallas_call(
        _make_conv1_proj_kernel(with_proj),
        grid=(nt,),
        in_specs=in_specs,
        out_specs=out_specs,
        out_shape=out_shape,
        compiler_params=_cparams(1),
    )(*inputs)
    if with_proj:
        y1, st1, res, stp = outs
        return y1, jnp.sum(st1, axis=0), res, jnp.sum(stp, axis=0)
    y1, st1 = outs
    return y1, jnp.sum(st1, axis=0), None, None


def _mm_affine(x2d, scale, shift, w, *, tm, m_real, out_dtype):
    Mp, Ci = x2d.shape
    Co = w.shape[1]
    nt = Mp // tm
    y, stats = pl.pallas_call(
        _make_mm_affine_kernel(tm, m_real, Mp != m_real),
        grid=(nt,),
        in_specs=[pl.BlockSpec((tm, Ci), lambda i: (i, 0)),
                  pl.BlockSpec((1, Ci), lambda i: (0, 0)),
                  pl.BlockSpec((1, Ci), lambda i: (0, 0)),
                  pl.BlockSpec((Ci, Co), lambda i: (0, 0))],
        out_specs=[pl.BlockSpec((tm, Co), lambda i: (i, 0)),
                   pl.BlockSpec((1, 2, Co), lambda i: (i, 0, 0))],
        out_shape=[jax.ShapeDtypeStruct((Mp, Co), out_dtype),
                   jax.ShapeDtypeStruct((nt, 2, Co), jnp.float32)],
        compiler_params=_cparams(1),
    )(x2d, scale, shift, w)
    return y, jnp.sum(stats, axis=0)


def _conv3x3(y1_4d, scale, shift, w2col, *, band, out_dtype):
    N, H, W, C = y1_4d.shape
    nb = H // band
    Wp = W + 2
    rows_core = (band + 2) * Wp
    rows_s = _round_up(rows_core + 2, 8)

    # Spatial zero pad, then flatten (H+2, W+2) so the kernel works on padded-width rows.
    y1p = jnp.pad(y1_4d, ((0, 0), (1, 1), (1, 1), (0, 0)))
    y1f = y1p.reshape(N, (H + 2) * Wp, C)

    y2, stats = pl.pallas_call(
        _make_conv3x3_band_kernel(band, H, W, C, rows_s),
        grid=(N, nb),
        in_specs=[
            # Whole padded image; the block index ignores the band axis so the block
            # stays resident in VMEM across all bands of the same image (no re-DMA).
            pl.BlockSpec((1, (H + 2) * Wp, C), lambda n, j: (n, 0, 0)),
            pl.BlockSpec((1, C), lambda n, j: (0, 0)),
            pl.BlockSpec((1, C), lambda n, j: (0, 0)),
            pl.BlockSpec((9 * C, C), lambda n, j: (0, 0)),
        ],
        out_specs=[pl.BlockSpec((1, 1, band * W, C), lambda n, j: (n, j, 0, 0)),
                   pl.BlockSpec((1, 1, 2, C), lambda n, j: (n, j, 0, 0))],
        out_shape=[jax.ShapeDtypeStruct((N, nb, band * W, C), out_dtype),
                   jax.ShapeDtypeStruct((N, nb, 2, C), jnp.float32)],
        scratch_shapes=[pltpu.VMEM((rows_s, C), w2col.dtype)],
        compiler_params=_cparams(2),
    )(y1f, scale, shift, w2col)
    return y2.reshape(N * H * W, C), jnp.sum(stats, axis=(0, 1))


def _bn_scale_shift(stats, gamma, beta, m_total):
    """Turn (sum, sumsq) into the per-channel affine of training-mode BatchNorm."""
    mean = stats[0] / m_total
    var = jnp.maximum(stats[1] / m_total - mean * mean, 0.0)        # biased variance
    inv = jax.lax.rsqrt(var + EPS)
    scale = gamma * inv                                             # (1, C)
    shift = beta - mean * scale                                     # (1, C)
    return scale.astype(jnp.float32), shift.astype(jnp.float32)


def bottleneck_forward(x_nchw, params, *, identity, mxu_dtype=jnp.bfloat16,
                       tm=512, band=8):
    """Bottleneck forward (is_Bottleneck=True, stride=1).  x_nchw: (N, Cin, H, W)."""
    N, Cin, H, W = x_nchw.shape
    C1 = params["w1"].shape[1]
    Cout = params["w3"].shape[1]
    if identity:
        assert Cin == Cout, "identity shortcut requires Cin == Cout"
    M = N * H * W

    Cpi = _round_up(Cin, LANE)
    Cpm = _round_up(C1, LANE)
    Cpo = _round_up(Cout, LANE)
    tm, Mp = _choose_tiling(M, tm)
    band = _pick_band(H, band)

    f32 = jnp.float32
    store_dt = mxu_dtype   # intermediates / epilogue stored at MXU precision

    # NCHW -> (Mp, Cpi) at the MXU dtype: x2d is read by conv1, the projection matmul
    # and the final residual, so bf16 storage halves that HBM traffic.
    x2d = jnp.transpose(x_nchw, (0, 2, 3, 1)).reshape(M, Cin)
    x2d = jnp.pad(x2d, ((0, Mp - M), (0, Cpi - Cin))).astype(store_dt)

    def pad_w(w, cpi, cpo):
        ci, co = w.shape
        return jnp.pad(w, ((0, cpi - ci), (0, cpo - co))).astype(mxu_dtype)

    def pad_v(v, cp):
        v = v.reshape(1, -1)
        return jnp.pad(v, ((0, 0), (0, cp - v.shape[1]))).astype(f32)

    w1 = pad_w(params["w1"], Cpi, Cpm)
    w3 = pad_w(params["w3"], Cpm, Cpo)
    w2 = params["w2"].reshape(3, 3, C1, C1)
    w2 = jnp.pad(w2, ((0, 0), (0, 0), (0, Cpm - C1), (0, Cpm - C1)))
    w2 = w2.reshape(9 * Cpm, Cpm).astype(mxu_dtype)                 # per-tap weight slabs
    g1, b1 = pad_v(params["g1"], Cpm), pad_v(params["b1"], Cpm)
    g2, b2 = pad_v(params["g2"], Cpm), pad_v(params["b2"], Cpm)
    g3, b3 = pad_v(params["g3"], Cpo), pad_v(params["b3"], Cpo)
    wp = None
    if not identity:
        wp = pad_w(params["wp"], Cpi, Cpo)
        gp, bp = pad_v(params["gp"], Cpo), pad_v(params["bp"], Cpo)

    # conv1 (1x1) [+ projection 1x1]: a single pass over x2d, BN partial stats emitted.
    y1, st1, res, stp = _conv1_proj(x2d, w1, wp, tm=tm, out_dtype=store_dt)
    s1, h1 = _bn_scale_shift(st1, g1, b1, M)

    # conv2 (3x3, stride 1, pad 1) with fused BN1-apply + ReLU, row-band grid.
    y1_sp = y1 if Mp == M else y1[:M]
    y2, st2 = _conv3x3(y1_sp.reshape(N, H, W, Cpm), s1, h1, w2,
                       band=band, out_dtype=store_dt)
    s2, h2 = _bn_scale_shift(st2, g2, b2, M)

    # conv3 (1x1) with fused BN2-apply + ReLU (padded rows masked out of the stats).
    if Mp != M:
        y2 = jnp.pad(y2, ((0, Mp - M), (0, 0)))
    y3, st3 = _mm_affine(y2, s2, h2, w3, tm=tm, m_real=M, out_dtype=store_dt)
    s3, h3 = _bn_scale_shift(st3, g3, b3, M)

    # shortcut
    if identity:
        final_inputs = [y3, s3, h3, x2d]
    else:
        sp, hp = _bn_scale_shift(stp, gp, bp, M)
        final_inputs = [y3, s3, h3, res, sp, hp]

    tile = pl.BlockSpec((tm, Cpo), lambda i: (i, 0))
    vec = pl.BlockSpec((1, Cpo), lambda i: (0, 0))
    in_specs = [tile, vec, vec, tile] if identity else [tile, vec, vec, tile, vec, vec]

    out2d = pl.pallas_call(
        _make_final_kernel(identity),
        grid=(Mp // tm,),
        in_specs=in_specs,
        out_specs=tile,
        out_shape=jax.ShapeDtypeStruct((Mp, Cpo), store_dt),
        compiler_params=_cparams(1),
    )(*final_inputs)

    if Mp != M:
        out2d = out2d[:M]
    if Cpo != Cout:
        out2d = out2d[:, :Cout]
    out = out2d.reshape(N, H, W, Cout)
    return jnp.transpose(out, (0, 3, 1, 2))


# ------------------------- pure-JAX reference (for checking) -------------------------
def reference_forward(x_nchw, params, *, identity):
    hp = jax.lax.Precision.HIGHEST
    x = jnp.transpose(x_nchw, (0, 2, 3, 1))                         # NHWC
    C1 = params["w1"].shape[1]

    def bn(y, g, b):
        mu = jnp.mean(y, axis=(0, 1, 2), keepdims=True)
        var = jnp.mean((y - mu) ** 2, axis=(0, 1, 2), keepdims=True)
        return ((y - mu) * jax.lax.rsqrt(var + EPS) * g.reshape(1, 1, 1, -1)
                + b.reshape(1, 1, 1, -1))

    y = jnp.einsum("nhwc,cd->nhwd", x, params["w1"], precision=hp)
    y = jax.nn.relu(bn(y, params["g1"], params["b1"]))
    w2 = params["w2"].reshape(3, 3, C1, C1)                          # HWIO
    y = jax.lax.conv_general_dilated(y, w2, (1, 1), "SAME",
                                     dimension_numbers=("NHWC", "HWIO", "NHWC"),
                                     precision=hp)
    y = jax.nn.relu(bn(y, params["g2"], params["b2"]))
    y = jnp.einsum("nhwc,cd->nhwd", y, params["w3"], precision=hp)
    y = bn(y, params["g3"], params["b3"])
    if identity:
        res = x
    else:
        res = jnp.einsum("nhwc,cd->nhwd", x, params["wp"], precision=hp)
        res = bn(res, params["gp"], params["bp"])
    out = jax.nn.relu(y + res)
    return jnp.transpose(out, (0, 3, 1, 2))


# ------------------------------ deterministic init ------------------------------
def init_params(key, in_channels, inter_channels, expansion, identity):
    out_channels = inter_channels * expansion
    ks = jax.random.split(key, 16)

    def conv_w(k, cin, cout, kh=1, kw=1):
        scale = 1.0 / jnp.sqrt(jnp.float32(cin * kh * kw))
        return scale * jax.random.normal(k, (kh, kw, cin, cout), jnp.float32)

    def bn_gb(kg, kb, c):
        g = 1.0 + 0.1 * jax.random.normal(kg, (1, c), jnp.float32)
        b = 0.1 * jax.random.normal(kb, (1, c), jnp.float32)
        return g, b

    p = {}
    p["w1"] = conv_w(ks[0], in_channels, inter_channels)[0, 0]                    # (Cin, C1)
    p["g1"], p["b1"] = bn_gb(ks[1], ks[2], inter_channels)
    p["w2"] = conv_w(ks[3], inter_channels, inter_channels, 3, 3).reshape(
        9, inter_channels, inter_channels)                                        # (9, C1, C1)
    p["g2"], p["b2"] = bn_gb(ks[4], ks[5], inter_channels)
    p["w3"] = conv_w(ks[6], inter_channels, out_channels)[0, 0]                   # (C1, Cout)
    p["g3"], p["b3"] = bn_gb(ks[7], ks[8], out_channels)
    if not identity:
        p["wp"] = conv_w(ks[9], in_channels, out_channels)[0, 0]                  # (Cin, Cout)
        p["gp"], p["bp"] = bn_gb(ks[10], ks[11], out_channels)
    return p


if __name__ == "__main__":
    key = jax.random.PRNGKey(0)
    N, H, W = 2, 16, 16
    inter_channels, expansion = 4, 4

    configs = [
        # (in_channels, identity shortcut?)
        (inter_channels * expansion, True),   # identity: in == inter*expansion
        (8, False),                           # projection shortcut (stride=1)
    ]

    for in_channels, identity in configs:
        key, pk, xk = jax.random.split(key, 3)
        params = init_params(pk, in_channels, inter_channels, expansion, identity)
        x = jax.random.normal(xk, (N, in_channels, H, W), jnp.float32)
        ref = reference_forward(x, params, identity=identity)
        out_shape = (N, inter_channels * expansion, H, W)

        # f32 MXU path: tight-ish check against the f32 reference (tm=128 -> 4-step grid,
        # band=8 -> (2, 2) grid for the 3x3 stage).
        out32 = jax.jit(lambda a, p: bottleneck_forward(
            a, p, identity=identity, mxu_dtype=jnp.float32, tm=128, band=8))(x, params)
        out32 = jax.block_until_ready(out32)
        assert out32.shape == out_shape, out32.shape
        err32 = float(jnp.max(jnp.abs(out32.astype(jnp.float32) - ref)))
        assert jnp.allclose(out32.astype(jnp.float32), ref, atol=1e-2, rtol=1e-2), err32

        # bf16 MXU path (default perf configuration): bf16 operands, bf16 intermediates
        # and bf16 epilogue, so the tolerance vs. the f32 reference is loose.
        outbf = jax.jit(lambda a, p: bottleneck_forward(
            a, p, identity=identity, mxu_dtype=jnp.bfloat16, tm=128, band=8))(x, params)
        outbf = jax.block_until_ready(outbf)
        assert outbf.shape == out_shape, outbf.shape
        errbf = float(jnp.max(jnp.abs(outbf.astype(jnp.float32) - ref)))
        assert jnp.allclose(outbf.astype(jnp.float32), ref, atol=1e-1, rtol=1e-1), errbf

    print("KERNEL_OK")
</pallas_src>

<mosaic_0001>
module attributes {stable_mosaic.version = 11 : i64} {
  func.func @kernel(%arg0: i32, %arg1: memref<128x128xf32, #tpu.memory_space<vmem>>, %arg2: memref<128x128xf32, #tpu.memory_space<vmem>>, %arg3: memref<128x128xf32, #tpu.memory_space<vmem>>, %arg4: memref<1x2x128xf32, #tpu.memory_space<vmem>>) attributes {dimension_semantics = [#tpu.dimension_semantics<parallel>], iteration_bounds = array<i64: 4>, scalar_prefetch = 0 : i64, scratch_operands = 0 : i64, tpu.core_type = #tpu.core_type<tc>, window_params = [{transform_indices = @transform_0, window_bounds = array<i64: 128, 128>}, {pipeline_mode = #tpu.pipeline_mode<synchronous>, transform_indices = @transform_1, window_bounds = array<i64: 128, 128>}, {transform_indices = @transform_2, window_bounds = array<i64: 128, 128>}, {transform_indices = @transform_3, window_bounds = array<i64: 1, 2, 128>}]} {
    %c0 = arith.constant 0 : index
    %c0_0 = arith.constant 0 : index
    %0 = vector.load %arg1[%c0, %c0_0] : memref<128x128xf32, #tpu.memory_space<vmem>>, vector<128x128xf32>
    %c0_1 = arith.constant 0 : index
    %c0_2 = arith.constant 0 : index
    %1 = vector.load %arg2[%c0_1, %c0_2] : memref<128x128xf32, #tpu.memory_space<vmem>>, vector<128x128xf32>
    %cst = arith.constant dense<0.000000e+00> : vector<128x128xf32>
    %2 = tpu.matmul %0, %1, %cst {dimension_numbers = #tpu.dot_dimension_numbers<[1], [0], [0], [1], [0, 0, 1, 1], [], []>} : vector<128x128xf32>, vector<128x128xf32>, vector<128x128xf32> -> vector<128x128xf32>
    %cst_3 = arith.constant dense<0.000000e+00> : vector<128xf32>
    %3 = vector.multi_reduction <add>, %2, %cst_3 [0] : vector<128x128xf32> to vector<128xf32>
    %4 = vector.shape_cast %3 : vector<128xf32> to vector<1x128xf32>
    %5 = arith.mulf %2, %2 : vector<128x128xf32>
    %cst_4 = arith.constant dense<0.000000e+00> : vector<128xf32>
    %6 = vector.multi_reduction <add>, %5, %cst_4 [0] : vector<128x128xf32> to vector<128xf32>
    %7 = vector.shape_cast %6 : vector<128xf32> to vector<1x128xf32>
    %8 = tpu.concatenate %4, %7 in 0 : vector<1x128xf32>, vector<1x128xf32> -> vector<2x128xf32>
    %9 = vector.shape_cast %8 : vector<2x128xf32> to vector<1x2x128xf32>
    %c0_5 = arith.constant 0 : index
    %c0_6 = arith.constant 0 : index
    %c0_7 = arith.constant 0 : index
    %10 = vector.load %arg4[%c0_5, %c0_6, %c0_7] : memref<1x2x128xf32, #tpu.memory_space<vmem>>, vector<1x2x128xf32>
    tpu.vector_store %arg4[%c0_5, %c0_6, %c0_7], %9 {strides = array<i32>} : memref<1x2x128xf32, #tpu.memory_space<vmem>>, vector<1x2x128xf32>,
    %c0_8 = arith.constant 0 : index
    %c0_9 = arith.constant 0 : index
    %11 = vector.load %arg3[%c0_8, %c0_9] : memref<128x128xf32, #tpu.memory_space<vmem>>, vector<128x128xf32>
    tpu.vector_store %arg3[%c0_8, %c0_9], %2 {strides = array<i32>} : memref<128x128xf32, #tpu.memory_space<vmem>>, vector<128x128xf32>,
    return
  }
  func.func @transform_0(%arg0: i32) -> (i32, i32) {
    %c0_i32 = arith.constant 0 : i32
    %c0_i32_0 = arith.constant 0 : i32
    return %arg0, %c0_i32 : i32, i32
  }
  func.func @transform_1(%arg0: i32) -> (i32, i32) {
    %c0_i32 = arith.constant 0 : i32
    %c0_i32_0 = arith.constant 0 : i32
    %c0_i32_1 = arith.constant 0 : i32
    return %c0_i32, %c0_i32_0 : i32, i32
  }
  func.func @transform_2(%arg0: i32) -> (i32, i32) {
    %c0_i32 = arith.constant 0 : i32
    %c0_i32_0 = arith.constant 0 : i32
    return %arg0, %c0_i32 : i32, i32
  }
  func.func @transform_3(%arg0: i32) -> (i32, i32, i32) {
    %c0_i32 = arith.constant 0 : i32
    %c0_i32_0 = arith.constant 0 : i32
    %c0_i32_1 = arith.constant 0 : i32
    return %arg0, %c0_i32, %c0_i32_0 : i32, i32, i32
  }
}

module attributes {stable_mosaic.version = 11 : i64} {
  func.func @kernel(%arg0: i32, %arg1: i32, %arg2: memref<1x324x128xf32, #tpu.memory_space<vmem>>, %arg3: memref<1x128xf32, #tpu.memory_space<vmem>>, %arg4: memref<1x128xf32, #tpu.memory_space<vmem>>, %arg5: memref<1152x128xf32, #tpu.memory_space<vmem>>, %arg6: memref<1x1x128x128xf32, #tpu.memory_space<vmem>>, %arg7: memref<1x1x2x128xf32, #tpu.memory_space<vmem>>, %arg8: memref<184x128xf32, #tpu.memory_space<vmem>>) attributes {dimension_semantics = [#tpu.dimension_semantics<parallel>, #tpu.dimension_semantics<parallel>], iteration_bounds = array<i64: 2, 2>, scalar_prefetch = 0 : i64, scratch_operands = 1 : i64, tpu.core_type = #tpu.core_type<tc>, window_params = [{transform_indices = @transform_0, window_bounds = array<i64: 1, 324, 128>}, {pipeline_mode = #tpu.pipeline_mode<synchronous>, transform_indices = @transform_1, window_bounds = array<i64: 1, 128>}, {pipeline_mode = #tpu.pipeline_mode<synchronous>, transform_indices = @transform_2, window_bounds = array<i64: 1, 128>}, {pipeline_mode = #tpu.pipeline_mode<synchronous>, transform_indices = @transform_3, window_bounds = array<i64: 1152, 128>}, {transform_indices = @transform_4, window_bounds = array<i64: 1, 1, 128, 128>}, {transform_indices = @transform_5, window_bounds = array<i64: 1, 1, 2, 128>}]} {
    %c144_i32 = arith.constant 144 : i32
    %0 = arith.muli %arg1, %c144_i32 : i32
    %1 = tpu.assume_multiple %0, 8 : i32
    %c0 = arith.constant 0 : index
    %2 = arith.index_cast %1 : i32 to index
    %c0_0 = arith.constant 0 : index
    %3 = vector.load %arg2[%c0, %2, %c0_0] : memref<1x324x128xf32, #tpu.memory_space<vmem>>, vector<1x180x128xf32>
    %4 = vector.shape_cast %3 : vector<1x180x128xf32> to vector<180x128xf32>
    %c0_1 = arith.constant 0 : index
    %c0_2 = arith.constant 0 : index
    %5 = vector.load %arg3[%c0_1, %c0_2] : memref<1x128xf32, #tpu.memory_space<vmem>>, vector<1x128xf32>
    %6 = vector.broadcast %5 : vector<1x128xf32> to vector<180x128xf32>
    %7 = arith.mulf %4, %6 : vector<180x128xf32>
    %c0_3 = arith.constant 0 : index
    %c0_4 = arith.constant 0 : index
    %8 = vector.load %arg4[%c0_3, %c0_4] : memref<1x128xf32, #tpu.memory_space<vmem>>, vector<1x128xf32>
    %9 = vector.broadcast %8 : vector<1x128xf32> to vector<180x128xf32>
    %10 = arith.addf %7, %9 : vector<180x128xf32>
    %cst = arith.constant 0.000000e+00 : f32
    %11 = vector.broadcast %cst : f32 to vector<180x128xf32>
    %12 = arith.maximumf %10, %11 : vector<180x128xf32>
    %c0_5 = arith.constant 0 : index
    %c0_6 = arith.constant 0 : index
    %13 = vector.load %arg8[%c0_5, %c0_6] : memref<184x128xf32, #tpu.memory_space<vmem>>, vector<180x128xf32>
    tpu.vector_store %arg8[%c0_5, %c0_6], %12 {strides = array<i32>} : memref<184x128xf32, #tpu.memory_space<vmem>>, vector<180x128xf32>,
    %cst_7 = arith.constant 0.000000e+00 : f32
    %14 = vector.broadcast %cst_7 : f32 to vector<4x128xf32>
    %c180 = arith.constant 180 : index
    %c0_8 = arith.constant 0 : index
    %15 = vector.load %arg8[%c180, %c0_8] : memref<184x128xf32, #tpu.memory_space<vmem>>, vector<4x128xf32>
    tpu.vector_store %arg8[%c180, %c0_8], %14 {strides = array<i32>} : memref<184x128xf32, #tpu.memory_space<vmem>>, vector<4x128xf32>,
    %cst_9 = arith.constant 0.000000e+00 : f32
    %16 = vector.broadcast %cst_9 : f32 to vector<18x128xf32>
    %cst_10 = arith.constant 0.000000e+00 : f32
    %17 = vector.broadcast %cst_10 : f32 to vector<2x128xf32>
    %c0_i32 = arith.constant 0 : i32
    %18 = arith.cmpi eq, %arg1, %c0_i32 : i32
    %19 = arith.extui %18 : i1 to i32
    %c0_i32_11 = arith.constant 0 : i32
    %20 = arith.cmpi ne, %19, %c0_i32_11 : i32
    scf.if %20 {
      %c0_65 = arith.constant 0 : index
      %c0_66 = arith.constant 0 : index
      %92 = vector.load %arg8[%c0_65, %c0_66] : memref<184x128xf32, #tpu.memory_space<vmem>>, vector<18x128xf32>
      tpu.vector_store %arg8[%c0_65, %c0_66], %16 {strides = array<i32>} : memref<184x128xf32, #tpu.memory_space<vmem>>, vector<18x128xf32>,
    } else {
    }
    %c1_i32 = arith.constant 1 : i32
    %21 = arith.cmpi eq, %arg1, %c1_i32 : i32
    %22 = arith.extui %21 : i1 to i32
    %c0_i32_12 = arith.constant 0 : i32
    %23 = arith.cmpi ne, %22, %c0_i32_12 : i32
    scf.if %23 {
      %c162 = arith.constant 162 : index
      %c0_65 = arith.constant 0 : index
      %92 = vector.load %arg8[%c162, %c0_65] : memref<184x128xf32, #tpu.memory_space<vmem>>, vector<18x128xf32>
      tpu.vector_store %arg8[%c162, %c0_65], %16 {strides = array<i32>} : memref<184x128xf32, #tpu.memory_space<vmem>>, vector<18x128xf32>,
    } else {
    }
    %24 = vector.extract_strided_slice %17 {offsets = [0, 0], sizes = [1, 128], strides = [1, 1]} : vector<2x128xf32> to vector<1x128xf32>
    %c0_13 = arith.constant 0 : index
    %c0_14 = arith.constant 0 : index
    %25 = vector.load %arg8[%c0_13, %c0_14] : memref<184x128xf32, #tpu.memory_space<vmem>>, vector<1x128xf32>
    tpu.vector_store %arg8[%c0_13, %c0_14], %24 {strides = array<i32>} : memref<184x128xf32, #tpu.memory_space<vmem>>, vector<1x128xf32>,
    %c17 = arith.constant 17 : index
    %c0_15 = arith.constant 0 : index
    %26 = vector.load %arg8[%c17, %c0_15] : memref<184x128xf32, #tpu.memory_space<vmem>>, vector<2x128xf32>
    tpu.vector_store %arg8[%c17, %c0_15], %17 {strides = array<i32>} : memref<184x128xf32, #tpu.memory_space<vmem>>, vector<2x128xf32>,
    %c35 = arith.constant 35 : index
    %c0_16 = arith.constant 0 : index
    %27 = vector.load %arg8[%c35, %c0_16] : memref<184x128xf32, #tpu.memory_space<vmem>>, vector<2x128xf32>
    tpu.vector_store %arg8[%c35, %c0_16], %17 {strides = array<i32>} : memref<184x128xf32, #tpu.memory_space<vmem>>, vector<2x128xf32>,
    %c53 = arith.constant 53 : index
    %c0_17 = arith.constant 0 : index
    %28 = vector.load %arg8[%c53, %c0_17] : memref<184x128xf32, #tpu.memory_space<vmem>>, vector<2x128xf32>
    tpu.vector_store %arg8[%c53, %c0_17], %17 {strides = array<i32>} : memref<184x128xf32, #tpu.memory_space<vmem>>, vector<2x128xf32>,
    %c71 = arith.constant 71 : index
    %c0_18 = arith.constant 0 : index
    %29 = vector.load %arg8[%c71, %c0_18] : memref<184x128xf32, #tpu.memory_space<vmem>>, vector<2x128xf32>
    tpu.vector_store %arg8[%c71, %c0_18], %17 {strides = array<i32>} : memref<184x128xf32, #tpu.memory_space<vmem>>, vector<2x128xf32>,
    %c89 = arith.constant 89 : index
    %c0_19 = arith.constant 0 : index
    %30 = vector.load %arg8[%c89, %c0_19] : memref<184x128xf32, #tpu.memory_space<vmem>>, vector<2x128xf32>
    tpu.vector_store %arg8[%c89, %c0_19], %17 {strides = array<i32>} : memref<184x128xf32, #tpu.memory_space<vmem>>, vector<2x128xf32>,
    %c107 = arith.constant 107 : index
    %c0_20 = arith.constant 0 : index
    %31 = vector.load %arg8[%c107, %c0_20] : memref<184x128xf32, #tpu.memory_space<vmem>>, vector<2x128xf32>
    tpu.vector_store %arg8[%c107, %c0_20], %17 {strides = array<i32>} : memref<184x128xf32, #tpu.memory_space<vmem>>, vector<2x128xf32>,
    %c125 = arith.constant 125 : index
    %c0_21 = arith.constant 0 : index
    %32 = vector.load %arg8[%c125, %c0_21] : memref<184x128xf32, #tpu.memory_space<vmem>>, vector<2x128xf32>
    tpu.vector_store %arg8[%c125, %c0_21], %17 {strides = array<i32>} : memref<184x128xf32, #tpu.memory_space<vmem>>, vector<2x128xf32>,
    %c143 = arith.constant 143 : index
    %c0_22 = arith.constant 0 : index
    %33 = vector.load %arg8[%c143, %c0_22] : memref<184x128xf32, #tpu.memory_space<vmem>>, vector<2x128xf32>
    tpu.vector_store %arg8[%c143, %c0_22], %17 {strides = array<i32>} : memref<184x128xf32, #tpu.memory_space<vmem>>, vector<2x128xf32>,
    %c161 = arith.constant 161 : index
    %c0_23 = arith.constant 0 : index
    %34 = vector.load %arg8[%c161, %c0_23] : memref<184x128xf32, #tpu.memory_space<vmem>>, vector<2x128xf32>
    tpu.vector_store %arg8[%c161, %c0_23], %17 {strides = array<i32>} : memref<184x128xf32, #tpu.memory_space<vmem>>, vector<2x128xf32>,
    %c179 = arith.constant 179 : index
    %c0_24 = arith.constant 0 : index
    %35 = vector.load %arg8[%c179, %c0_24] : memref<184x128xf32, #tpu.memory_space<vmem>>, vector<2x128xf32>
    tpu.vector_store %arg8[%c179, %c0_24], %17 {strides = array<i32>} : memref<184x128xf32, #tpu.memory_space<vmem>>, vector<2x128xf32>,
    %cst_25 = arith.constant 0.000000e+00 : f32
    %36 = vector.broadcast %cst_25 : f32 to vector<144x128xf32>
    %c0_26 = arith.constant 0 : index
    %c0_27 = arith.constant 0 : index
    %37 = vector.load %arg8[%c0_26, %c0_27] : memref<184x128xf32, #tpu.memory_space<vmem>>, vector<144x128xf32>
    %c0_28 = arith.constant 0 : index
    %c0_29 = arith.constant 0 : index
    %38 = vector.load %arg5[%c0_28, %c0_29] : memref<1152x128xf32, #tpu.memory_space<vmem>>, vector<128x128xf32>
    %cst_30 = arith.constant dense<0.000000e+00> : vector<144x128xf32>
    %39 = tpu.matmul %37, %38, %cst_30 {dimension_numbers = #tpu.dot_dimension_numbers<[1], [0], [0], [1], [0, 0, 1, 1], [], []>} : vector<144x128xf32>, vector<128x128xf32>, vector<144x128xf32> -> vector<144x128xf32>
    %40 = arith.addf %36, %39 : vector<144x128xf32>
    %c1 = arith.constant 1 : index
    %c0_31 = arith.constant 0 : index
    %41 = vector.load %arg8[%c1, %c0_31] : memref<184x128xf32, #tpu.memory_space<vmem>>, vector<144x128xf32>
    %c128 = arith.constant 128 : index
    %c0_32 = arith.constant 0 : index
    %42 = vector.load %arg5[%c128, %c0_32] : memref<1152x128xf32, #tpu.memory_space<vmem>>, vector<128x128xf32>
    %cst_33 = arith.constant dense<0.000000e+00> : vector<144x128xf32>
    %43 = tpu.matmul %41, %42, %cst_33 {dimension_numbers = #tpu.dot_dimension_numbers<[1], [0], [0], [1], [0, 0, 1, 1], [], []>} : vector<144x128xf32>, vector<128x128xf32>, vector<144x128xf32> -> vector<144x128xf32>
    %44 = arith.addf %40, %43 : vector<144x128xf32>
    %c2 = arith.constant 2 : index
    %c0_34 = arith.constant 0 : index
    %45 = vector.load %arg8[%c2, %c0_34] : memref<184x128xf32, #tpu.memory_space<vmem>>, vector<144x128xf32>
    %c256 = arith.constant 256 : index
    %c0_35 = arith.constant 0 : index
    %46 = vector.load %arg5[%c256, %c0_35] : memref<1152x128xf32, #tpu.memory_space<vmem>>, vector<128x128xf32>
    %cst_36 = arith.constant dense<0.000000e+00> : vector<144x128xf32>
    %47 = tpu.matmul %45, %46, %cst_36 {dimension_numbers = #tpu.dot_dimension_numbers<[1], [0], [0], [1], [0, 0, 1, 1], [], []>} : vector<144x128xf32>, vector<128x128xf32>, vector<144x128xf32> -> vector<144x128xf32>
    %48 = arith.addf %44, %47 : vector<144x128xf32>
    %c18 = arith.constant 18 : index
    %c0_37 = arith.constant 0 : index
    %49 = vector.load %arg8[%c18, %c0_37] : memref<184x128xf32, #tpu.memory_space<vmem>>, vector<144x128xf32>
    %c384 = arith.constant 384 : index
    %c0_38 = arith.constant 0 : index
    %50 = vector.load %arg5[%c384, %c0_38] : memref<1152x128xf32, #tpu.memory_space<vmem>>, vector<128x128xf32>
    %cst_39 = arith.constant dense<0.000000e+00> : vector<144x128xf32>
    %51 = tpu.matmul %49, %50, %cst_39 {dimension_numbers = #tpu.dot_dimension_numbers<[1], [0], [0], [1], [0, 0, 1, 1], [], []>} : vector<144x128xf32>, vector<128x128xf32>, vector<144x128xf32> -> vector<144x128xf32>
    %52 = arith.addf %48, %51 : vector<144x128xf32>
    %c19 = arith.constant 19 : index
    %c0_40 = arith.constant 0 : index
    %53 = vector.load %arg8[%c19, %c0_40] : memref<184x128xf32, #tpu.memory_space<vmem>>, vector<144x128xf32>
    %c512 = arith.constant 512 : index
    %c0_41 = arith.constant 0 : index
    %54 = vector.load %arg5[%c512, %c0_41] : memref<1152x128xf32, #tpu.memory_space<vmem>>, vector<128x128xf32>
    %cst_42 = arith.constant dense<0.000000e+00> : vector<144x128xf32>
    %55 = tpu.matmul %53, %54, %cst_42 {dimension_numbers = #tpu.dot_dimension_numbers<[1], [0], [0], [1], [0, 0, 1, 1], [], []>} : vector<144x128xf32>, vector<128x128xf32>, vector<144x128xf32> -> vector<144x128xf32>
    %56 = arith.addf %52, %55 : vector<144x128xf32>
    %c20 = arith.constant 20 : index
    %c0_43 = arith.constant 0 : index
    %57 = vector.load %arg8[%c20, %c0_43] : memref<184x128xf32, #tpu.memory_space<vmem>>, vector<144x128xf32>
    %c640 = arith.constant 640 : index
    %c0_44 = arith.constant 0 : index
    %58 = vector.load %arg5[%c640, %c0_44] : memref<1152x128xf32, #tpu.memory_space<vmem>>, vector<128x128xf32>
    %cst_45 = arith.constant dense<0.000000e+00> : vector<144x128xf32>
    %59 = tpu.matmul %57, %58, %cst_45 {dimension_numbers = #tpu.dot_dimension_numbers<[1], [0], [0], [1], [0, 0, 1, 1], [], []>} : vector<144x128xf32>, vector<128x128xf32>, vector<144x128xf32> -> vector<144x128xf32>
    %60 = arith.addf %56, %59 : vector<144x128xf32>
    %c36 = arith.constant 36 : index
    %c0_46 = arith.constant 0 : index
    %61 = vector.load %arg8[%c36, %c0_46] : memref<184x128xf32, #tpu.memory_space<vmem>>, vector<144x128xf32>
    %c768 = arith.constant 768 : index
    %c0_47 = arith.constant 0 : index
    %62 = vector.load %arg5[%c768, %c0_47] : memref<1152x128xf32, #tpu.memory_space<vmem>>, vector<128x128xf32>
    %cst_48 = arith.constant dense<0.000000e+00> : vector<144x128xf32>
    %63 = tpu.matmul %61, %62, %cst_48 {dimension_numbers = #tpu.dot_dimension_numbers<[1], [0], [0], [1], [0, 0, 1, 1], [], []>} : vector<144x128xf32>, vector<128x128xf32>, vector<144x128xf32> -> vector<144x128xf32>
    %64 = arith.addf %60, %63 : vector<144x128xf32>
    %c37 = arith.constant 37 : index
    %c0_49 = arith.constant 0 : index
    %65 = vector.load %arg8[%c37, %c0_49] : memref<184x128xf32, #tpu.memory_space<vmem>>, vector<144x128xf32>
    %c896 = arith.constant 896 : index
    %c0_50 = arith.constant 0 : index
    %66 = vector.load %arg5[%c896, %c0_50] : memref<1152x128xf32, #tpu.memory_space<vmem>>, vector<128x128xf32>
    %cst_51 = arith.constant dense<0.000000e+00> : vector<144x128xf32>
    %67 = tpu.matmul %65, %66, %cst_51 {dimension_numbers = #tpu.dot_dimension_numbers<[1], [0], [0], [1], [0, 0, 1, 1], [], []>} : vector<144x128xf32>, vector<128x128xf32>, vector<144x128xf32> -> vector<144x128xf32>
    %68 = arith.addf %64, %67 : vector<144x128xf32>
    %c38 = arith.constant 38 : index
    %c0_52 = arith.constant 0 : index
    %69 = vector.load %arg8[%c38, %c0_52] : memref<184x128xf32, #tpu.memory_space<vmem>>, vector<144x128xf32>
    %c1024 = arith.constant 1024 : index
    %c0_53 = arith.constant 0 : index
    %70 = vector.load %arg5[%c1024, %c0_53] : memref<1152x128xf32, #tpu.memory_space<vmem>>, vector<128x128xf32>
    %cst_54 = arith.constant dense<0.000000e+00> : vector<144x128xf32>
    %71 = tpu.matmul %69, %70, %cst_54 {dimension_numbers = #tpu.dot_dimension_numbers<[1], [0], [0], [1], [0, 0, 1, 1], [], []>} : vector<144x128xf32>, vector<128x128xf32>, vector<144x128xf32> -> vector<144x128xf32>
    %72 = arith.addf %68, %71 : vector<144x128xf32>
    %73 = vector.extract_strided_slice %72 {offsets = [0, 0], sizes = [16, 128], strides = [1, 1]} : vector<144x128xf32> to vector<16x128xf32>
    %74 = vector.extract_strided_slice %72 {offsets = [18, 0], sizes = [16, 128], strides = [1, 1]} : vector<144x128xf32> to vector<16x128xf32>
    %75 = vector.extract_strided_slice %72 {offsets = [36, 0], sizes = [16, 128], strides = [1, 1]} : vector<144x128xf32> to vector<16x128xf32>
    %76 = vector.extract_strided_slice %72 {offsets = [54, 0], sizes = [16, 128], strides = [1, 1]} : vector<144x128xf32> to vector<16x128xf32>
    %77 = vector.extract_strided_slice %72 {offsets = [72, 0], sizes = [16, 128], strides = [1, 1]} : vector<144x128xf32> to vector<16x128xf32>
    %78 = vector.extract_strided_slice %72 {offsets = [90, 0], sizes = [16, 128], strides = [1, 1]} : vector<144x128xf32> to vector<16x128xf32>
    %79 = vector.extract_strided_slice %72 {offsets = [108, 0], sizes = [16, 128], strides = [1, 1]} : vector<144x128xf32> to vector<16x128xf32>
    %80 = vector.extract_strided_slice %72 {offsets = [126, 0], sizes = [16, 128], strides = [1, 1]} : vector<144x128xf32> to vector<16x128xf32>
    %81 = tpu.concatenate %73, %74, %75, %76, %77, %78, %79, %80 in 0 : vector<16x128xf32>, vector<16x128xf32>, vector<16x128xf32>, vector<16x128xf32>, vector<16x128xf32>, vector<16x128xf32>, vector<16x128xf32>, vector<16x128xf32> -> vector<128x128xf32>
    %cst_55 = arith.constant dense<0.000000e+00> : vector<128xf32>
    %82 = vector.multi_reduction <add>, %81, %cst_55 [0] : vector<128x128xf32> to vector<128xf32>
    %83 = vector.shape_cast %82 : vector<128xf32> to vector<1x128xf32>
    %84 = arith.mulf %81, %81 : vector<128x128xf32>
    %cst_56 = arith.constant dense<0.000000e+00> : vector<128xf32>
    %85 = vector.multi_reduction <add>, %84, %cst_56 [0] : vector<128x128xf32> to vector<128xf32>
    %86 = vector.shape_cast %85 : vector<128xf32> to vector<1x128xf32>
    %87 = tpu.concatenate %83, %86 in 0 : vector<1x128xf32>, vector<1x128xf32> -> vector<2x128xf32>
    %88 = vector.shape_cast %87 : vector<2x128xf32> to vector<1x1x2x128xf32>
    %c0_57 = arith.constant 0 : index
    %c0_58 = arith.constant 0 : index
    %c0_59 = arith.constant 0 : index
    %c0_60 = arith.constant 0 : index
    %89 = vector.load %arg7[%c0_57, %c0_58, %c0_59, %c0_60] : memref<1x1x2x128xf32, #tpu.memory_space<vmem>>, vector<1x1x2x128xf32>
    tpu.vector_store %arg7[%c0_57, %c0_58, %c0_59, %c0_60], %88 {strides = array<i32>} : memref<1x1x2x128xf32, #tpu.memory_space<vmem>>, vector<1x1x2x128xf32>,
    %90 = vector.shape_cast %81 : vector<128x128xf32> to vector<1x1x128x128xf32>
    %c0_61 = arith.constant 0 : index
    %c0_62 = arith.constant 0 : index
    %c0_63 = arith.constant 0 : index
    %c0_64 = arith.constant 0 : index
    %91 = vector.load %arg6[%c0_61, %c0_62, %c0_63, %c0_64] : memref<1x1x128x128xf32, #tpu.memory_space<vmem>>, vector<1x1x128x128xf32>
    tpu.vector_store %arg6[%c0_61, %c0_62, %c0_63, %c0_64], %90 {strides = array<i32>} : memref<1x1x128x128xf32, #tpu.memory_space<vmem>>, vector<1x1x128x128xf32>,
    return
  }
  func.func @transform_0(%arg0: i32, %arg1: i32) -> (i32, i32, i32) {
    %c0_i32 = arith.constant 0 : i32
    %c0_i32_0 = arith.constant 0 : i32
    %c0_i32_1 = arith.constant 0 : i32
    return %arg0, %c0_i32, %c0_i32_0 : i32, i32, i32
  }
  func.func @transform_1(%arg0: i32, %arg1: i32) -> (i32, i32) {
    %c0_i32 = arith.constant 0 : i32
    %c0_i32_0 = arith.constant 0 : i32
    %c0_i32_1 = arith.constant 0 : i32
    return %c0_i32, %c0_i32_0 : i32, i32
  }
  func.func @transform_2(%arg0: i32, %arg1: i32) -> (i32, i32) {
    %c0_i32 = arith.constant 0 : i32
    %c0_i32_0 = arith.constant 0 : i32
    %c0_i32_1 = arith.constant 0 : i32
    return %c0_i32, %c0_i32_0 : i32, i32
  }
  func.func @transform_3(%arg0: i32, %arg1: i32) -> (i32, i32) {
    %c0_i32 = arith.constant 0 : i32
    %c0_i32_0 = arith.constant 0 : i32
    %c0_i32_1 = arith.constant 0 : i32
    return %c0_i32, %c0_i32_0 : i32, i32
  }
  func.func @transform_4(%arg0: i32, %arg1: i32) -> (i32, i32, i32, i32) {
    %c0_i32 = arith.constant 0 : i32
    %c0_i32_0 = arith.constant 0 : i32
    %c0_i32_1 = arith.constant 0 : i32
    return %arg0, %arg1, %c0_i32, %c0_i32_0 : i32, i32, i32, i32
  }
  func.func @transform_5(%arg0: i32, %arg1: i32) -> (i32, i32, i32, i32) {
    %c0_i32 = arith.constant 0 : i32
    %c0_i32_0 = arith.constant 0 : i32
    %c0_i32_1 = arith.constant 0 : i32
    return %arg0, %arg1, %c0_i32, %c0_i32_0 : i32, i32, i32, i32
  }
}

module attributes {stable_mosaic.version = 11 : i64} {
  func.func @kernel(%arg0: i32, %arg1: memref<128x128xf32, #tpu.memory_space<vmem>>, %arg2: memref<1x128xf32, #tpu.memory_space<vmem>>, %arg3: memref<1x128xf32, #tpu.memory_space<vmem>>, %arg4: memref<128x128xf32, #tpu.memory_space<vmem>>, %arg5: memref<128x128xf32, #tpu.memory_space<vmem>>, %arg6: memref<1x2x128xf32, #tpu.memory_space<vmem>>) attributes {dimension_semantics = [#tpu.dimension_semantics<parallel>], iteration_bounds = array<i64: 4>, scalar_prefetch = 0 : i64, scratch_operands = 0 : i64, tpu.core_type = #tpu.core_type<tc>, window_params = [{transform_indices = @transform_0, window_bounds = array<i64: 128, 128>}, {pipeline_mode = #tpu.pipeline_mode<synchronous>, transform_indices = @transform_1, window_bounds = array<i64: 1, 128>}, {pipeline_mode = #tpu.pipeline_mode<synchronous>, transform_indices = @transform_2, window_bounds = array<i64: 1, 128>}, {pipeline_mode = #tpu.pipeline_mode<synchronous>, transform_indices = @transform_3, window_bounds = array<i64: 128, 128>}, {transform_indices = @transform_4, window_bounds = array<i64: 128, 128>}, {transform_indices = @transform_5, window_bounds = array<i64: 1, 2, 128>}]} {
    %c0 = arith.constant 0 : index
    %c0_0 = arith.constant 0 : index
    %0 = vector.load %arg1[%c0, %c0_0] : memref<128x128xf32, #tpu.memory_space<vmem>>, vector<128x128xf32>
    %c0_1 = arith.constant 0 : index
    %c0_2 = arith.constant 0 : index
    %1 = vector.load %arg2[%c0_1, %c0_2] : memref<1x128xf32, #tpu.memory_space<vmem>>, vector<1x128xf32>
    %2 = vector.broadcast %1 : vector<1x128xf32> to vector<128x128xf32>
    %3 = arith.mulf %0, %2 : vector<128x128xf32>
    %c0_3 = arith.constant 0 : index
    %c0_4 = arith.constant 0 : index
    %4 = vector.load %arg3[%c0_3, %c0_4] : memref<1x128xf32, #tpu.memory_space<vmem>>, vector<1x128xf32>
    %5 = vector.broadcast %4 : vector<1x128xf32> to vector<128x128xf32>
    %6 = arith.addf %3, %5 : vector<128x128xf32>
    %cst = arith.constant 0.000000e+00 : f32
    %7 = vector.broadcast %cst : f32 to vector<128x128xf32>
    %8 = arith.maximumf %6, %7 : vector<128x128xf32>
    %c0_5 = arith.constant 0 : index
    %c0_6 = arith.constant 0 : index
    %9 = vector.load %arg4[%c0_5, %c0_6] : memref<128x128xf32, #tpu.memory_space<vmem>>, vector<128x128xf32>
    %cst_7 = arith.constant dense<0.000000e+00> : vector<128x128xf32>
    %10 = tpu.matmul %8, %9, %cst_7 {dimension_numbers = #tpu.dot_dimension_numbers<[1], [0], [0], [1], [0, 0, 1, 1], [], []>} : vector<128x128xf32>, vector<128x128xf32>, vector<128x128xf32> -> vector<128x128xf32>
    %cst_8 = arith.constant dense<0.000000e+00> : vector<128xf32>
    %11 = vector.multi_reduction <add>, %10, %cst_8 [0] : vector<128x128xf32> to vector<128xf32>
    %12 = vector.shape_cast %11 : vector<128xf32> to vector<1x128xf32>
    %13 = arith.mulf %10, %10 : vector<128x128xf32>
    %cst_9 = arith.constant dense<0.000000e+00> : vector<128xf32>
    %14 = vector.multi_reduction <add>, %13, %cst_9 [0] : vector<128x128xf32> to vector<128xf32>
    %15 = vector.shape_cast %14 : vector<128xf32> to vector<1x128xf32>
    %16 = tpu.concatenate %12, %15 in 0 : vector<1x128xf32>, vector<1x128xf32> -> vector<2x128xf32>
    %17 = vector.shape_cast %16 : vector<2x128xf32> to vector<1x2x128xf32>
    %c0_10 = arith.constant 0 : index
    %c0_11 = arith.constant 0 : index
    %c0_12 = arith.constant 0 : index
    %18 = vector.load %arg6[%c0_10, %c0_11, %c0_12] : memref<1x2x128xf32, #tpu.memory_space<vmem>>, vector<1x2x128xf32>
    tpu.vector_store %arg6[%c0_10, %c0_11, %c0_12], %17 {strides = array<i32>} : memref<1x2x128xf32, #tpu.memory_space<vmem>>, vector<1x2x128xf32>,
    %c0_13 = arith.constant 0 : index
    %c0_14 = arith.constant 0 : index
    %19 = vector.load %arg5[%c0_13, %c0_14] : memref<128x128xf32, #tpu.memory_space<vmem>>, vector<128x128xf32>
    tpu.vector_store %arg5[%c0_13, %c0_14], %10 {strides = array<i32>} : memref<128x128xf32, #tpu.memory_space<vmem>>, vector<128x128xf32>,
    return
  }
  func.func @transform_0(%arg0: i32) -> (i32, i32) {
    %c0_i32 = arith.constant 0 : i32
    %c0_i32_0 = arith.constant 0 : i32
    return %arg0, %c0_i32 : i32, i32
  }
  func.func @transform_1(%arg0: i32) -> (i32, i32) {
    %c0_i32 = arith.constant 0 : i32
    %c0_i32_0 = arith.constant 0 : i32
    %c0_i32_1 = arith.constant 0 : i32
    return %c0_i32, %c0_i32_0 : i32, i32
  }
  func.func @transform_2(%arg0: i32) -> (i32, i32) {
    %c0_i32 = arith.constant 0 : i32
    %c0_i32_0 = arith.constant 0 : i32
    %c0_i32_1 = arith.constant 0 : i32
    return %c0_i32, %c0_i32_0 : i32, i32
  }
  func.func @transform_3(%arg0: i32) -> (i32, i32) {
    %c0_i32 = arith.constant 0 : i32
    %c0_i32_0 = arith.constant 0 : i32
    %c0_i32_1 = arith.constant 0 : i32
    return %c0_i32, %c0_i32_0 : i32, i32
  }
  func.func @transform_4(%arg0: i32) -> (i32, i32) {
    %c0_i32 = arith.constant 0 : i32
    %c0_i32_0 = arith.constant 0 : i32
    return %arg0, %c0_i32 : i32, i32
  }
  func.func @transform_5(%arg0: i32) -> (i32, i32, i32) {
    %c0_i32 = arith.constant 0 : i32
    %c0_i32_0 = arith.constant 0 : i32
    %c0_i32_1 = arith.constant 0 : i32
    return %arg0, %c0_i32, %c0_i32_0 : i32, i32, i32
  }
}

module attributes {stable_mosaic.version = 11 : i64} {
  func.func @kernel(%arg0: i32, %arg1: memref<128x128xf32, #tpu.memory_space<vmem>>, %arg2: memref<1x128xf32, #tpu.memory_space<vmem>>, %arg3: memref<1x128xf32, #tpu.memory_space<vmem>>, %arg4: memref<128x128xf32, #tpu.memory_space<vmem>>, %arg5: memref<128x128xf32, #tpu.memory_space<vmem>>) attributes {dimension_semantics = [#tpu.dimension_semantics<parallel>], iteration_bounds = array<i64: 4>, scalar_prefetch = 0 : i64, scratch_operands = 0 : i64, tpu.core_type = #tpu.core_type<tc>, window_params = [{transform_indices = @transform_0, window_bounds = array<i64: 128, 128>}, {pipeline_mode = #tpu.pipeline_mode<synchronous>, transform_indices = @transform_1, window_bounds = array<i64: 1, 128>}, {pipeline_mode = #tpu.pipeline_mode<synchronous>, transform_indices = @transform_2, window_bounds = array<i64: 1, 128>}, {transform_indices = @transform_3, window_bounds = array<i64: 128, 128>}, {transform_indices = @transform_4, window_bounds = array<i64: 128, 128>}]} {
    %c0 = arith.constant 0 : index
    %c0_0 = arith.constant 0 : index
    %0 = vector.load %arg4[%c0, %c0_0] : memref<128x128xf32, #tpu.memory_space<vmem>>, vector<128x128xf32>
    %c0_1 = arith.constant 0 : index
    %c0_2 = arith.constant 0 : index
    %1 = vector.load %arg1[%c0_1, %c0_2] : memref<128x128xf32, #tpu.memory_space<vmem>>, vector<128x128xf32>
    %c0_3 = arith.constant 0 : index
    %c0_4 = arith.constant 0 : index
    %2 = vector.load %arg2[%c0_3, %c0_4] : memref<1x128xf32, #tpu.memory_space<vmem>>, vector<1x128xf32>
    %3 = vector.broadcast %2 : vector<1x128xf32> to vector<128x128xf32>
    %4 = arith.mulf %1, %3 : vector<128x128xf32>
    %c0_5 = arith.constant 0 : index
    %c0_6 = arith.constant 0 : index
    %5 = vector.load %arg3[%c0_5, %c0_6] : memref<1x128xf32, #tpu.memory_space<vmem>>, vector<1x128xf32>
    %6 = vector.broadcast %5 : vector<1x128xf32> to vector<128x128xf32>
    %7 = arith.addf %4, %6 : vector<128x128xf32>
    %8 = arith.addf %7, %0 : vector<128x128xf32>
    %cst = arith.constant 0.000000e+00 : f32
    %9 = vector.broadcast %cst : f32 to vector<128x128xf32>
    %10 = arith.maximumf %8, %9 : vector<128x128xf32>
    %c0_7 = arith.constant 0 : index
    %c0_8 = arith.constant 0 : index
    %11 = vector.load %arg5[%c0_7, %c0_8] : memref<128x128xf32, #tpu.memory_space<vmem>>, vector<128x128xf32>
    tpu.vector_store %arg5[%c0_7, %c0_8], %10 {strides = array<i32>} : memref<128x128xf32, #tpu.memory_space<vmem>>, vector<128x128xf32>,
    return
  }
  func.func @transform_0(%arg0: i32) -> (i32, i32) {
    %c0_i32 = arith.constant 0 : i32
    %c0_i32_0 = arith.constant 0 : i32
    return %arg0, %c0_i32 : i32, i32
  }
  func.func @transform_1(%arg0: i32) -> (i32, i32) {
    %c0_i32 = arith.constant 0 : i32
    %c0_i32_0 = arith.constant 0 : i32
    %c0_i32_1 = arith.constant 0 : i32
    return %c0_i32, %c0_i32_0 : i32, i32
  }
  func.func @transform_2(%arg0: i32) -> (i32, i32) {
    %c0_i32 = arith.constant 0 : i32
    %c0_i32_0 = arith.constant 0 : i32
    %c0_i32_1 = arith.constant 0 : i32
    return %c0_i32, %c0_i32_0 : i32, i32
  }
  func.func @transform_3(%arg0: i32) -> (i32, i32) {
    %c0_i32 = arith.constant 0 : i32
    %c0_i32_0 = arith.constant 0 : i32
    return %arg0, %c0_i32 : i32, i32
  }
  func.func @transform_4(%arg0: i32) -> (i32, i32) {
    %c0_i32 = arith.constant 0 : i32
    %c0_i32_0 = arith.constant 0 : i32
    return %arg0, %c0_i32 : i32, i32
  }
}

</mosaic_0001>

<bundles_post_ra>
// kernel: _lambda_.4
= control target key start
LH: loop header
LB: loop body
LE: loop exit
PB: predicated region body
PF: predicated region fallthrough
CT: control target
= control target key end

     0   :  { %s694_s12 = smov 0   ;;  %s810_s0 = inlined_call_operand.vmem [shape: f32[512,128], index: 0, kind: input, shape index: {}]   ;;  %s811_s1 = inlined_call_operand.vmem [shape: f32[128,128], index: 1, kind: input, shape index: {}]   ;;  %s812_s2 = inlined_call_operand.vmem [shape: f32[512,128], index: 2, kind: output, shape index: {0}]   ;;  %s813_s3 = inlined_call_operand.vmem [shape: f32[4,2,128], index: 3, kind: output, shape index: {1}]  }
   0x1 LB: > { %s700_s13 = sadd.s32 4294967295, %s672_s12   ;;  %p530_p0 = scmp.ge.s32.totalorder %s672_s12, 1  ;;  %s672_s12 = sphi %s694_s12, %s14_s12  }
   0x2   : > { %p141_p1 = scmp.lt.s32.totalorder %s672_s12, 5 }
   0x4   : > { %p142_p2 = pnand %p530_p0, %p141_p1 }
   0x5   : > { %s531_s18 = sshll.u32 (!%p142_p2), %s700_s13, 4  ;;  %p181_p4 = scmp.lt.s32.totalorder (!%p142_p2), %s700_s13, 3 }
   0x6   : > { %145 = sbr.rel (%p142_p2) target bundleno = 287 (0x11f), region = 28  ;;  %p170_p3 = scmp.lt.s32.totalorder (!%p142_p2), %s531_s18, 63 }
   0xb   : > { %v216_v0 = vld [vmem:[%s811_s1 + $0x78] sm:$0xff]  ;;  %v215_v1 = vld [vmem:[%s811_s1 + $0x70] sm:$0xff]  ;;  %v214_v2 = vld [vmem:[%s811_s1 + $0x68] sm:$0xff]  ;;  %s815_s18 = smov (!%p170_p3, %s531_s18), 63  ;;  %s817_s13 = smov (!%p181_p4, %s700_s13), 3  ;;  %vm420_vm0 = vcmask 1040384  }
   0xc   : > { %570 = vmatprep.subr.mxu0 %v216_v0  ;;  %626 = vmatprep.subr.mxu1 %v216_v0  ;;  %v213_v3 = vld [vmem:[%s811_s1 + $0x60] sm:$0xff]  ;;  %v212_v4 = vld [vmem:[%s811_s1 + $0x58] sm:$0xff]  ;;  %v211_v5 = vld [vmem:[%s811_s1 + $0x50] sm:$0xff]  ;;  %s532_s29 = sshll.u32 %s815_s18, 3  ;;  %s535_s18 = sshll.u32 %s817_s13, 1 }
   0xd   : > { %571 = vmatpush3.msra.mxu0 %v216_v0  ;;  %642 = vmatpush3.msra.mxu1 %v216_v0  ;;  %v210_v6 = vld [vmem:[%s811_s1 + $0x48] sm:$0xff]  ;;  %v209_v7 = vld [vmem:[%s811_s1 + $0x40] sm:$0xff]  ;;  %s737_s7 = scalar_lea.vmem %s810_s0, %s532_s29  ;;  %v208_v8 = vld [vmem:[%s811_s1 + $0x38] sm:$0xff]  ;;  %s784_s30 = scalar_lea.vmem %s812_s2, %s532_s29 }
   0xe   : > { %572 = vmatprep.subr.mxu0 %v215_v1  ;;  %627 = vmatprep.subr.mxu1 %v215_v1  ;;  %v207_v9 = vld [vmem:[%s811_s1 + $0x30] sm:$0xff]  ;;  %v185_v10 = vld [vmem:[%s737_s7] sm:$0xff]  ;;  %v206_v11 = vld [vmem:[%s811_s1 + $0x28] sm:$0xff]  ;;  %s184_s5 = scalar_lea.vmem %s813_s3, %s535_s18 }
   0xf   : > { %573 = vmatpush3.msra.mxu0 %v215_v1  ;;  %643 = vmatpush3.msra.mxu1 %v215_v1  ;;  %v205_v12 = vld [vmem:[%s811_s1 + $0x20] sm:$0xff]  ;;  %v204_v13 = vld [vmem:[%s811_s1 + $0x18] sm:$0xff]  ;;  %v203_v14 = vld [vmem:[%s811_s1 + $0x10] sm:$0xff] }
  0x10   : > { %574 = vmatprep.subr.mxu0 %v214_v2  ;;  %628 = vmatprep.subr.mxu1 %v214_v2  ;;  %v202_v15 = vld [vmem:[%s811_s1 + $0x8] sm:$0xff]  ;;  %v201_v16 = vld [vmem:[%s811_s1] sm:$0xff]  ;;  %v187_v18 = vld [vmem:[%s737_s7 + $0x10] sm:$0xff] }
  0x11   : > { %575 = vmatpush3.msra.mxu0 %v214_v2  ;;  %644 = vmatpush3.msra.mxu1 %v214_v2  ;;  %v186_v17 = vld [vmem:[%s737_s7 + $0x8] sm:$0xff]  ;;  %v193_v19 = vld [vmem:[%s737_s7 + $0x40] sm:$0xff]  ;;  %v195_v21 = vld [vmem:[%s737_s7 + $0x50] sm:$0xff] }
  0x12   : > { %576 = vmatprep.subr.mxu0 %v213_v3  ;;  %629 = vmatprep.subr.mxu1 %v213_v3  ;;  %v194_v20 = vld [vmem:[%s737_s7 + $0x48] sm:$0xff]  ;;  %v188_v22 = vld [vmem:[%s737_s7 + $0x18] sm:$0xff]  ;;  %v189_v23 = vld [vmem:[%s737_s7 + $0x20] sm:$0xff] }
  0x13   : > { %577 = vmatpush3.msra.mxu0 %v213_v3  ;;  %645 = vmatpush3.msra.mxu1 %v213_v3  ;;  %v196_v24 = vld [vmem:[%s737_s7 + $0x58] sm:$0xff]  ;;  %v197_v25 = vld [vmem:[%s737_s7 + $0x60] sm:$0xff]  ;;  %v190_v26 = vld [vmem:[%s737_s7 + $0x28] sm:$0xff] }
  0x14   : > { %578 = vmatprep.subr.mxu0 %v212_v4  ;;  %630 = vmatprep.subr.mxu1 %v212_v4  ;;  %v191_v27 = vld [vmem:[%s737_s7 + $0x30] sm:$0xff]  ;;  %v198_v28 = vld [vmem:[%s737_s7 + $0x68] sm:$0xff]  ;;  %v192_v30 = vld [vmem:[%s737_s7 + $0x38] sm:$0xff] }
  0x15   : > { %579 = vmatpush3.msra.mxu0 %v212_v4  ;;  %646 = vmatpush3.msra.mxu1 %v212_v4  ;;  %v199_v29 = vld [vmem:[%s737_s7 + $0x70] sm:$0xff]  ;;  %v200_v31 = vld [vmem:[%s737_s7 + $0x78] sm:$0xff] }
  0x16   : > { %580 = vmatprep.subr.mxu0 %v211_v5  ;;  %631 = vmatprep.subr.mxu1 %v211_v5 }
  0x17   : > { %581 = vmatpush3.msra.mxu0 %v211_v5  ;;  %647 = vmatpush3.msra.mxu1 %v211_v5 }
  0x18   : > { %582 = vmatprep.subr.mxu0 %v210_v6  ;;  %632 = vmatprep.subr.mxu1 %v210_v6 }
  0x19   : > { %583 = vmatpush3.msra.mxu0 %v210_v6  ;;  %648 = vmatpush3.msra.mxu1 %v210_v6 }
  0x1a   : > { %584 = vmatprep.subr.mxu0 %v209_v7  ;;  %633 = vmatprep.subr.mxu1 %v209_v7 }
  0x1b   : > { %585 = vmatpush3.msra.mxu0 %v209_v7  ;;  %649 = vmatpush3.msra.mxu1 %v209_v7 }
  0x1c   : > { %586 = vmatprep.subr.mxu0 %v208_v8  ;;  %634 = vmatprep.subr.mxu1 %v208_v8 }
  0x1d   : > { %587 = vmatpush3.msra.mxu0 %v208_v8  ;;  %650 = vmatpush3.msra.mxu1 %v208_v8 }
  0x1e   : > { %588 = vmatprep.subr.mxu0 %v207_v9  ;;  %602 = vmatprep.mubr.f32.mxu0 %v185_v10 }
  0x1f   : > { %589 = vmatpush3.msra.mxu0 %v207_v9  ;;  %635 = vmatprep.subr.mxu1 %v207_v9 }
  0x20   : > { %590 = vmatprep.subr.mxu0 %v206_v11  ;;  %651 = vmatpush3.msra.mxu1 %v207_v9 }
  0x21   : > { %591 = vmatpush3.msra.mxu0 %v206_v11  ;;  %636 = vmatprep.subr.mxu1 %v206_v11 }
  0x22   : > { %592 = vmatprep.subr.mxu0 %v205_v12  ;;  %652 = vmatpush3.msra.mxu1 %v206_v11 }
  0x23   : > { %593 = vmatpush3.msra.mxu0 %v205_v12  ;;  %637 = vmatprep.subr.mxu1 %v205_v12 }
  0x24   : > { %594 = vmatprep.subr.mxu0 %v204_v13  ;;  %653 = vmatpush3.msra.mxu1 %v205_v12 }
  0x25   : > { %595 = vmatpush3.msra.mxu0 %v204_v13  ;;  %638 = vmatprep.subr.mxu1 %v204_v13 }
  0x26   : > { %596 = vmatprep.subr.mxu0 %v203_v14  ;;  %654 = vmatpush3.msra.mxu1 %v204_v13 }
  0x27   : > { %597 = vmatpush3.msra.mxu0 %v203_v14  ;;  %639 = vmatprep.subr.mxu1 %v203_v14 }
  0x28   : > { %598 = vmatprep.subr.mxu0 %v202_v15  ;;  %655 = vmatpush3.msra.mxu1 %v203_v14 }
  0x29   : > { %599 = vmatpush3.msra.mxu0 %v202_v15  ;;  %640 = vmatprep.subr.mxu1 %v202_v15 }
  0x2a   : > { %600 = vmatprep.subr.mxu0 %v201_v16  ;;  %656 = vmatpush3.msra.mxu1 %v202_v15 }
  0x2b   : > { %601 = vmatpush3.msra.mxu0 %v201_v16  ;;  %641 = vmatprep.subr.mxu1 %v201_v16 }
  0x2c   : > { %603 = vmatmul.mubr.f32.vlgmr.msra.gmra.mxu0 %v186_v17  ;;  %657 = vmatpush3.msra.mxu1 %v201_v16 }
  0x2d   : > { %605 = vmatprep.mubr.f32.mxu0 %v187_v18  ;;  %614 = vmatprep.mubr.f32.mxu1 %v193_v19 }
  0x2e   : > { %615 = vmatmul.mubr.f32.vlgmr.msra.gmra.mxu1 %v194_v20 }
  0x2f   : > { %617 = vmatprep.mubr.f32.mxu1 %v195_v21 }
  0x30   : > { %606 = vmatmul.mubr.f32.gmra.mxu0 %v188_v22 }
  0x31   : > { %608 = vmatprep.mubr.f32.mxu0 %v189_v23 }
  0x32   : > { %618 = vmatmul.mubr.f32.gmra.mxu1 %v196_v24 }
  0x33   : > { %620 = vmatprep.mubr.f32.mxu1 %v197_v25 }
  0x34   : > { %609 = vmatmul.mubr.f32.gmra.mxu0 %v190_v26 }
  0x35   : > { %611 = vmatprep.mubr.f32.mxu0 %v191_v27 }
  0x36   : > { %621 = vmatmul.mubr.f32.gmra.mxu1 %v198_v28 }
  0x37   : > { %623 = vmatprep.mubr.f32.mxu1 %v199_v29 }
  0x38   : > { %612 = vmatmul.mubr.f32.gmra.mxu0 %v192_v30 }
  0x3a   : > { %624 = vmatmul.mubr.f32.gmra.mxu1 %v200_v31 }
  0xec   : > { %v604_v32 = vpop.f32.mrf.mxu0 }
  0xed   : > { %424 = vst [vmem:[%s784_s30 + $0x8] sm:$0xff] %v604_v32  ;;  %v384_v38 = vmul.f32 %v604_v32, %v604_v32 }
  0xee   : > { %v283_v33 = vpop.f32.mrf.mxu0  ;;  %v616_v34 = vpop.f32.mrf.mxu1 }
  0xef   : > { %v383_v35 = vmul.f32 %v283_v33, %v283_v33  ;;  %423 = vst [vmem:[%s784_s30] sm:$0xff] %v283_v33  ;;  %432 = vst [vmem:[%s784_s30 + $0x48] sm:$0xff] %v616_v34  ;;  %v362_v39 = vadd.f32 %v604_v32, %v283_v33  ;;  %v392_v8 = vmul.f32 %v616_v34, %v616_v34 }
  0xf0   : > { %v607_v36 = vpop.f32.mrf.mxu0  ;;  %v323_v37 = vpop.f32.mrf.mxu1 }
  0xf1   : > { %426 = vst [vmem:[%s784_s30 + $0x18] sm:$0xff] %v607_v36  ;;  %431 = vst [vmem:[%s784_s30 + $0x40] sm:$0xff] %v323_v37  ;;  %v399_v42 = vadd.f32 %v384_v38, %v383_v35  ;;  %v386_v47 = vmul.f32 %v607_v36, %v607_v36  ;;  %v391_v7 = vmul.f32 %v323_v37, %v323_v37 }
  0xf2   : > { %v293_v40 = vpop.f32.mrf.mxu0  ;;  %v619_v41 = vpop.f32.mrf.mxu1 }
  0xf3   : > { %v363_v43 = vadd.f32 %v362_v39, %v293_v40  ;;  %v385_v44 = vmul.f32 %v293_v40, %v293_v40  ;;  %425 = vst [vmem:[%s784_s30 + $0x10] sm:$0xff] %v293_v40  ;;  %434 = vst [vmem:[%s784_s30 + $0x58] sm:$0xff] %v619_v41  ;;  %v394_v14 = vmul.f32 %v619_v41, %v619_v41 }
  0xf4   : > { %v610_v45 = vpop.f32.mrf.mxu0  ;;  %v333_v46 = vpop.f32.mrf.mxu1 }
  0xf5   : > { %v400_v48 = vadd.f32 %v399_v42, %v385_v44  ;;  %428 = vst [vmem:[%s784_s30 + $0x28] sm:$0xff] %v610_v45  ;;  %v364_v49 = vadd.f32 %v607_v36, %v363_v43  ;;  %433 = vst [vmem:[%s784_s30 + $0x50] sm:$0xff] %v333_v46  ;;  %v388_v57 = vmul.f32 %v610_v45, %v610_v45 }
  0xf6   : > { %v303_v50 = vpop.f32.mrf.mxu0  ;;  %v622_v51 = vpop.f32.mrf.mxu1  ;;  %v393_v12 = vmul.f32 %v333_v46, %v333_v46 }
  0xf7   : > { %v365_v52 = vadd.f32 %v364_v49, %v303_v50  ;;  %v387_v53 = vmul.f32 %v303_v50, %v303_v50  ;;  %v401_v54 = vadd.f32 %v400_v48, %v386_v47  ;;  %427 = vst [vmem:[%s784_s30 + $0x20] sm:$0xff] %v303_v50  ;;  %436 = vst [vmem:[%s784_s30 + $0x68] sm:$0xff] %v622_v51 }
  0xf8   : > { %v613_v55 = vpop.f32.mrf.mxu0  ;;  %v343_v56 = vpop.f32.mrf.mxu1  ;;  %v396_v20 = vmul.f32 %v622_v51, %v622_v51 }
  0xf9   : > { %v402_v58 = vadd.f32 %v401_v54, %v387_v53  ;;  %430 = vst [vmem:[%s784_s30 + $0x38] sm:$0xff] %v613_v55  ;;  %v366_v59 = vadd.f32 %v610_v45, %v365_v52  ;;  %435 = vst [vmem:[%s784_s30 + $0x60] sm:$0xff] %v343_v56  ;;  %v390_v2 = vmul.f32 %v613_v55, %v613_v55 }
  0xfa   : > { %v313_v60 = vpop.f32.mrf.mxu0  ;;  %v625_v61 = vpop.f32.mrf.mxu1  ;;  %v395_v18 = vmul.f32 %v343_v56, %v343_v56 }
  0xfb   : > { %v367_v62 = vadd.f32 %v366_v59, %v313_v60  ;;  %v389_v63 = vmul.f32 %v313_v60, %v313_v60  ;;  %v403_v0 = vadd.f32 %v402_v58, %v388_v57  ;;  %429 = vst [vmem:[%s784_s30 + $0x30] sm:$0xff] %v313_v60  ;;  %438 = vst [vmem:[%s784_s30 + $0x78] sm:$0xff] %v625_v61 }
  0xfc   : > { %v353_v1 = vpop.f32.mrf.mxu1  ;;  %v398_v26 = vmul.f32 %v625_v61, %v625_v61 }
  0xfd   : > { %v368_v3 = vadd.f32 %v613_v55, %v367_v62  ;;  %v404_v4 = vadd.f32 %v403_v0, %v389_v63  ;;  %437 = vst [vmem:[%s784_s30 + $0x70] sm:$0xff] %v353_v1  ;;  %v397_v24 = vmul.f32 %v353_v1, %v353_v1 }
  0xff   : > { %v405_v5 = vadd.f32 %v404_v4, %v390_v2  ;;  %v369_v6 = vadd.f32 %v368_v3, %v323_v37 }
 0x101   : > { %v406_v9 = vadd.f32 %v405_v5, %v391_v7  ;;  %v370_v10 = vadd.f32 %v616_v34, %v369_v6 }
 0x103   : > { %v371_v11 = vadd.f32 %v370_v10, %v333_v46  ;;  %v407_v13 = vadd.f32 %v406_v9, %v392_v8 }
 0x105   : > { %v408_v15 = vadd.f32 %v407_v13, %v393_v12  ;;  %v372_v16 = vadd.f32 %v619_v41, %v371_v11 }
 0x107   : > { %v373_v17 = vadd.f32 %v372_v16, %v343_v56  ;;  %v409_v19 = vadd.f32 %v408_v15, %v394_v14 }
 0x109   : > { %v410_v21 = vadd.f32 %v409_v19, %v395_v18  ;;  %v374_v22 = vadd.f32 %v622_v51, %v373_v17 }
 0x10b   : > { %v375_v23 = vadd.f32 %v374_v22, %v353_v1  ;;  %v411_v25 = vadd.f32 %v410_v21, %v396_v20 }
 0x10d   : > { %v376_v27 = vadd.f32 %v625_v61, %v375_v23  ;;  %v412_v28 = vadd.f32 %v411_v25, %v397_v24 }
 0x10f   : > { %v377_v29 = vrot.slane %v376_v27, 4  ;;  %v413_v30 = vadd.f32 %v412_v28, %v398_v26 }
 0x111   : > { %v378_v31 = vadd.f32 %v377_v29, %v376_v27  ;;  %v414_v32 = vrot.slane %v413_v30, 4 }
 0x113   : > { %v379_v33 = vrot.slane %v378_v31, 2  ;;  %v415_v34 = vadd.f32 %v414_v32, %v413_v30 }
 0x115   : > { %v380_v35 = vadd.f32 %v379_v33, %v378_v31  ;;  %v416_v36 = vrot.slane %v415_v34, 2 }
 0x117   : > { %v381_v37 = vrot.slane %v380_v35, 1  ;;  %v417_v38 = vadd.f32 %v416_v36, %v415_v34 }
 0x119   : > { %v418_v39 = vrot.slane %v417_v38, 1  ;;  %v382_v40 = vadd.f32 %v381_v37, %v380_v35 }
 0x11b   : > { %v419_v41 = vadd.f32 %v418_v39, %v417_v38 }
 0x11d   : > { %v421_v42 = vsel %vm420_vm0, %v382_v40, %v419_v41 }
 0x11e   : > { %422 = vst [vmem:[%s184_s5] sm:$0x3] %v421_v42 }
 0x11f PF: > { %s14_s12 = sadd.s32 1, %s672_s12  }
 0x120   : > { %p11_p5 = scmp.ge.s32.totalorder %s14_s12, 6  }
 0x122   :  { %13 = sbr.rel (!%p11_p5) target bundleno = 1 (0x1), region = 70 }

// kernel: _lambda_.6
= control target key start
LH: loop header
LB: loop body
LE: loop exit
PB: predicated region body
PF: predicated region fallthrough
CT: control target
= control target key end

     0   :  { %s822_s18 = smov 0   ;;  %s980_s0 = inlined_call_operand.vmem [shape: f32[512,128], index: 0, kind: input, shape index: {}]   ;;  %s981_s1 = inlined_call_operand.vmem [shape: f32[1,128], index: 1, kind: input, shape index: {}]   ;;  %s982_s2 = inlined_call_operand.vmem [shape: f32[1,128], index: 2, kind: input, shape index: {}]   ;;  %s983_s3 = inlined_call_operand.vmem [shape: f32[128,128], index: 3, kind: input, shape index: {}]   ;;  %s984_s4 = inlined_call_operand.vmem [shape: f32[512,128], index: 4, kind: output, shape index: {0}]   ;;  %s985_s5 = inlined_call_operand.vmem [shape: f32[4,2,128], index: 5, kind: output, shape index: {1}]  }
   0x1 LB: > { %s828_s19 = sadd.s32 4294967295, %s790_s18   ;;  %p646_p0 = scmp.ge.s32.totalorder %s790_s18, 1  ;;  %s790_s18 = sphi %s822_s18, %s16_s18  }
   0x2   : > { %p191_p1 = scmp.lt.s32.totalorder %s790_s18, 5 }
   0x4   : > { %p192_p2 = pnand %p646_p0, %p191_p1 }
   0x5   : > { %s647_s24 = sshll.u32 (!%p192_p2), %s828_s19, 4  ;;  %p235_p4 = scmp.lt.s32.totalorder (!%p192_p2), %s828_s19, 3 }
   0x6   : > { %195 = sbr.rel (%p192_p2) target bundleno = 287 (0x11f), region = 36  ;;  %p224_p3 = scmp.lt.s32.totalorder (!%p192_p2), %s647_s24, 63 }
   0xb   : > { %v332_v0 = vld [vmem:[%s983_s3 + $0x78] sm:$0xff]  ;;  %v331_v1 = vld [vmem:[%s983_s3 + $0x70] sm:$0xff]  ;;  %v330_v2 = vld [vmem:[%s983_s3 + $0x68] sm:$0xff]  ;;  %s987_s24 = smov (!%p224_p3, %s647_s24), 63  ;;  %s989_s19 = smov (!%p235_p4, %s828_s19), 3  ;;  %vm536_vm0 = vcmask 1040384  }
   0xc   : > { %688 = vmatprep.subr.mxu0 %v332_v0  ;;  %744 = vmatprep.subr.mxu1 %v332_v0  ;;  %v329_v3 = vld [vmem:[%s983_s3 + $0x60] sm:$0xff]  ;;  %s648_s29 = sshll.u32 %s987_s24, 3  ;;  %v328_v5 = vld [vmem:[%s983_s3 + $0x58] sm:$0xff]  ;;  %v327_v7 = vld [vmem:[%s983_s3 + $0x50] sm:$0xff]  ;;  %s651_s24 = sshll.u32 %s989_s19, 1 }
   0xd   : > { %689 = vmatpush3.msra.mxu0 %v332_v0  ;;  %760 = vmatpush3.msra.mxu1 %v332_v0  ;;  %v851_v4 = vld [vmem:[%s981_s1] ss:$0 sm:$0xff]  ;;  %s861_s11 = scalar_lea.vmem %s980_s0, %s648_s29  ;;  %v326_v10 = vld [vmem:[%s983_s3 + $0x48] sm:$0xff]  ;;  %v324_v13 = vld [vmem:[%s983_s3 + $0x38] sm:$0xff]  ;;  %s954_s17 = scalar_lea.vmem %s984_s4, %s648_s29 }
   0xe   : > { %690 = vmatprep.subr.mxu0 %v331_v1  ;;  %745 = vmatprep.subr.mxu1 %v331_v1  ;;  %v239_v6 = vld [vmem:[%s861_s11] sm:$0xff]  ;;  %v323_v15 = vld [vmem:[%s983_s3 + $0x30] sm:$0xff]  ;;  %v322_v16 = vld [vmem:[%s983_s3 + $0x28] sm:$0xff]  ;;  %s238_s21 = scalar_lea.vmem %s985_s5, %s651_s24 }
   0xf   : > { %691 = vmatpush3.msra.mxu0 %v331_v1  ;;  %761 = vmatpush3.msra.mxu1 %v331_v1  ;;  %v262_v8 = vmul.f32 %v851_v4, %v239_v6  ;;  %v871_v9 = vld [vmem:[%s982_s2] ss:$0 sm:$0xff]  ;;  %v240_v17 = vld [vmem:[%s861_s11 + $0x8] sm:$0xff]  ;;  %v241_v18 = vld [vmem:[%s861_s11 + $0x10] sm:$0xff] }
  0x10   : > { %692 = vmatprep.subr.mxu0 %v330_v2  ;;  %746 = vmatprep.subr.mxu1 %v330_v2  ;;  %v325_v12 = vld [vmem:[%s983_s3 + $0x40] sm:$0xff]  ;;  %v248_v21 = vld [vmem:[%s861_s11 + $0x48] sm:$0xff]  ;;  %v263_v22 = vmul.f32 %v851_v4, %v240_v17  ;;  %v249_v23 = vld [vmem:[%s861_s11 + $0x50] sm:$0xff]  ;;  %v264_v25 = vmul.f32 %v851_v4, %v241_v18 }
  0x11   : > { %693 = vmatpush3.msra.mxu0 %v330_v2  ;;  %762 = vmatpush3.msra.mxu1 %v330_v2  ;;  %v285_v11 = vadd.f32 %v871_v9, %v262_v8  ;;  %v247_v19 = vld [vmem:[%s861_s11 + $0x40] sm:$0xff]  ;;  %v320_v24 = vld [vmem:[%s983_s3 + $0x18] sm:$0xff]  ;;  %v271_v29 = vmul.f32 %v851_v4, %v248_v21  ;;  %v319_v30 = vld [vmem:[%s983_s3 + $0x10] sm:$0xff]  ;;  %v272_v31 = vmul.f32 %v851_v4, %v249_v23 }
  0x12   : > { %694 = vmatprep.subr.mxu0 %v329_v3  ;;  %747 = vmatprep.subr.mxu1 %v329_v3  ;;  %v321_v20 = vld [vmem:[%s983_s3 + $0x20] sm:$0xff]  ;;  %v242_v26 = vld [vmem:[%s861_s11 + $0x18] sm:$0xff]  ;;  %v270_v27 = vmul.f32 %v851_v4, %v247_v19  ;;  %v286_v33 = vadd.f32 %v871_v9, %v263_v22  ;;  %v318_v36 = vld [vmem:[%s983_s3 + $0x8] sm:$0xff]  ;;  %v287_v37 = vadd.f32 %v871_v9, %v264_v25 }
  0x13   : > { %695 = vmatpush3.msra.mxu0 %v329_v3  ;;  %763 = vmatpush3.msra.mxu1 %v329_v3  ;;  %v301_v14 = vmax.f32 %v285_v11, 0.0  ;;  %v243_v28 = vld [vmem:[%s861_s11 + $0x20] sm:$0xff]  ;;  %v250_v32 = vld [vmem:[%s861_s11 + $0x58] sm:$0xff]  ;;  %v265_v34 = vmul.f32 %v851_v4, %v242_v26  ;;  %v244_v39 = vld [vmem:[%s861_s11 + $0x28] sm:$0xff]  ;;  %v294_v42 = vadd.f32 %v871_v9, %v271_v29  ;;  %v295_v45 = vadd.f32 %v871_v9, %v272_v31 }
  0x14   : > { %696 = vmatprep.subr.mxu0 %v328_v5  ;;  %748 = vmatprep.subr.mxu1 %v328_v5  ;;  %v251_v35 = vld [vmem:[%s861_s11 + $0x60] sm:$0xff]  ;;  %v266_v38 = vmul.f32 %v851_v4, %v243_v28  ;;  %v293_v40 = vadd.f32 %v871_v9, %v270_v27  ;;  %v245_v41 = vld [vmem:[%s861_s11 + $0x30] sm:$0xff]  ;;  %v273_v43 = vmul.f32 %v851_v4, %v250_v32  ;;  %v252_v47 = vld [vmem:[%s861_s11 + $0x68] sm:$0xff]  ;;  %v302_v48 = vmax.f32 %v286_v33, 0.0 }
  0x15   : > { %697 = vmatpush3.msra.mxu0 %v328_v5  ;;  %764 = vmatpush3.msra.mxu1 %v328_v5  ;;  %v317_v44 = vld [vmem:[%s983_s3] sm:$0xff]  ;;  %v274_v46 = vmul.f32 %v851_v4, %v251_v35  ;;  %v288_v49 = vadd.f32 %v871_v9, %v265_v34  ;;  %v267_v50 = vmul.f32 %v851_v4, %v244_v39  ;;  %v253_v51 = vld [vmem:[%s861_s11 + $0x70] sm:$0xff]  ;;  %v303_v52 = vmax.f32 %v287_v37, 0.0  ;;  %v246_v55 = vld [vmem:[%s861_s11 + $0x38] sm:$0xff] }
  0x16   : > { %698 = vmatprep.subr.mxu0 %v327_v7  ;;  %749 = vmatprep.subr.mxu1 %v327_v7  ;;  %v289_v53 = vadd.f32 %v871_v9, %v266_v38  ;;  %v268_v54 = vmul.f32 %v851_v4, %v245_v41  ;;  %v309_v56 = vmax.f32 %v293_v40, 0.0  ;;  %v310_v57 = vmax.f32 %v294_v42, 0.0  ;;  %v254_v63 = vld [vmem:[%s861_s11 + $0x78] sm:$0xff] }
  0x17   : > { %699 = vmatpush3.msra.mxu0 %v327_v7  ;;  %765 = vmatpush3.msra.mxu1 %v327_v7  ;;  %v296_v58 = vadd.f32 %v871_v9, %v273_v43  ;;  %v275_v59 = vmul.f32 %v851_v4, %v252_v47  ;;  %v311_v60 = vmax.f32 %v295_v45, 0.0  ;;  %v297_v61 = vadd.f32 %v871_v9, %v274_v46 }
  0x18   : > { %700 = vmatprep.subr.mxu0 %v326_v10  ;;  %750 = vmatprep.subr.mxu1 %v326_v10  ;;  %v276_v62 = vmul.f32 %v851_v4, %v253_v51  ;;  %v304_v0 = vmax.f32 %v288_v49, 0.0  ;;  %v290_v1 = vadd.f32 %v871_v9, %v267_v50  ;;  %v269_v2 = vmul.f32 %v851_v4, %v246_v55 }
  0x19   : > { %701 = vmatpush3.msra.mxu0 %v326_v10  ;;  %766 = vmatpush3.msra.mxu1 %v326_v10  ;;  %v305_v3 = vmax.f32 %v289_v53, 0.0  ;;  %v291_v5 = vadd.f32 %v871_v9, %v268_v54  ;;  %v312_v6 = vmax.f32 %v296_v58, 0.0  ;;  %v298_v7 = vadd.f32 %v871_v9, %v275_v59 }
  0x1a   : > { %702 = vmatprep.subr.mxu0 %v325_v12  ;;  %751 = vmatprep.subr.mxu1 %v325_v12  ;;  %v277_v8 = vmul.f32 %v851_v4, %v254_v63  ;;  %v313_v10 = vmax.f32 %v297_v61, 0.0  ;;  %v299_v11 = vadd.f32 %v871_v9, %v276_v62 }
  0x1b   : > { %703 = vmatpush3.msra.mxu0 %v325_v12  ;;  %767 = vmatpush3.msra.mxu1 %v325_v12  ;;  %v306_v12 = vmax.f32 %v290_v1, 0.0 }
  0x1c   : > { %704 = vmatprep.subr.mxu0 %v324_v13  ;;  %752 = vmatprep.subr.mxu1 %v324_v13  ;;  %v315_v17 = vmax.f32 %v299_v11, 0.0 }
  0x1d   : > { %705 = vmatpush3.msra.mxu0 %v324_v13  ;;  %768 = vmatpush3.msra.mxu1 %v324_v13  ;;  %v292_v13 = vadd.f32 %v871_v9, %v269_v2 }
  0x1e   : > { %706 = vmatprep.subr.mxu0 %v323_v15  ;;  %720 = vmatprep.mubr.f32.mxu0 %v301_v14  ;;  %v307_v14 = vmax.f32 %v291_v5, 0.0 }
  0x1f   : > { %707 = vmatpush3.msra.mxu0 %v323_v15  ;;  %753 = vmatprep.subr.mxu1 %v323_v15  ;;  %v308_v18 = vmax.f32 %v292_v13, 0.0 }
  0x20   : > { %708 = vmatprep.subr.mxu0 %v322_v16  ;;  %769 = vmatpush3.msra.mxu1 %v323_v15  ;;  %v314_v15 = vmax.f32 %v298_v7, 0.0 }
  0x21   : > { %709 = vmatpush3.msra.mxu0 %v322_v16  ;;  %754 = vmatprep.subr.mxu1 %v322_v16 }
  0x22   : > { %710 = vmatprep.subr.mxu0 %v321_v20  ;;  %770 = vmatpush3.msra.mxu1 %v322_v16  ;;  %v300_v16 = vadd.f32 %v871_v9, %v277_v8 }
  0x23   : > { %711 = vmatpush3.msra.mxu0 %v321_v20  ;;  %755 = vmatprep.subr.mxu1 %v321_v20 }
  0x24   : > { %712 = vmatprep.subr.mxu0 %v320_v24  ;;  %771 = vmatpush3.msra.mxu1 %v321_v20  ;;  %v316_v4 = vmax.f32 %v300_v16, 0.0 }
  0x25   : > { %713 = vmatpush3.msra.mxu0 %v320_v24  ;;  %756 = vmatprep.subr.mxu1 %v320_v24 }
  0x26   : > { %714 = vmatprep.subr.mxu0 %v319_v30  ;;  %772 = vmatpush3.msra.mxu1 %v320_v24 }
  0x27   : > { %715 = vmatpush3.msra.mxu0 %v319_v30  ;;  %757 = vmatprep.subr.mxu1 %v319_v30 }
  0x28   : > { %716 = vmatprep.subr.mxu0 %v318_v36  ;;  %773 = vmatpush3.msra.mxu1 %v319_v30 }
  0x29   : > { %717 = vmatpush3.msra.mxu0 %v318_v36  ;;  %758 = vmatprep.subr.mxu1 %v318_v36 }
  0x2a   : > { %718 = vmatprep.subr.mxu0 %v317_v44  ;;  %774 = vmatpush3.msra.mxu1 %v318_v36 }
  0x2b   : > { %719 = vmatpush3.msra.mxu0 %v317_v44  ;;  %759 = vmatprep.subr.mxu1 %v317_v44 }
  0x2c   : > { %721 = vmatmul.mubr.f32.vlgmr.msra.gmra.mxu0 %v302_v48  ;;  %775 = vmatpush3.msra.mxu1 %v317_v44 }
  0x2d   : > { %723 = vmatprep.mubr.f32.mxu0 %v303_v52  ;;  %732 = vmatprep.mubr.f32.mxu1 %v309_v56 }
  0x2e   : > { %733 = vmatmul.mubr.f32.vlgmr.msra.gmra.mxu1 %v310_v57 }
  0x2f   : > { %735 = vmatprep.mubr.f32.mxu1 %v311_v60 }
  0x30   : > { %724 = vmatmul.mubr.f32.gmra.mxu0 %v304_v0 }
  0x31   : > { %726 = vmatprep.mubr.f32.mxu0 %v305_v3 }
  0x32   : > { %736 = vmatmul.mubr.f32.gmra.mxu1 %v312_v6 }
  0x33   : > { %738 = vmatprep.mubr.f32.mxu1 %v313_v10 }
  0x34   : > { %727 = vmatmul.mubr.f32.gmra.mxu0 %v306_v12 }
  0x35   : > { %729 = vmatprep.mubr.f32.mxu0 %v307_v14 }
  0x36   : > { %739 = vmatmul.mubr.f32.gmra.mxu1 %v314_v15 }
  0x37   : > { %741 = vmatprep.mubr.f32.mxu1 %v315_v17 }
  0x38   : > { %730 = vmatmul.mubr.f32.gmra.mxu0 %v308_v18 }
  0x3a   : > { %742 = vmatmul.mubr.f32.gmra.mxu1 %v316_v4 }
  0xec   : > { %v722_v9 = vpop.f32.mrf.mxu0 }
  0xed   : > { %540 = vst [vmem:[%s954_s17 + $0x8] sm:$0xff] %v722_v9  ;;  %v500_v24 = vmul.f32 %v722_v9, %v722_v9 }
  0xee   : > { %v399_v19 = vpop.f32.mrf.mxu0  ;;  %v734_v20 = vpop.f32.mrf.mxu1 }
  0xef   : > { %v499_v21 = vmul.f32 %v399_v19, %v399_v19  ;;  %539 = vst [vmem:[%s954_s17] sm:$0xff] %v399_v19  ;;  %548 = vst [vmem:[%s954_s17 + $0x48] sm:$0xff] %v734_v20  ;;  %v478_v25 = vadd.f32 %v722_v9, %v399_v19  ;;  %v508_v58 = vmul.f32 %v734_v20, %v734_v20 }
  0xf0   : > { %v725_v22 = vpop.f32.mrf.mxu0  ;;  %v439_v23 = vpop.f32.mrf.mxu1 }
  0xf1   : > { %542 = vst [vmem:[%s954_s17 + $0x18] sm:$0xff] %v725_v22  ;;  %547 = vst [vmem:[%s954_s17 + $0x40] sm:$0xff] %v439_v23  ;;  %v515_v28 = vadd.f32 %v500_v24, %v499_v21  ;;  %v502_v33 = vmul.f32 %v725_v22, %v725_v22  ;;  %v507_v57 = vmul.f32 %v439_v23, %v439_v23 }
  0xf2   : > { %v409_v26 = vpop.f32.mrf.mxu0  ;;  %v737_v27 = vpop.f32.mrf.mxu1 }
  0xf3   : > { %v479_v29 = vadd.f32 %v478_v25, %v409_v26  ;;  %v501_v30 = vmul.f32 %v409_v26, %v409_v26  ;;  %541 = vst [vmem:[%s954_s17 + $0x10] sm:$0xff] %v409_v26  ;;  %550 = vst [vmem:[%s954_s17 + $0x58] sm:$0xff] %v737_v27  ;;  %v510_v0 = vmul.f32 %v737_v27, %v737_v27 }
  0xf4   : > { %v728_v31 = vpop.f32.mrf.mxu0  ;;  %v449_v32 = vpop.f32.mrf.mxu1 }
  0xf5   : > { %v516_v34 = vadd.f32 %v515_v28, %v501_v30  ;;  %544 = vst [vmem:[%s954_s17 + $0x28] sm:$0xff] %v728_v31  ;;  %v480_v35 = vadd.f32 %v725_v22, %v479_v29  ;;  %549 = vst [vmem:[%s954_s17 + $0x50] sm:$0xff] %v449_v32  ;;  %v504_v43 = vmul.f32 %v728_v31, %v728_v31 }
  0xf6   : > { %v419_v36 = vpop.f32.mrf.mxu0  ;;  %v740_v37 = vpop.f32.mrf.mxu1  ;;  %v509_v62 = vmul.f32 %v449_v32, %v449_v32 }
  0xf7   : > { %v481_v38 = vadd.f32 %v480_v35, %v419_v36  ;;  %v503_v39 = vmul.f32 %v419_v36, %v419_v36  ;;  %v517_v40 = vadd.f32 %v516_v34, %v502_v33  ;;  %543 = vst [vmem:[%s954_s17 + $0x20] sm:$0xff] %v419_v36  ;;  %552 = vst [vmem:[%s954_s17 + $0x68] sm:$0xff] %v740_v37 }
  0xf8   : > { %v731_v41 = vpop.f32.mrf.mxu0  ;;  %v459_v42 = vpop.f32.mrf.mxu1  ;;  %v512_v7 = vmul.f32 %v740_v37, %v740_v37 }
  0xf9   : > { %v518_v44 = vadd.f32 %v517_v40, %v503_v39  ;;  %546 = vst [vmem:[%s954_s17 + $0x38] sm:$0xff] %v731_v41  ;;  %v482_v45 = vadd.f32 %v728_v31, %v481_v38  ;;  %551 = vst [vmem:[%s954_s17 + $0x60] sm:$0xff] %v459_v42  ;;  %v506_v52 = vmul.f32 %v731_v41, %v731_v41 }
  0xfa   : > { %v429_v46 = vpop.f32.mrf.mxu0  ;;  %v743_v47 = vpop.f32.mrf.mxu1  ;;  %v511_v5 = vmul.f32 %v459_v42, %v459_v42 }
  0xfb   : > { %v483_v48 = vadd.f32 %v482_v45, %v429_v46  ;;  %v505_v49 = vmul.f32 %v429_v46, %v429_v46  ;;  %v519_v50 = vadd.f32 %v518_v44, %v504_v43  ;;  %545 = vst [vmem:[%s954_s17 + $0x30] sm:$0xff] %v429_v46  ;;  %554 = vst [vmem:[%s954_s17 + $0x78] sm:$0xff] %v743_v47 }
  0xfc   : > { %v469_v51 = vpop.f32.mrf.mxu1  ;;  %v514_v14 = vmul.f32 %v743_v47, %v743_v47 }
  0xfd   : > { %v484_v53 = vadd.f32 %v731_v41, %v483_v48  ;;  %v520_v54 = vadd.f32 %v519_v50, %v505_v49  ;;  %553 = vst [vmem:[%s954_s17 + $0x70] sm:$0xff] %v469_v51  ;;  %v513_v12 = vmul.f32 %v469_v51, %v469_v51 }
  0xff   : > { %v521_v55 = vadd.f32 %v520_v54, %v506_v52  ;;  %v485_v56 = vadd.f32 %v484_v53, %v439_v23 }
 0x101   : > { %v522_v59 = vadd.f32 %v521_v55, %v507_v57  ;;  %v486_v60 = vadd.f32 %v734_v20, %v485_v56 }
 0x103   : > { %v487_v61 = vadd.f32 %v486_v60, %v449_v32  ;;  %v523_v63 = vadd.f32 %v522_v59, %v508_v58 }
 0x105   : > { %v524_v1 = vadd.f32 %v523_v63, %v509_v62  ;;  %v488_v2 = vadd.f32 %v737_v27, %v487_v61 }
 0x107   : > { %v489_v3 = vadd.f32 %v488_v2, %v459_v42  ;;  %v525_v6 = vadd.f32 %v524_v1, %v510_v0 }
 0x109   : > { %v526_v8 = vadd.f32 %v525_v6, %v511_v5  ;;  %v490_v10 = vadd.f32 %v740_v37, %v489_v3 }
 0x10b   : > { %v491_v11 = vadd.f32 %v490_v10, %v469_v51  ;;  %v527_v13 = vadd.f32 %v526_v8, %v512_v7 }
 0x10d   : > { %v492_v15 = vadd.f32 %v743_v47, %v491_v11  ;;  %v528_v16 = vadd.f32 %v527_v13, %v513_v12 }
 0x10f   : > { %v493_v17 = vrot.slane %v492_v15, 4  ;;  %v529_v18 = vadd.f32 %v528_v16, %v514_v14 }
 0x111   : > { %v494_v4 = vadd.f32 %v493_v17, %v492_v15  ;;  %v530_v9 = vrot.slane %v529_v18, 4 }
 0x113   : > { %v495_v19 = vrot.slane %v494_v4, 2  ;;  %v531_v20 = vadd.f32 %v530_v9, %v529_v18 }
 0x115   : > { %v496_v21 = vadd.f32 %v495_v19, %v494_v4  ;;  %v532_v22 = vrot.slane %v531_v20, 2 }
 0x117   : > { %v497_v23 = vrot.slane %v496_v21, 1  ;;  %v533_v24 = vadd.f32 %v532_v22, %v531_v20 }
 0x119   : > { %v534_v25 = vrot.slane %v533_v24, 1  ;;  %v498_v26 = vadd.f32 %v497_v23, %v496_v21 }
 0x11b   : > { %v535_v27 = vadd.f32 %v534_v25, %v533_v24 }
 0x11d   : > { %v537_v28 = vsel %vm536_vm0, %v498_v26, %v535_v27 }
 0x11e   : > { %538 = vst [vmem:[%s238_s21] sm:$0x3] %v537_v28 }
 0x11f PF: > { %s16_s18 = sadd.s32 1, %s790_s18  }
 0x120   : > { %p13_p5 = scmp.ge.s32.totalorder %s16_s18, 6  }
 0x122   :  { %15 = sbr.rel (!%p13_p5) target bundleno = 1 (0x1), region = 78 }

// kernel: _lambda_.7
= control target key start
LH: loop header
LB: loop body
LE: loop exit
PB: predicated region body
PF: predicated region fallthrough
CT: control target
= control target key end

     0   :  { %s473_s15 = smov 0   ;;  %s594_s0 = inlined_call_operand.vmem [shape: f32[512,128], index: 0, kind: input, shape index: {}]   ;;  %s595_s1 = inlined_call_operand.vmem [shape: f32[1,128], index: 1, kind: input, shape index: {}]   ;;  %s596_s2 = inlined_call_operand.vmem [shape: f32[1,128], index: 2, kind: input, shape index: {}]   ;;  %s597_s3 = inlined_call_operand.vmem [shape: f32[512,128], index: 3, kind: input, shape index: {}]   ;;  %s598_s4 = inlined_call_operand.vmem [shape: f32[512,128], index: 4, kind: output, shape index: {}]  }
   0x1 LB: > { %s417_s16 = sadd.s32 4294967295, %s446_s15   ;;  %p421_p0 = scmp.ge.s32.totalorder %s446_s15, 1  ;;  %s446_s15 = sphi %s473_s15, %s14_s15  }
   0x2   : > { %p174_p1 = scmp.lt.s32.totalorder %s446_s15, 5 }
   0x4   : > { %p175_p2 = pnand %p421_p0, %p174_p1 }
   0x5   : > { %s422_s17 = sshll.u32 (!%p175_p2), %s417_s16, 4 }
   0x6   : > { %178 = sbr.rel (%p175_p2) target bundleno = 37 (0x25), region = 36  ;;  %p206_p3 = scmp.lt.s32.totalorder (!%p175_p2), %s422_s17, 63 }
   0xb   : > { %s600_s17 = smov (!%p206_p3, %s422_s17), 63  ;;  %v486_v0 = vld [vmem:[%s595_s1] ss:$0 sm:$0xff] }
   0xc   : > { %s481_s18 = sshll.u32 %s600_s17, 3  ;;  %v504_v2 = vld [vmem:[%s596_s2] ss:$0 sm:$0xff] }
   0xd   : > { %s492_s23 = scalar_lea.vmem %s594_s0, %s481_s18  ;;  %s498_s26 = scalar_lea.vmem %s597_s3, %s481_s18 }
   0xe   : > { %v239_v1 = vld [vmem:[%s492_s23] sm:$0xff]  ;;  %v240_v4 = vld [vmem:[%s492_s23 + $0x8] sm:$0xff]  ;;  %v241_v5 = vld [vmem:[%s492_s23 + $0x10] sm:$0xff]  ;;  %s534_s5 = scalar_lea.vmem %s598_s4, %s481_s18 }
   0xf   : > { %v262_v3 = vmul.f32 %v486_v0, %v239_v1  ;;  %v223_v6 = vld [vmem:[%s498_s26] sm:$0xff]  ;;  %v224_v7 = vld [vmem:[%s498_s26 + $0x8] sm:$0xff]  ;;  %v263_v8 = vmul.f32 %v486_v0, %v240_v4  ;;  %v264_v9 = vmul.f32 %v486_v0, %v241_v5  ;;  %v242_v10 = vld [vmem:[%s492_s23 + $0x18] sm:$0xff] }
  0x10   : > { %v225_v12 = vld [vmem:[%s498_s26 + $0x10] sm:$0xff]  ;;  %v265_v13 = vmul.f32 %v486_v0, %v242_v10  ;;  %v243_v14 = vld [vmem:[%s492_s23 + $0x20] sm:$0xff]  ;;  %v244_v15 = vld [vmem:[%s492_s23 + $0x28] sm:$0xff] }
  0x11   : > { %v285_v11 = vadd.f32 %v504_v2, %v262_v3  ;;  %v286_v16 = vadd.f32 %v504_v2, %v263_v8  ;;  %v287_v17 = vadd.f32 %v504_v2, %v264_v9  ;;  %v226_v18 = vld [vmem:[%s498_s26 + $0x18] sm:$0xff]  ;;  %v266_v19 = vmul.f32 %v486_v0, %v243_v14  ;;  %v245_v21 = vld [vmem:[%s492_s23 + $0x30] sm:$0xff]  ;;  %v227_v24 = vld [vmem:[%s498_s26 + $0x20] sm:$0xff] }
  0x12   : > { %v267_v20 = vmul.f32 %v486_v0, %v244_v15  ;;  %v288_v23 = vadd.f32 %v504_v2, %v265_v13  ;;  %v228_v25 = vld [vmem:[%s498_s26 + $0x28] sm:$0xff]  ;;  %v268_v26 = vmul.f32 %v486_v0, %v245_v21  ;;  %v246_v27 = vld [vmem:[%s492_s23 + $0x38] sm:$0xff]  ;;  %v229_v32 = vld [vmem:[%s498_s26 + $0x30] sm:$0xff] }
  0x13   : > { %v301_v22 = vadd.f32 %v285_v11, %v223_v6  ;;  %v302_v28 = vadd.f32 %v286_v16, %v224_v7  ;;  %v303_v29 = vadd.f32 %v287_v17, %v225_v12  ;;  %v289_v30 = vadd.f32 %v504_v2, %v266_v19  ;;  %v247_v33 = vld [vmem:[%s492_s23 + $0x40] sm:$0xff]  ;;  %v248_v38 = vld [vmem:[%s492_s23 + $0x48] sm:$0xff]  ;;  %v249_v39 = vld [vmem:[%s492_s23 + $0x50] sm:$0xff] }
  0x14   : > { %v290_v31 = vadd.f32 %v504_v2, %v267_v20  ;;  %v304_v35 = vadd.f32 %v288_v23, %v226_v18  ;;  %v291_v36 = vadd.f32 %v504_v2, %v268_v26  ;;  %v269_v37 = vmul.f32 %v486_v0, %v246_v27  ;;  %v230_v44 = vld [vmem:[%s498_s26 + $0x38] sm:$0xff]  ;;  %v251_v50 = vld [vmem:[%s492_s23 + $0x60] sm:$0xff]  ;;  %v252_v51 = vld [vmem:[%s492_s23 + $0x68] sm:$0xff] }
  0x15   : > { %v317_v34 = vmax.f32 %v301_v22, 0.0  ;;  %v318_v40 = vmax.f32 %v302_v28, 0.0  ;;  %v319_v41 = vmax.f32 %v303_v29, 0.0  ;;  %v305_v42 = vadd.f32 %v289_v30, %v227_v24  ;;  %v250_v45 = vld [vmem:[%s492_s23 + $0x58] sm:$0xff]  ;;  %v231_v54 = vld [vmem:[%s498_s26 + $0x40] sm:$0xff]  ;;  %v253_v57 = vld [vmem:[%s492_s23 + $0x70] sm:$0xff] }
  0x16   : > { %v306_v43 = vadd.f32 %v290_v31, %v228_v25  ;;  %v320_v46 = vmax.f32 %v304_v35, 0.0  ;;  %v307_v47 = vadd.f32 %v291_v36, %v229_v32  ;;  %v292_v48 = vadd.f32 %v504_v2, %v269_v37  ;;  %v232_v61 = vld [vmem:[%s498_s26 + $0x48] sm:$0xff]  ;;  %v233_v62 = vld [vmem:[%s498_s26 + $0x50] sm:$0xff]  ;;  %v234_v4 = vld [vmem:[%s498_s26 + $0x58] sm:$0xff] }
  0x17   : > { %333 = vst [vmem:[%s534_s5] sm:$0xff] %v317_v34  ;;  %v270_v49 = vmul.f32 %v486_v0, %v247_v33  ;;  %334 = vst [vmem:[%s534_s5 + $0x8] sm:$0xff] %v318_v40  ;;  %v321_v52 = vmax.f32 %v305_v42, 0.0  ;;  %v271_v55 = vmul.f32 %v486_v0, %v248_v38  ;;  %v272_v56 = vmul.f32 %v486_v0, %v249_v39  ;;  %v254_v7 = vld [vmem:[%s492_s23 + $0x78] sm:$0xff]  ;;  %v235_v11 = vld [vmem:[%s498_s26 + $0x60] sm:$0xff] }
  0x18   : > { %335 = vst [vmem:[%s534_s5 + $0x10] sm:$0xff] %v319_v41  ;;  %v322_v53 = vmax.f32 %v306_v43, 0.0  ;;  %336 = vst [vmem:[%s534_s5 + $0x18] sm:$0xff] %v320_v46  ;;  %v323_v58 = vmax.f32 %v307_v47, 0.0  ;;  %v308_v59 = vadd.f32 %v292_v48, %v230_v44  ;;  %v273_v63 = vmul.f32 %v486_v0, %v250_v45  ;;  %v236_v12 = vld [vmem:[%s498_s26 + $0x68] sm:$0xff]  ;;  %v237_v18 = vld [vmem:[%s498_s26 + $0x70] sm:$0xff] }
  0x19   : > { %v293_v60 = vadd.f32 %v504_v2, %v270_v49  ;;  %337 = vst [vmem:[%s534_s5 + $0x20] sm:$0xff] %v321_v52  ;;  %v294_v1 = vadd.f32 %v504_v2, %v271_v55  ;;  %v295_v3 = vadd.f32 %v504_v2, %v272_v56  ;;  %v274_v5 = vmul.f32 %v486_v0, %v251_v50  ;;  %v238_v27 = vld [vmem:[%s498_s26 + $0x78] sm:$0xff] }
  0x1a   : > { %338 = vst [vmem:[%s534_s5 + $0x28] sm:$0xff] %v322_v53  ;;  %v275_v6 = vmul.f32 %v486_v0, %v252_v51  ;;  %339 = vst [vmem:[%s534_s5 + $0x30] sm:$0xff] %v323_v58  ;;  %v324_v8 = vmax.f32 %v308_v59, 0.0  ;;  %v296_v10 = vadd.f32 %v504_v2, %v273_v63  ;;  %v276_v13 = vmul.f32 %v486_v0, %v253_v57 }
  0x1b   : > { %v309_v9 = vadd.f32 %v293_v60, %v231_v54  ;;  %v310_v14 = vadd.f32 %v294_v1, %v232_v61  ;;  %v311_v15 = vadd.f32 %v295_v3, %v233_v62  ;;  %v297_v16 = vadd.f32 %v504_v2, %v274_v5 }
  0x1c   : > { %v298_v17 = vadd.f32 %v504_v2, %v275_v6  ;;  %340 = vst [vmem:[%s534_s5 + $0x38] sm:$0xff] %v324_v8  ;;  %v312_v20 = vadd.f32 %v296_v10, %v234_v4  ;;  %v299_v21 = vadd.f32 %v504_v2, %v276_v13  ;;  %v277_v22 = vmul.f32 %v486_v0, %v254_v7 }
  0x1d   : > { %v325_v19 = vmax.f32 %v309_v9, 0.0  ;;  %v326_v23 = vmax.f32 %v310_v14, 0.0  ;;  %v327_v24 = vmax.f32 %v311_v15, 0.0  ;;  %v313_v25 = vadd.f32 %v297_v16, %v235_v11 }
  0x1e   : > { %v314_v26 = vadd.f32 %v298_v17, %v236_v12  ;;  %v328_v28 = vmax.f32 %v312_v20, 0.0  ;;  %v315_v29 = vadd.f32 %v299_v21, %v237_v18  ;;  %v300_v30 = vadd.f32 %v504_v2, %v277_v22 }
  0x1f   : > { %341 = vst [vmem:[%s534_s5 + $0x40] sm:$0xff] %v325_v19  ;;  %342 = vst [vmem:[%s534_s5 + $0x48] sm:$0xff] %v326_v23  ;;  %v329_v31 = vmax.f32 %v313_v25, 0.0 }
  0x20   : > { %343 = vst [vmem:[%s534_s5 + $0x50] sm:$0xff] %v327_v24  ;;  %v330_v32 = vmax.f32 %v314_v26, 0.0  ;;  %344 = vst [vmem:[%s534_s5 + $0x58] sm:$0xff] %v328_v28  ;;  %v331_v0 = vmax.f32 %v315_v29, 0.0  ;;  %v316_v33 = vadd.f32 %v300_v30, %v238_v27 }
  0x21   : > { %345 = vst [vmem:[%s534_s5 + $0x60] sm:$0xff] %v329_v31 }
  0x22   : > { %346 = vst [vmem:[%s534_s5 + $0x68] sm:$0xff] %v330_v32  ;;  %347 = vst [vmem:[%s534_s5 + $0x70] sm:$0xff] %v331_v0  ;;  %v332_v34 = vmax.f32 %v316_v33, 0.0 }
  0x24   : > { %348 = vst [vmem:[%s534_s5 + $0x78] sm:$0xff] %v332_v34 }
  0x25 PF: > { %s14_s15 = sadd.s32 1, %s446_s15  }
  0x26   : > { %p11_p4 = scmp.ge.s32.totalorder %s14_s15, 6  }
  0x28   :  { %13 = sbr.rel (!%p11_p4) target bundleno = 1 (0x1), region = 69 }

// kernel: _lambda_.5
= control target key start
LH: loop header
LB: loop body
LE: loop exit
PB: predicated region body
PF: predicated region fallthrough
CT: control target
= control target key end

     0   :  { %s3526_s18 = smov 0   ;;  %s3528_s19 = smov 0   ;;  %s4428_s0 = inlined_call_operand.vmem [shape: f32[2,324,128], index: 0, kind: input, shape index: {}]   ;;  %s4429_s1 = inlined_call_operand.vmem [shape: f32[1,128], index: 1, kind: input, shape index: {}]   ;;  %s4430_s2 = inlined_call_operand.vmem [shape: f32[1,128], index: 2, kind: input, shape index: {}]   ;;  %s4431_s3 = inlined_call_operand.vmem [shape: f32[1152,128], index: 3, kind: input, shape index: {}]   ;;  %s4432_s4 = inlined_call_operand.vmem [shape: f32[2,2,128,128], index: 4, kind: output, shape index: {0}]   ;;  %s4433_s5 = inlined_call_operand.vmem [shape: f32[2,2,2,128], index: 5, kind: output, shape index: {1}]  }
   0x1   :  { %s3530_s20 = smov 0   ;;  %s3532_s21 = smov 0  }
   0x2   :  { %s3534_s22 = smov 0  }
   0x3 LB: > { %s25_s23 = sadd.s32 1, %s3483_s20  ;;  %s28_s24 = sadd.s32 1, %s3487_s21  ;;  %s3491_s22 = sphi %s3534_s22, %s16_s22   ;;  %s3487_s21 = sphi %s3532_s21, %s4467_s21   ;;  %s3483_s20 = sphi %s3530_s20, %s4466_s20   ;;  %s3479_s19 = sphi %s3528_s19, %s4465_s19   ;;  %s3475_s18 = sphi %s3526_s18, %s4464_s18  }
   0x4   : > { %p26_p0 = scmp.ge.s32.totalorder %s25_s23, 2  ;;  %p2527_p1 = scmp.ge.s32.totalorder %s3491_s22, 1 }
   0x5   : > { %p206_p2 = scmp.lt.s32.totalorder %s3491_s22, 5 }
   0x6   : > { %s4469_s23 = smov (%p26_p0, %s25_s23), 0  ;;  %s4471_s24 = smov (!%p26_p0, %s28_s24), %s3487_s21 }
   0x7   : > { %4434 = sst [smem:[#allocation3_spill]] %s4469_s23  ;;  %p207_p3 = pnand %p2527_p1, %p206_p2 }
   0x8   : > { %p30_p4 = scmp.ge.s32.totalorder %s4471_s24, 2 }
   0x9   : > { %210 = sbr.rel (%p207_p3) target bundleno = 545 (0x221), region = 36 }
   0xa   : > { %s4473_s24 = smov (%p30_p4, %s4471_s24), 0 }
   0xb   : > { %4435 = sst [smem:[#allocation4_spill]] %s4473_s24 }
   0xe   : > { %p246_p5 = scmp.lt.s32.totalorder %s3479_s19, 1  ;;  %p253_p6 = scmp.lt.s32.totalorder %s3475_s18, 1  ;;  %v3493_v0 = vmov 0.0   ;;  %v3573_v1 = vld [vmem:[%s4429_s1] ss:$0 sm:$0xff] }
   0xf   : > { %s268_s25 = smul.u32 144, %s3475_s18  ;;  %399 = vst [vmem:[#allocation2 + $0xb4] sm:$0xf] %v3493_v0  ;;  %v3585_v2 = vld [vmem:[%s4430_s2] ss:$0 sm:$0xff]  ;;  %p2536_p7 = scmp.ne.s32.totalorder %s3475_s18, 0 }
  0x10   : > { %s4475_s19 = smov (!%p246_p5, %s3479_s19), 1 }
  0x11   : > { %s254_s26 = scalar_select %p253_p6, %s3475_s18, 1 }
  0x12   : > { %s3409_s27 = smul.u32 328, %s4475_s19  ;;  %s2530_s28 = sshll.u32 %s4475_s19, 5 }
  0x13   : > { %s2529_s29 = sshll.u32 %s254_s26, 4  ;;  %s2532_s30 = sshll.u32 %s4475_s19, 1 }
  0x14   : > { %s250_s8 = scalar_lea.vmem %s4428_s0, %s3409_s27  ;;  %s257_s9 = sadd.s32 %s2530_s28, %s2529_s29 }
  0x15   : > { %s2531_s10 = sshll.u32 %s257_s9, 3  ;;  %s265_s11 = sadd.s32 %s2532_s30, %s254_s26 }
  0x16   : > { %s3568_s14 = scalar_lea.vmem %s4432_s4, %s2531_s10  ;;  %s2533_s15 = sshll.u32 %s265_s11, 1 }
  0x17   : > { %s3578_s23 = scalar_lea.vmem %s4433_s5, %s2533_s15  ;;  %s3580_s27 = scalar_lea.vmem %s250_s8, %s268_s25 }
  0x18   : > { %v270_v3 = vld [vmem:[%s3580_s27] sm:$0xff]  ;;  %v271_v4 = vld [vmem:[%s3580_s27 + $0x8] sm:$0xff]  ;;  %v272_v5 = vld [vmem:[%s3580_s27 + $0x10] sm:$0xff] }
  0x19   : > { %v300_v6 = vmul.f32 %v3573_v1, %v270_v3  ;;  %v301_v7 = vmul.f32 %v3573_v1, %v271_v4  ;;  %v302_v8 = vmul.f32 %v3573_v1, %v272_v5  ;;  %v273_v9 = vld [vmem:[%s3580_s27 + $0x18] sm:$0xff]  ;;  %v274_v10 = vld [vmem:[%s3580_s27 + $0x20] sm:$0xff]  ;;  %v275_v11 = vld [vmem:[%s3580_s27 + $0x28] sm:$0xff] }
  0x1a   : > { %v303_v12 = vmul.f32 %v3573_v1, %v273_v9  ;;  %v304_v13 = vmul.f32 %v3573_v1, %v274_v10  ;;  %v305_v14 = vmul.f32 %v3573_v1, %v275_v11  ;;  %v276_v15 = vld [vmem:[%s3580_s27 + $0x30] sm:$0xff]  ;;  %v277_v16 = vld [vmem:[%s3580_s27 + $0x38] sm:$0xff]  ;;  %v278_v25 = vld [vmem:[%s3580_s27 + $0x40] sm:$0xff] }
  0x1b   : > { %v330_v17 = vadd.f32 %v3585_v2, %v300_v6  ;;  %v331_v18 = vadd.f32 %v3585_v2, %v301_v7  ;;  %v332_v19 = vadd.f32 %v3585_v2, %v302_v8  ;;  %v306_v20 = vmul.f32 %v3573_v1, %v276_v15  ;;  %v279_v26 = vld [vmem:[%s3580_s27 + $0x48] sm:$0xff]  ;;  %v280_v27 = vld [vmem:[%s3580_s27 + $0x50] sm:$0xff]  ;;  %v281_v32 = vld [vmem:[%s3580_s27 + $0x58] sm:$0xff] }
  0x1c   : > { %v333_v21 = vadd.f32 %v3585_v2, %v303_v12  ;;  %v334_v22 = vadd.f32 %v3585_v2, %v304_v13  ;;  %v335_v23 = vadd.f32 %v3585_v2, %v305_v14  ;;  %v307_v24 = vmul.f32 %v3573_v1, %v277_v16  ;;  %v282_v33 = vld [vmem:[%s3580_s27 + $0x60] sm:$0xff]  ;;  %v283_v34 = vld [vmem:[%s3580_s27 + $0x68] sm:$0xff]  ;;  %v284_v39 = vld [vmem:[%s3580_s27 + $0x70] sm:$0xff] }
  0x1d   : > { %v353_v28 = vmax.f32 %v330_v17, 0.0  ;;  %v354_v29 = vmax.f32 %v331_v18, 0.0  ;;  %v355_v30 = vmax.f32 %v332_v19, 0.0  ;;  %v336_v31 = vadd.f32 %v3585_v2, %v306_v20  ;;  %v285_v44 = vld [vmem:[%s3580_s27 + $0x78] sm:$0xff]  ;;  %v286_v57 = vld [vmem:[%s3580_s27 + $0x80] sm:$0xff]  ;;  %v287_v58 = vld [vmem:[%s3580_s27 + $0x88] sm:$0xff] }
  0x1e   : > { %v356_v35 = vmax.f32 %v333_v21, 0.0  ;;  %v357_v36 = vmax.f32 %v334_v22, 0.0  ;;  %v358_v37 = vmax.f32 %v335_v23, 0.0  ;;  %v337_v38 = vadd.f32 %v3585_v2, %v307_v24  ;;  %v288_v59 = vld [vmem:[%s3580_s27 + $0x90] sm:$0xff]  ;;  %v289_v3 = vld [vmem:[%s3580_s27 + $0x98] sm:$0xff]  ;;  %v290_v4 = vld [vmem:[%s3580_s27 + $0xa0] sm:$0xff] }
  0x1f   : > { %376 = vst [vmem:[#allocation2] sm:$0xff] %v353_v28  ;;  %377 = vst [vmem:[#allocation2 + $0x8] sm:$0xff] %v354_v29  ;;  %v359_v40 = vmax.f32 %v336_v31, 0.0  ;;  %v308_v41 = vmul.f32 %v3573_v1, %v278_v25  ;;  %v309_v42 = vmul.f32 %v3573_v1, %v279_v26  ;;  %v310_v43 = vmul.f32 %v3573_v1, %v280_v27  ;;  %v291_v5 = vld [vmem:[%s3580_s27 + $0xa8] sm:$0xff]  ;;  %v292_v10 = vld [vmem:[%s3580_s27 + $0xb0] sm:$0xf] }
  0x20   : > { %378 = vst [vmem:[#allocation2 + $0x10] sm:$0xff] %v355_v30  ;;  %379 = vst [vmem:[#allocation2 + $0x18] sm:$0xff] %v356_v35  ;;  %v360_v45 = vmax.f32 %v337_v38, 0.0  ;;  %v311_v46 = vmul.f32 %v3573_v1, %v281_v32  ;;  %v312_v47 = vmul.f32 %v3573_v1, %v282_v33  ;;  %v313_v48 = vmul.f32 %v3573_v1, %v283_v34 }
  0x21   : > { %380 = vst [vmem:[#allocation2 + $0x20] sm:$0xff] %v357_v36  ;;  %381 = vst [vmem:[#allocation2 + $0x28] sm:$0xff] %v358_v37  ;;  %v338_v49 = vadd.f32 %v3585_v2, %v308_v41  ;;  %v339_v50 = vadd.f32 %v3585_v2, %v309_v42  ;;  %v340_v51 = vadd.f32 %v3585_v2, %v310_v43 }
  0x22   : > { %382 = vst [vmem:[#allocation2 + $0x30] sm:$0xff] %v359_v40  ;;  %v314_v52 = vmul.f32 %v3573_v1, %v284_v39  ;;  %383 = vst [vmem:[#allocation2 + $0x38] sm:$0xff] %v360_v45  ;;  %v341_v53 = vadd.f32 %v3585_v2, %v311_v46  ;;  %v342_v54 = vadd.f32 %v3585_v2, %v312_v47 }
  0x23   : > { %v343_v55 = vadd.f32 %v3585_v2, %v313_v48  ;;  %v315_v56 = vmul.f32 %v3573_v1, %v285_v44  ;;  %v361_v60 = vmax.f32 %v338_v49, 0.0  ;;  %v362_v61 = vmax.f32 %v339_v50, 0.0 }
  0x24   : > { %v363_v62 = vmax.f32 %v340_v51, 0.0  ;;  %v344_v63 = vadd.f32 %v3585_v2, %v314_v52  ;;  %v364_v6 = vmax.f32 %v341_v53, 0.0  ;;  %v365_v7 = vmax.f32 %v342_v54, 0.0 }
  0x25   : > { %v366_v8 = vmax.f32 %v343_v55, 0.0  ;;  %v345_v9 = vadd.f32 %v3585_v2, %v315_v56  ;;  %384 = vst [vmem:[#allocation2 + $0x40] sm:$0xff] %v361_v60  ;;  %385 = vst [vmem:[#allocation2 + $0x48] sm:$0xff] %v362_v61  ;;  %v316_v12 = vmul.f32 %v3573_v1, %v286_v57  ;;  %v317_v13 = vmul.f32 %v3573_v1, %v287_v58 }
  0x26   : > { %386 = vst [vmem:[#allocation2 + $0x50] sm:$0xff] %v363_v62  ;;  %v367_v11 = vmax.f32 %v344_v63, 0.0  ;;  %v318_v14 = vmul.f32 %v3573_v1, %v288_v59  ;;  %387 = vst [vmem:[#allocation2 + $0x58] sm:$0xff] %v364_v6  ;;  %v319_v16 = vmul.f32 %v3573_v1, %v289_v3  ;;  %v320_v17 = vmul.f32 %v3573_v1, %v290_v4 }
  0x27   : > { %388 = vst [vmem:[#allocation2 + $0x60] sm:$0xff] %v365_v7  ;;  %389 = vst [vmem:[#allocation2 + $0x68] sm:$0xff] %v366_v8  ;;  %v368_v15 = vmax.f32 %v345_v9, 0.0  ;;  %v321_v18 = vmul.f32 %v3573_v1, %v291_v5  ;;  %v346_v19 = vadd.f32 %v3585_v2, %v316_v12  ;;  %v347_v20 = vadd.f32 %v3585_v2, %v317_v13 }
  0x28   : > { %390 = vst [vmem:[#allocation2 + $0x70] sm:$0xff] %v367_v11  ;;  %v348_v21 = vadd.f32 %v3585_v2, %v318_v14  ;;  %v322_v22 = vmul.f32 %v3573_v1, %v292_v10  ;;  %v349_v23 = vadd.f32 %v3585_v2, %v319_v16  ;;  %v350_v24 = vadd.f32 %v3585_v2, %v320_v17 }
  0x29   : > { %391 = vst [vmem:[#allocation2 + $0x78] sm:$0xff] %v368_v15  ;;  %v351_v25 = vadd.f32 %v3585_v2, %v321_v18  ;;  %v369_v26 = vmax.f32 %v346_v19, 0.0  ;;  %v370_v27 = vmax.f32 %v347_v20, 0.0 }
  0x2a   : > { %v371_v28 = vmax.f32 %v348_v21, 0.0  ;;  %v352_v29 = vadd.f32 %v3585_v2, %v322_v22  ;;  %v372_v30 = vmax.f32 %v349_v23, 0.0  ;;  %v373_v31 = vmax.f32 %v350_v24, 0.0  ;;  %403 = sbr.rel (%p2536_p7) target bundleno = 50 (0x32), region = 40 }
  0x2b   : > { %v374_v32 = vmax.f32 %v351_v25, 0.0  ;;  %392 = vst [vmem:[#allocation2 + $0x80] sm:$0xff] %v369_v26  ;;  %393 = vst [vmem:[#allocation2 + $0x88] sm:$0xff] %v370_v27 }
  0x2c   : > { %394 = vst [vmem:[#allocation2 + $0x90] sm:$0xff] %v371_v28  ;;  %v375_v33 = vmax.f32 %v352_v29, 0.0  ;;  %395 = vst [vmem:[#allocation2 + $0x98] sm:$0xff] %v372_v30 }
  0x2d   : > { %396 = vst [vmem:[#allocation2 + $0xa0] sm:$0xff] %v373_v31  ;;  %397 = vst [vmem:[#allocation2 + $0xa8] sm:$0xff] %v374_v32 }
  0x2e   : > { %398 = vst [vmem:[#allocation2 + $0xb0] sm:$0xf] %v375_v33 }
  0x2f   : > { %v3494_v1 = vmov 0.0  }
  0x30   : > { %404 = vst [vmem:[#allocation2] sm:$0xff] %v3494_v1  ;;  %405 = vst [vmem:[#allocation2 + $0x8] sm:$0xff] %v3494_v1 }
  0x31   : > { %406 = vst [vmem:[#allocation2 + $0x10] sm:$0x3] %v3494_v1 }
  0x32 PF: > { %p2537_p8 = scmp.ne.s32.totalorder %s3475_s18, 1 }
  0x34   : > { %410 = sbr.rel (%p2537_p8) target bundleno = 60 (0x3c), region = 44 }
  0x39   : > { %v3495_v2 = vmov 0.0  }
  0x3a   : > { %411 = vst [vmem:[#allocation2 + $0xa2] sm:$0xff] %v3495_v2  ;;  %412 = vst [vmem:[#allocation2 + $0xaa] sm:$0xff] %v3495_v2 }
  0x3b   : > { %413 = vst [vmem:[#allocation2 + $0xb2] sm:$0x3] %v3495_v2 }
  0x3c PF: > { %v492_v34 = vld [vmem:[%s4431_s3 + $0xf8] sm:$0xff]  ;;  %v491_v36 = vld [vmem:[%s4431_s3 + $0xf0] sm:$0xff]  ;;  %414 = vst [vmem:[#allocation2] sm:$0x1] %v3493_v0  ;;  %415 = vst [vmem:[#allocation2 + $0x11] sm:$0x3] %v3493_v0 }
  0x3d   : > { %v458_v35 = vld [vmem:[%s4431_s3 + $0x78] sm:$0xff]  ;;  %416 = vst [vmem:[#allocation2 + $0x23] sm:$0x3] %v3493_v0  ;;  %417 = vst [vmem:[#allocation2 + $0x35] sm:$0x3] %v3493_v0  ;;  %2846 = vmatprep.subr.mxu0 %v492_v34  ;;  %v457_v37 = vld [vmem:[%s4431_s3 + $0x70] sm:$0xff] }
  0x3e   : > { %418 = vst [vmem:[#allocation2 + $0x47] sm:$0x3] %v3493_v0  ;;  %419 = vst [vmem:[#allocation2 + $0x59] sm:$0x3] %v3493_v0  ;;  %2905 = vmatprep.subr.mxu1 %v458_v35  ;;  %2847 = vmatpush3.msra.mxu0 %v492_v34  ;;  %v490_v38 = vld [vmem:[%s4431_s3 + $0xe8] sm:$0xff]  ;;  %v455_v40 = vld [vmem:[%s4431_s3 + $0x60] sm:$0xff] }
  0x3f   : > { %420 = vst [vmem:[#allocation2 + $0x6b] sm:$0x3] %v3493_v0  ;;  %421 = vst [vmem:[#allocation2 + $0x7d] sm:$0x3] %v3493_v0  ;;  %2906 = vmatpush3.msra.mxu1 %v458_v35  ;;  %v456_v39 = vld [vmem:[%s4431_s3 + $0x68] sm:$0xff]  ;;  %2848 = vmatprep.subr.mxu0 %v491_v36  ;;  %v488_v41 = vld [vmem:[%s4431_s3 + $0xd8] sm:$0xff] }
  0x40   : > { %422 = vst [vmem:[#allocation2 + $0x8f] sm:$0x3] %v3493_v0  ;;  %423 = vst [vmem:[#allocation2 + $0xa1] sm:$0x3] %v3493_v0  ;;  %2907 = vmatprep.subr.mxu1 %v457_v37  ;;  %2849 = vmatpush3.msra.mxu0 %v491_v36  ;;  %v454_v42 = vld [vmem:[%s4431_s3 + $0x58] sm:$0xff]  ;;  %v487_v43 = vld [vmem:[%s4431_s3 + $0xd0] sm:$0xff] }
  0x41   : > { %424 = vst [vmem:[#allocation2 + $0xb3] sm:$0x3] %v3493_v0  ;;  %2908 = vmatpush3.msra.mxu1 %v457_v37  ;;  %v489_v0 = vld [vmem:[%s4431_s3 + $0xe0] sm:$0xff]  ;;  %2850 = vmatprep.subr.mxu0 %v490_v38  ;;  %v453_v44 = vld [vmem:[%s4431_s3 + $0x50] sm:$0xff]  ;;  %v486_v45 = vld [vmem:[%s4431_s3 + $0xc8] sm:$0xff]  ;;  %vm2255_vm0 = vcmask 1045504  }
  0x42   : > { %2909 = vmatprep.subr.mxu1 %v456_v39  ;;  %2851 = vmatpush3.msra.mxu0 %v490_v38  ;;  %v452_v46 = vld [vmem:[%s4431_s3 + $0x48] sm:$0xff]  ;;  %v485_v47 = vld [vmem:[%s4431_s3 + $0xc0] sm:$0xff]  ;;  %v484_v49 = vld [vmem:[%s4431_s3 + $0xb8] sm:$0xff]  ;;  %vm2265_vm1 = vcmask 1043456   ;;  %vm2275_vm2 = vcmask 1041408   ;;  %vm2369_vm3 = vcmask 1040384  }
  0x43   : > { %2910 = vmatpush3.msra.mxu1 %v456_v39  ;;  %2852 = vmatprep.subr.mxu0 %v489_v0  ;;  %v451_v48 = vld [vmem:[%s4431_s3 + $0x40] sm:$0xff]  ;;  %v450_v50 = vld [vmem:[%s4431_s3 + $0x38] sm:$0xff]  ;;  %v483_v51 = vld [vmem:[%s4431_s3 + $0xb0] sm:$0xff] }
  0x44   : > { %2911 = vmatprep.subr.mxu1 %v455_v40  ;;  %2853 = vmatpush3.msra.mxu0 %v489_v0  ;;  %v449_v52 = vld [vmem:[%s4431_s3 + $0x30] sm:$0xff]  ;;  %v482_v53 = vld [vmem:[%s4431_s3 + $0xa8] sm:$0xff]  ;;  %v481_v55 = vld [vmem:[%s4431_s3 + $0xa0] sm:$0xff] }
  0x45   : > { %2912 = vmatpush3.msra.mxu1 %v455_v40  ;;  %2854 = vmatprep.subr.mxu0 %v488_v41  ;;  %v448_v54 = vld [vmem:[%s4431_s3 + $0x28] sm:$0xff]  ;;  %v447_v56 = vld [vmem:[%s4431_s3 + $0x20] sm:$0xff]  ;;  %v480_v57 = vld [vmem:[%s4431_s3 + $0x98] sm:$0xff] }
  0x46   : > { %2913 = vmatprep.subr.mxu1 %v454_v42  ;;  %2855 = vmatpush3.msra.mxu0 %v488_v41  ;;  %v446_v58 = vld [vmem:[%s4431_s3 + $0x18] sm:$0xff]  ;;  %v479_v59 = vld [vmem:[%s4431_s3 + $0x90] sm:$0xff]  ;;  %v478_v61 = vld [vmem:[%s4431_s3 + $0x88] sm:$0xff] }
  0x47   : > { %2914 = vmatpush3.msra.mxu1 %v454_v42  ;;  %2856 = vmatprep.subr.mxu0 %v487_v43  ;;  %v445_v60 = vld [vmem:[%s4431_s3 + $0x10] sm:$0xff]  ;;  %v444_v62 = vld [vmem:[%s4431_s3 + $0x8] sm:$0xff]  ;;  %v477_v63 = vld [vmem:[%s4431_s3 + $0x80] sm:$0xff] }
  0x48   : > { %2915 = vmatprep.subr.mxu1 %v453_v44  ;;  %2857 = vmatpush3.msra.mxu0 %v487_v43  ;;  %v443_v3 = vld [vmem:[%s4431_s3] sm:$0xff]  ;;  %v460_v6 = vld [vmem:[#allocation2 + $0x9] sm:$0xff]  ;;  %v836_v8 = vld [vmem:[%s4431_s3 + $0x178] sm:$0xff] }
  0x49   : > { %2916 = vmatpush3.msra.mxu1 %v453_v44  ;;  %2858 = vmatprep.subr.mxu0 %v486_v45  ;;  %v459_v4 = vld [vmem:[#allocation2 + $0x1] sm:$0xff]  ;;  %v461_v9 = vld [vmem:[#allocation2 + $0x11] sm:$0xff]  ;;  %v462_v13 = vld [vmem:[#allocation2 + $0x19] sm:$0xff] }
  0x4a   : > { %2917 = vmatprep.subr.mxu1 %v452_v46  ;;  %2859 = vmatpush3.msra.mxu0 %v486_v45  ;;  %v425_v5 = vld [vmem:[#allocation2] sm:$0xff]  ;;  %v426_v7 = vld [vmem:[#allocation2 + $0x8] sm:$0xff]  ;;  %v427_v10 = vld [vmem:[#allocation2 + $0x10] sm:$0xff] }
  0x4b   : > { %2918 = vmatpush3.msra.mxu1 %v452_v46  ;;  %2860 = vmatprep.subr.mxu0 %v485_v47  ;;  %v835_v11 = vld [vmem:[%s4431_s3 + $0x170] sm:$0xff]  ;;  %v1043_v12 = vld [vmem:[%s4431_s3 + $0x1f8] sm:$0xff]  ;;  %v834_v15 = vld [vmem:[%s4431_s3 + $0x168] sm:$0xff] }
  0x4c   : > { %2919 = vmatprep.subr.mxu1 %v451_v48  ;;  %2861 = vmatpush3.msra.mxu0 %v485_v47  ;;  %v428_v14 = vld [vmem:[#allocation2 + $0x18] sm:$0xff]  ;;  %v1042_v16 = vld [vmem:[%s4431_s3 + $0x1f0] sm:$0xff]  ;;  %v463_v17 = vld [vmem:[#allocation2 + $0x21] sm:$0xff] }
  0x4d   : > { %2920 = vmatpush3.msra.mxu1 %v451_v48  ;;  %2862 = vmatprep.subr.mxu0 %v484_v49  ;;  %v429_v18 = vld [vmem:[#allocation2 + $0x20] sm:$0xff]  ;;  %v464_v20 = vld [vmem:[#allocation2 + $0x29] sm:$0xff]  ;;  %v832_v23 = vld [vmem:[%s4431_s3 + $0x158] sm:$0xff] }
  0x4e   : > { %2921 = vmatprep.subr.mxu1 %v450_v50  ;;  %2863 = vmatpush3.msra.mxu0 %v484_v49  ;;  %v833_v19 = vld [vmem:[%s4431_s3 + $0x160] sm:$0xff]  ;;  %v430_v21 = vld [vmem:[#allocation2 + $0x28] sm:$0xff]  ;;  %v465_v25 = vld [vmem:[#allocation2 + $0x31] sm:$0xff] }
  0x4f   : > { %2922 = vmatpush3.msra.mxu1 %v450_v50  ;;  %2864 = vmatprep.subr.mxu0 %v483_v51  ;;  %v1041_v22 = vld [vmem:[%s4431_s3 + $0x1e8] sm:$0xff]  ;;  %v1040_v24 = vld [vmem:[%s4431_s3 + $0x1e0] sm:$0xff]  ;;  %v431_v26 = vld [vmem:[#allocation2 + $0x30] sm:$0xff] }
  0x50   : > { %2923 = vmatprep.subr.mxu1 %v449_v52  ;;  %2865 = vmatpush3.msra.mxu0 %v483_v51  ;;  %v466_v27 = vld [vmem:[#allocation2 + $0x39] sm:$0xff]  ;;  %v831_v29 = vld [vmem:[%s4431_s3 + $0x150] sm:$0xff]  ;;  %v830_v31 = vld [vmem:[%s4431_s3 + $0x148] sm:$0xff] }
  0x51   : > { %2924 = vmatpush3.msra.mxu1 %v449_v52  ;;  %2866 = vmatprep.subr.mxu0 %v482_v53  ;;  %v432_v28 = vld [vmem:[#allocation2 + $0x38] sm:$0xff]  ;;  %v1038_v32 = vld [vmem:[%s4431_s3 + $0x1d0] sm:$0xff]  ;;  %v467_v33 = vld [vmem:[#allocation2 + $0x41] sm:$0xff] }
  0x52   : > { %2925 = vmatprep.subr.mxu1 %v448_v54  ;;  %2867 = vmatpush3.msra.mxu0 %v482_v53  ;;  %v1039_v30 = vld [vmem:[%s4431_s3 + $0x1d8] sm:$0xff]  ;;  %v433_v1 = vld [vmem:[#allocation2 + $0x40] sm:$0xff]  ;;  %v468_v2 = vld [vmem:[#allocation2 + $0x49] sm:$0xff] }
  0x53   : > { %2926 = vmatpush3.msra.mxu1 %v448_v54  ;;  %2868 = vmatprep.subr.mxu0 %v481_v55  ;;  %v434_v34 = vld [vmem:[#allocation2 + $0x48] sm:$0xff]  ;;  %v829_v35 = vld [vmem:[%s4431_s3 + $0x140] sm:$0xff]  ;;  %v828_v37 = vld [vmem:[%s4431_s3 + $0x138] sm:$0xff] }
  0x54   : > { %2927 = vmatprep.subr.mxu1 %v447_v56  ;;  %2869 = vmatpush3.msra.mxu0 %v481_v55  ;;  %v1037_v36 = vld [vmem:[%s4431_s3 + $0x1c8] sm:$0xff]  ;;  %v1036_v38 = vld [vmem:[%s4431_s3 + $0x1c0] sm:$0xff]  ;;  %v469_v39 = vld [vmem:[#allocation2 + $0x51] sm:$0xff] }
  0x55   : > { %2928 = vmatpush3.msra.mxu1 %v447_v56  ;;  %2870 = vmatprep.subr.mxu0 %v480_v57  ;;  %v435_v0 = vld [vmem:[#allocation2 + $0x50] sm:$0xff]  ;;  %v470_v40 = vld [vmem:[#allocation2 + $0x59] sm:$0xff]  ;;  %v471_v45 = vld [vmem:[#allocation2 + $0x61] sm:$0xff] }
  0x56   : > { %2929 = vmatprep.subr.mxu1 %v446_v58  ;;  %2871 = vmatpush3.msra.mxu0 %v480_v57  ;;  %v436_v41 = vld [vmem:[#allocation2 + $0x58] sm:$0xff]  ;;  %v827_v43 = vld [vmem:[%s4431_s3 + $0x130] sm:$0xff]  ;;  %v437_v46 = vld [vmem:[#allocation2 + $0x60] sm:$0xff] }
  0x57   : > { %2930 = vmatpush3.msra.mxu1 %v446_v58  ;;  %2872 = vmatprep.subr.mxu0 %v479_v59  ;;  %v1035_v42 = vld [vmem:[%s4431_s3 + $0x1b8] sm:$0xff]  ;;  %v1034_v44 = vld [vmem:[%s4431_s3 + $0x1b0] sm:$0xff]  ;;  %v826_v47 = vld [vmem:[%s4431_s3 + $0x128] sm:$0xff] }
  0x58   : > { %2931 = vmatprep.subr.mxu1 %v445_v60  ;;  %2873 = vmatpush3.msra.mxu0 %v479_v59  ;;  %v472_v48 = vld [vmem:[#allocation2 + $0x69] sm:$0xff]  ;;  %v825_v51 = vld [vmem:[%s4431_s3 + $0x120] sm:$0xff]  ;;  %v473_v53 = vld [vmem:[#allocation2 + $0x71] sm:$0xff] }
  0x59   : > { %2932 = vmatpush3.msra.mxu1 %v445_v60  ;;  %2874 = vmatprep.subr.mxu0 %v478_v61  ;;  %v438_v49 = vld [vmem:[#allocation2 + $0x68] sm:$0xff]  ;;  %v1032_v52 = vld [vmem:[%s4431_s3 + $0x1a0] sm:$0xff]  ;;  %v439_v54 = vld [vmem:[#allocation2 + $0x70] sm:$0xff] }
  0x5a   : > { %2933 = vmatprep.subr.mxu1 %v444_v62  ;;  %2875 = vmatpush3.msra.mxu0 %v478_v61  ;;  %v1033_v50 = vld [vmem:[%s4431_s3 + $0x1a8] sm:$0xff]  ;;  %v824_v55 = vld [vmem:[%s4431_s3 + $0x118] sm:$0xff]  ;;  %v823_v59 = vld [vmem:[%s4431_s3 + $0x110] sm:$0xff] }
  0x5b   : > { %2934 = vmatpush3.msra.mxu1 %v444_v62  ;;  %2876 = vmatprep.subr.mxu0 %v477_v63  ;;  %v474_v56 = vld [vmem:[#allocation2 + $0x79] sm:$0xff]  ;;  %v475_v60 = vld [vmem:[#allocation2 + $0x81] sm:$0xff]  ;;  %v1030_v61 = vld [vmem:[%s4431_s3 + $0x190] sm:$0xff] }
  0x5c   : > { %2935 = vmatprep.subr.mxu1 %v443_v3  ;;  %2877 = vmatpush3.msra.mxu0 %v477_v63  ;;  %v440_v57 = vld [vmem:[#allocation2 + $0x78] sm:$0xff]  ;;  %v441_v62 = vld [vmem:[#allocation2 + $0x80] sm:$0xff]  ;;  %v476_v63 = vld [vmem:[#allocation2 + $0x89] sm:$0xff] }
  0x5d   : > { %2878 = vmatprep.mubr.f32.mxu0 %v459_v4  ;;  %2936 = vmatpush3.msra.mxu1 %v443_v3  ;;  %v1031_v58 = vld [vmem:[%s4431_s3 + $0x198] sm:$0xff]  ;;  %v442_v3 = vld [vmem:[#allocation2 + $0x88] sm:$0xff] }
  0x5e   : > { %2937 = vmatprep.mubr.f32.mxu1 %v425_v5  ;;  %2879 = vmatmul.mubr.f32.vlgmr.msra.gmra.mxu0 %v460_v6  ;;  %v822_v4 = vld [vmem:[%s4431_s3 + $0x108] sm:$0xff]  ;;  %v821_v6 = vld [vmem:[%s4431_s3 + $0x100] sm:$0xff] }
  0x5f   : > { %2938 = vmatmul.mubr.f32.vlgmr.msra.gmra.mxu1 %v426_v7  ;;  %2964 = vmatprep.subr.mxu0 %v836_v8  ;;  %v1029_v5 = vld [vmem:[%s4431_s3 + $0x188] sm:$0xff]  ;;  %v1028_v7 = vld [vmem:[%s4431_s3 + $0x180] sm:$0xff] }
  0x60   : > { %2881 = vmatprep.mubr.f32.mxu0 %v461_v9  ;;  %2965 = vmatpush3.msra.mxu0 %v836_v8  ;;  %v803_v8 = vld [vmem:[#allocation2 + $0x2] sm:$0xff]  ;;  %v1010_v9 = vld [vmem:[#allocation2 + $0x12] sm:$0xff] }
  0x61   : > { %2940 = vmatprep.mubr.f32.mxu1 %v427_v10  ;;  %2966 = vmatprep.subr.mxu0 %v835_v11  ;;  %v804_v10 = vld [vmem:[#allocation2 + $0xa] sm:$0xff] }
  0x62   : > { %3023 = vmatprep.subr.mxu1 %v1043_v12  ;;  %2882 = vmatmul.mubr.f32.gmra.mxu0 %v462_v13  ;;  %v1012_v13 = vld [vmem:[#allocation2 + $0x22] sm:$0xff] }
  0x63   : > { %2941 = vmatmul.mubr.f32.gmra.mxu1 %v428_v14  ;;  %2967 = vmatpush3.msra.mxu0 %v835_v11  ;;  %v1011_v11 = vld [vmem:[#allocation2 + $0x1a] sm:$0xff]  ;;  %v1249_v14 = vld [vmem:[%s4431_s3 + $0x270] sm:$0xff] }
  0x64   : > { %3024 = vmatpush3.msra.mxu1 %v1043_v12  ;;  %2968 = vmatprep.subr.mxu0 %v834_v15  ;;  %v1250_v12 = vld [vmem:[%s4431_s3 + $0x278] sm:$0xff] }
  0x65   : > { %3025 = vmatprep.subr.mxu1 %v1042_v16  ;;  %2969 = vmatpush3.msra.mxu0 %v834_v15  ;;  %v1457_v15 = vld [vmem:[%s4431_s3 + $0x2f8] sm:$0xff] }
  0x66   : > { %2884 = vmatprep.mubr.f32.mxu0 %v463_v17  ;;  %2943 = vmatprep.mubr.f32.mxu1 %v429_v18  ;;  %v1248_v17 = vld [vmem:[%s4431_s3 + $0x268] sm:$0xff]  ;;  %v1456_v18 = vld [vmem:[%s4431_s3 + $0x2f0] sm:$0xff] }
  0x67   : > { %2970 = vmatprep.subr.mxu0 %v833_v19  ;;  %3026 = vmatpush3.msra.mxu1 %v1042_v16  ;;  %v1013_v16 = vld [vmem:[#allocation2 + $0x2a] sm:$0xff] }
  0x68   : > { %2885 = vmatmul.mubr.f32.gmra.mxu0 %v464_v20  ;;  %2944 = vmatmul.mubr.f32.gmra.mxu1 %v430_v21  ;;  %v1247_v20 = vld [vmem:[%s4431_s3 + $0x260] sm:$0xff] }
  0x69   : > { %2971 = vmatpush3.msra.mxu0 %v833_v19  ;;  %3027 = vmatprep.subr.mxu1 %v1041_v22  ;;  %v1014_v19 = vld [vmem:[#allocation2 + $0x32] sm:$0xff]  ;;  %v1015_v21 = vld [vmem:[#allocation2 + $0x3a] sm:$0xff] }
  0x6a   : > { %2972 = vmatprep.subr.mxu0 %v832_v23  ;;  %3028 = vmatpush3.msra.mxu1 %v1041_v22  ;;  %v1455_v22 = vld [vmem:[%s4431_s3 + $0x2e8] sm:$0xff] }
  0x6b   : > { %2973 = vmatpush3.msra.mxu0 %v832_v23  ;;  %3029 = vmatprep.subr.mxu1 %v1040_v24  ;;  %v1246_v23 = vld [vmem:[%s4431_s3 + $0x258] sm:$0xff] }
  0x6c   : > { %2887 = vmatprep.mubr.f32.mxu0 %v465_v25  ;;  %2946 = vmatprep.mubr.f32.mxu1 %v431_v26  ;;  %v1016_v25 = vld [vmem:[#allocation2 + $0x42] sm:$0xff]  ;;  %v1017_v26 = vld [vmem:[#allocation2 + $0x4a] sm:$0xff] }
  0x6d   : > { %3030 = vmatpush3.msra.mxu1 %v1040_v24  ;;  %2888 = vmatmul.mubr.f32.gmra.mxu0 %v466_v27  ;;  %v1454_v24 = vld [vmem:[%s4431_s3 + $0x2e0] sm:$0xff]  ;;  %v1245_v27 = vld [vmem:[%s4431_s3 + $0x250] sm:$0xff] }
  0x6e   : > { %2947 = vmatmul.mubr.f32.gmra.mxu1 %v432_v28  ;;  %2974 = vmatprep.subr.mxu0 %v831_v29  ;;  %v1453_v28 = vld [vmem:[%s4431_s3 + $0x2d8] sm:$0xff] }
  0x6f   : > { %3031 = vmatprep.subr.mxu1 %v1039_v30  ;;  %2975 = vmatpush3.msra.mxu0 %v831_v29  ;;  %v1244_v29 = vld [vmem:[%s4431_s3 + $0x248] sm:$0xff] }
  0x70   : > { %3032 = vmatpush3.msra.mxu1 %v1039_v30  ;;  %2976 = vmatprep.subr.mxu0 %v830_v31  ;;  %v1452_v30 = vld [vmem:[%s4431_s3 + $0x2d0] sm:$0xff] }
  0x71   : > { %3033 = vmatprep.subr.mxu1 %v1038_v32  ;;  %2890 = vmatprep.mubr.f32.mxu0 %v467_v33  ;;  %v1243_v33 = vld [vmem:[%s4431_s3 + $0x240] sm:$0xff] }
  0x72   : > { %2949 = vmatprep.mubr.f32.mxu1 %v433_v1  ;;  %2977 = vmatpush3.msra.mxu0 %v830_v31  ;;  %v1018_v31 = vld [vmem:[#allocation2 + $0x52] sm:$0xff]  ;;  %v1451_v1 = vld [vmem:[%s4431_s3 + $0x2c8] sm:$0xff] }
  0x73   : > { %3034 = vmatpush3.msra.mxu1 %v1038_v32  ;;  %2891 = vmatmul.mubr.f32.gmra.mxu0 %v468_v2  ;;  %v1019_v32 = vld [vmem:[#allocation2 + $0x5a] sm:$0xff] }
  0x74   : > { %2950 = vmatmul.mubr.f32.gmra.mxu1 %v434_v34  ;;  %2978 = vmatprep.subr.mxu0 %v829_v35  ;;  %v1242_v2 = vld [vmem:[%s4431_s3 + $0x238] sm:$0xff]  ;;  %v1450_v34 = vld [vmem:[%s4431_s3 + $0x2c0] sm:$0xff] }
  0x75   : > { %3035 = vmatprep.subr.mxu1 %v1037_v36  ;;  %2979 = vmatpush3.msra.mxu0 %v829_v35  ;;  %v1020_v35 = vld [vmem:[#allocation2 + $0x62] sm:$0xff] }
  0x76   : > { %3036 = vmatpush3.msra.mxu1 %v1037_v36  ;;  %2980 = vmatprep.subr.mxu0 %v828_v37  ;;  %v1021_v36 = vld [vmem:[#allocation2 + $0x6a] sm:$0xff] }
  0x77   : > { %3037 = vmatprep.subr.mxu1 %v1036_v38  ;;  %2893 = vmatprep.mubr.f32.mxu0 %v469_v39  ;;  %v1448_v39 = vld [vmem:[%s4431_s3 + $0x2b0] sm:$0xff] }
  0x78   : > { %2952 = vmatprep.mubr.f32.mxu1 %v435_v0  ;;  %2981 = vmatpush3.msra.mxu0 %v828_v37  ;;  %v1449_v37 = vld [vmem:[%s4431_s3 + $0x2b8] sm:$0xff] }
  0x79   : > { %3038 = vmatpush3.msra.mxu1 %v1036_v38  ;;  %2894 = vmatmul.mubr.f32.gmra.mxu0 %v470_v40  ;;  %v1241_v38 = vld [vmem:[%s4431_s3 + $0x230] sm:$0xff]  ;;  %v1240_v40 = vld [vmem:[%s4431_s3 + $0x228] sm:$0xff] }
  0x7a   : > { %2953 = vmatmul.mubr.f32.gmra.mxu1 %v436_v41  ;;  %3039 = vmatprep.subr.mxu1 %v1035_v42  ;;  %v1022_v0 = vld [vmem:[#allocation2 + $0x72] sm:$0xff]  ;;  %v1023_v41 = vld [vmem:[#allocation2 + $0x7a] sm:$0xff] }
  0x7b   : > { %2982 = vmatprep.subr.mxu0 %v827_v43  ;;  %3040 = vmatpush3.msra.mxu1 %v1035_v42  ;;  %v1447_v42 = vld [vmem:[%s4431_s3 + $0x2a8] sm:$0xff] }
  0x7c   : > { %2983 = vmatpush3.msra.mxu0 %v827_v43  ;;  %3041 = vmatprep.subr.mxu1 %v1034_v44  ;;  %v1239_v43 = vld [vmem:[%s4431_s3 + $0x220] sm:$0xff] }
  0x7d   : > { %2896 = vmatprep.mubr.f32.mxu0 %v471_v45  ;;  %2955 = vmatprep.mubr.f32.mxu1 %v437_v46  ;;  %v1024_v45 = vld [vmem:[#allocation2 + $0x82] sm:$0xff]  ;;  %v1238_v46 = vld [vmem:[%s4431_s3 + $0x218] sm:$0xff] }
  0x7e   : > { %2984 = vmatprep.subr.mxu0 %v826_v47  ;;  %3042 = vmatpush3.msra.mxu1 %v1034_v44  ;;  %v1446_v44 = vld [vmem:[%s4431_s3 + $0x2a0] sm:$0xff] }
  0x7f   : > { %2897 = vmatmul.mubr.f32.gmra.mxu0 %v472_v48  ;;  %2956 = vmatmul.mubr.f32.gmra.mxu1 %v438_v49  ;;  %v1445_v48 = vld [vmem:[%s4431_s3 + $0x298] sm:$0xff]  ;;  %v1237_v49 = vld [vmem:[%s4431_s3 + $0x210] sm:$0xff] }
  0x80   : > { %2985 = vmatpush3.msra.mxu0 %v826_v47  ;;  %3043 = vmatprep.subr.mxu1 %v1033_v50  ;;  %v1025_v47 = vld [vmem:[#allocation2 + $0x8a] sm:$0xff] }
  0x81   : > { %2986 = vmatprep.subr.mxu0 %v825_v51  ;;  %3044 = vmatpush3.msra.mxu1 %v1033_v50  ;;  %v1444_v50 = vld [vmem:[%s4431_s3 + $0x290] sm:$0xff] }
  0x82   : > { %2987 = vmatpush3.msra.mxu0 %v825_v51  ;;  %3045 = vmatprep.subr.mxu1 %v1032_v52  ;;  %v1026_v51 = vld [vmem:[#allocation2 + $0x92] sm:$0xff] }
  0x83   : > { %2899 = vmatprep.mubr.f32.mxu0 %v473_v53  ;;  %2958 = vmatprep.mubr.f32.mxu1 %v439_v54  ;;  %v1236_v53 = vld [vmem:[%s4431_s3 + $0x208] sm:$0xff] }
  0x84   : > { %2988 = vmatprep.subr.mxu0 %v824_v55  ;;  %3046 = vmatpush3.msra.mxu1 %v1032_v52  ;;  %v1027_v52 = vld [vmem:[#allocation2 + $0x9a] sm:$0xff]  ;;  %v1443_v54 = vld [vmem:[%s4431_s3 + $0x288] sm:$0xff] }
  0x85   : > { %2900 = vmatmul.mubr.f32.gmra.mxu0 %v474_v56  ;;  %2959 = vmatmul.mubr.f32.gmra.mxu1 %v440_v57  ;;  %v1442_v56 = vld [vmem:[%s4431_s3 + $0x280] sm:$0xff]  ;;  %v1217_v57 = vld [vmem:[#allocation2 + $0x13] sm:$0xff] }
  0x86   : > { %2989 = vmatpush3.msra.mxu0 %v824_v55  ;;  %3047 = vmatprep.subr.mxu1 %v1031_v58  ;;  %v1235_v55 = vld [vmem:[%s4431_s3 + $0x200] sm:$0xff] }
  0x87   : > { %2990 = vmatprep.subr.mxu0 %v823_v59  ;;  %3048 = vmatpush3.msra.mxu1 %v1031_v58  ;;  %v1424_v58 = vld [vmem:[#allocation2 + $0x14] sm:$0xff] }
  0x88   : > { %2902 = vmatprep.mubr.f32.mxu0 %v475_v60  ;;  %3049 = vmatprep.subr.mxu1 %v1030_v61  ;;  %v1425_v60 = vld [vmem:[#allocation2 + $0x1c] sm:$0xff] }
  0x89   : > { %2961 = vmatprep.mubr.f32.mxu1 %v441_v62  ;;  %2991 = vmatpush3.msra.mxu0 %v823_v59  ;;  %v1218_v59 = vld [vmem:[#allocation2 + $0x1b] sm:$0xff]  ;;  %v1219_v62 = vld [vmem:[#allocation2 + $0x23] sm:$0xff] }
  0x8a   : > { %3050 = vmatpush3.msra.mxu1 %v1030_v61  ;;  %2903 = vmatmul.mubr.f32.gmra.mxu0 %v476_v63  ;;  %v1664_v61 = vld [vmem:[%s4431_s3 + $0x378] sm:$0xff]  ;;  %v3960_v63 = vld [vmem:[#allocation2 + $0x24] sm:$0xff] }
  0x8b   : > { %2962 = vmatmul.mubr.f32.gmra.mxu1 %v442_v3  ;;  %2992 = vmatprep.subr.mxu0 %v822_v4  ;;  %v1663_v3 = vld [vmem:[%s4431_s3 + $0x370] sm:$0xff] }
  0x8c   : > { %3051 = vmatprep.subr.mxu1 %v1029_v5  ;;  %2993 = vmatpush3.msra.mxu0 %v822_v4  ;;  %v1871_v4 = vld [vmem:[%s4431_s3 + $0x3f8] sm:$0xff] }
  0x8d   : > { %3052 = vmatpush3.msra.mxu1 %v1029_v5  ;;  %2994 = vmatprep.subr.mxu0 %v821_v6  ;;  %v1220_v5 = vld [vmem:[#allocation2 + $0x2b] sm:$0xff] }
  0x8e   : > { %3053 = vmatprep.subr.mxu1 %v1028_v7  ;;  %2995 = vmatpush3.msra.mxu0 %v821_v6  ;;  %v3968_v6 = vld [vmem:[#allocation2 + $0x2c] sm:$0xff] }
  0x8f   : > { %2996 = vmatprep.mubr.f32.mxu0 %v803_v8  ;;  %3054 = vmatpush3.msra.mxu1 %v1028_v7  ;;  %v1662_v7 = vld [vmem:[%s4431_s3 + $0x368] sm:$0xff]  ;;  %v1870_v8 = vld [vmem:[%s4431_s3 + $0x3f0] sm:$0xff] }
  0x90   : > { %3055 = vmatprep.mubr.f32.mxu1 %v1010_v9  ;;  %2997 = vmatmul.mubr.f32.vlgmr.msra.gmra.mxu0 %v804_v10  ;;  %v3978_v10 = vld [vmem:[#allocation2 + $0x34] sm:$0xff] }
  0x91   : > { %3056 = vmatmul.mubr.f32.vlgmr.msra.gmra.mxu1 %v1011_v11  ;;  %3082 = vmatprep.subr.mxu0 %v1250_v12 }
  0x92   : > { %2999 = vmatprep.mubr.f32.mxu0 %v1010_v9  ;;  %3083 = vmatpush3.msra.mxu0 %v1250_v12  ;;  %v1221_v9 = vld [vmem:[#allocation2 + $0x33] sm:$0xff]  ;;  %v1222_v12 = vld [vmem:[#allocation2 + $0x3b] sm:$0xff] }
  0x93   : > { %3058 = vmatprep.mubr.f32.mxu1 %v1012_v13  ;;  %3084 = vmatprep.subr.mxu0 %v1249_v14 }
  0x94   : > { %3141 = vmatprep.subr.mxu1 %v1457_v15  ;;  %3000 = vmatmul.mubr.f32.gmra.mxu0 %v1011_v11  ;;  %v1661_v11 = vld [vmem:[%s4431_s3 + $0x360] sm:$0xff] }
  0x95   : > { %3059 = vmatmul.mubr.f32.gmra.mxu1 %v1013_v16  ;;  %3085 = vmatpush3.msra.mxu0 %v1249_v14  ;;  %v1869_v14 = vld [vmem:[%s4431_s3 + $0x3e8] sm:$0xff] }
  0x96   : > { %3142 = vmatpush3.msra.mxu1 %v1457_v15  ;;  %3086 = vmatprep.subr.mxu0 %v1248_v17  ;;  %v1660_v15 = vld [vmem:[%s4431_s3 + $0x358] sm:$0xff] }
  0x97   : > { %3143 = vmatprep.subr.mxu1 %v1456_v18  ;;  %3087 = vmatpush3.msra.mxu0 %v1248_v17  ;;  %v1223_v17 = vld [vmem:[#allocation2 + $0x43] sm:$0xff] }
  0x98   : > { %3002 = vmatprep.mubr.f32.mxu0 %v1012_v13  ;;  %3061 = vmatprep.mubr.f32.mxu1 %v1014_v19  ;;  %v3983_v13 = vld [vmem:[#allocation2 + $0x3c] sm:$0xff] }
  0x99   : > { %3088 = vmatprep.subr.mxu0 %v1247_v20  ;;  %3144 = vmatpush3.msra.mxu1 %v1456_v18  ;;  %v3996_v18 = vld [vmem:[#allocation2 + $0x44] sm:$0xff] }
  0x9a   : > { %3003 = vmatmul.mubr.f32.gmra.mxu0 %v1013_v16  ;;  %3062 = vmatmul.mubr.f32.gmra.mxu1 %v1015_v21  ;;  %v1868_v16 = vld [vmem:[%s4431_s3 + $0x3e0] sm:$0xff] }
  0x9b   : > { %3089 = vmatpush3.msra.mxu0 %v1247_v20  ;;  %3145 = vmatprep.subr.mxu1 %v1455_v22  ;;  %v3998_v20 = vld [vmem:[#allocation2 + $0x4c] sm:$0xff] }
  0x9c   : > { %3090 = vmatprep.subr.mxu0 %v1246_v23  ;;  %3146 = vmatpush3.msra.mxu1 %v1455_v22  ;;  %v1867_v22 = vld [vmem:[%s4431_s3 + $0x3d8] sm:$0xff] }
  0x9d   : > { %3091 = vmatpush3.msra.mxu0 %v1246_v23  ;;  %3147 = vmatprep.subr.mxu1 %v1454_v24  ;;  %v1658_v23 = vld [vmem:[%s4431_s3 + $0x348] sm:$0xff] }
  0x9e   : > { %3005 = vmatprep.mubr.f32.mxu0 %v1014_v19  ;;  %3064 = vmatprep.mubr.f32.mxu1 %v1016_v25  ;;  %v1224_v19 = vld [vmem:[#allocation2 + $0x4b] sm:$0xff] }
  0x9f   : > { %3148 = vmatpush3.msra.mxu1 %v1454_v24  ;;  %3006 = vmatmul.mubr.f32.gmra.mxu0 %v1015_v21  ;;  %v1659_v21 = vld [vmem:[%s4431_s3 + $0x350] sm:$0xff] }
  0xa0   : > { %3065 = vmatmul.mubr.f32.gmra.mxu1 %v1017_v26  ;;  %3092 = vmatprep.subr.mxu0 %v1245_v27  ;;  %v1866_v24 = vld [vmem:[%s4431_s3 + $0x3d0] sm:$0xff] }
  0xa1   : > { %3149 = vmatprep.subr.mxu1 %v1453_v28  ;;  %3093 = vmatpush3.msra.mxu0 %v1245_v27  ;;  %v1226_v27 = vld [vmem:[#allocation2 + $0x5b] sm:$0xff] }
  0xa2   : > { %3150 = vmatpush3.msra.mxu1 %v1453_v28  ;;  %3094 = vmatprep.subr.mxu0 %v1244_v29  ;;  %v4016_v28 = vld [vmem:[#allocation2 + $0x5c] sm:$0xff] }
  0xa3   : > { %3151 = vmatprep.subr.mxu1 %v1452_v30  ;;  %3008 = vmatprep.mubr.f32.mxu0 %v1016_v25  ;;  %v1225_v25 = vld [vmem:[#allocation2 + $0x53] sm:$0xff] }
  0xa4   : > { %3067 = vmatprep.mubr.f32.mxu1 %v1018_v31  ;;  %3095 = vmatpush3.msra.mxu0 %v1244_v29  ;;  %v1657_v29 = vld [vmem:[%s4431_s3 + $0x340] sm:$0xff] }
  0xa5   : > { %3152 = vmatpush3.msra.mxu1 %v1452_v30  ;;  %3009 = vmatmul.mubr.f32.gmra.mxu0 %v1017_v26  ;;  %v4014_v26 = vld [vmem:[#allocation2 + $0x54] sm:$0xff]  ;;  %v1865_v30 = vld [vmem:[%s4431_s3 + $0x3c8] sm:$0xff] }
  0xa6   : > { %3068 = vmatmul.mubr.f32.gmra.mxu1 %v1019_v32  ;;  %3096 = vmatprep.subr.mxu0 %v1243_v33 }
  0xa7   : > { %3153 = vmatprep.subr.mxu1 %v1451_v1  ;;  %3097 = vmatpush3.msra.mxu0 %v1243_v33  ;;  %v1227_v33 = vld [vmem:[#allocation2 + $0x63] sm:$0xff] }
  0xa8   : > { %3154 = vmatpush3.msra.mxu1 %v1451_v1  ;;  %3098 = vmatprep.subr.mxu0 %v1242_v2  ;;  %v4032_v1 = vld [vmem:[#allocation2 + $0x64] sm:$0xff] }
  0xa9   : > { %3155 = vmatprep.subr.mxu1 %v1450_v34  ;;  %3011 = vmatprep.mubr.f32.mxu0 %v1018_v31  ;;  %v1656_v31 = vld [vmem:[%s4431_s3 + $0x338] sm:$0xff] }
  0xaa   : > { %3070 = vmatprep.mubr.f32.mxu1 %v1020_v35  ;;  %3099 = vmatpush3.msra.mxu0 %v1242_v2  ;;  %v1228_v2 = vld [vmem:[#allocation2 + $0x6b] sm:$0xff] }
  0xab   : > { %3156 = vmatpush3.msra.mxu1 %v1450_v34  ;;  %3012 = vmatmul.mubr.f32.gmra.mxu0 %v1019_v32  ;;  %v1864_v32 = vld [vmem:[%s4431_s3 + $0x3c0] sm:$0xff]  ;;  %v4034_v34 = vld [vmem:[#allocation2 + $0x6c] sm:$0xff] }
  0xac   : > { %3071 = vmatmul.mubr.f32.gmra.mxu1 %v1021_v36  ;;  %3157 = vmatprep.subr.mxu1 %v1449_v37 }
  0xad   : > { %3100 = vmatprep.subr.mxu0 %v1241_v38  ;;  %3158 = vmatpush3.msra.mxu1 %v1449_v37  ;;  %v1862_v37 = vld [vmem:[%s4431_s3 + $0x3b0] sm:$0xff] }
  0xae   : > { %3101 = vmatpush3.msra.mxu0 %v1241_v38  ;;  %3159 = vmatprep.subr.mxu1 %v1448_v39  ;;  %v1229_v38 = vld [vmem:[#allocation2 + $0x73] sm:$0xff] }
  0xaf   : > { %3014 = vmatprep.mubr.f32.mxu0 %v1020_v35  ;;  %3073 = vmatprep.mubr.f32.mxu1 %v1022_v0  ;;  %v1863_v35 = vld [vmem:[%s4431_s3 + $0x3b8] sm:$0xff] }
  0xb0   : > { %3102 = vmatprep.subr.mxu0 %v1240_v40  ;;  %3160 = vmatpush3.msra.mxu1 %v1448_v39  ;;  %v4047_v39 = vld [vmem:[#allocation2 + $0x74] sm:$0xff] }
  0xb1   : > { %3015 = vmatmul.mubr.f32.gmra.mxu0 %v1021_v36  ;;  %3074 = vmatmul.mubr.f32.gmra.mxu1 %v1023_v41  ;;  %v1655_v36 = vld [vmem:[%s4431_s3 + $0x330] sm:$0xff] }
  0xb2   : > { %3103 = vmatpush3.msra.mxu0 %v1240_v40  ;;  %3161 = vmatprep.subr.mxu1 %v1447_v42  ;;  %v1230_v40 = vld [vmem:[#allocation2 + $0x7b] sm:$0xff] }
  0xb3   : > { %3104 = vmatprep.subr.mxu0 %v1239_v43  ;;  %3162 = vmatpush3.msra.mxu1 %v1447_v42  ;;  %v1861_v42 = vld [vmem:[%s4431_s3 + $0x3a8] sm:$0xff] }
  0xb4   : > { %3105 = vmatpush3.msra.mxu0 %v1239_v43  ;;  %3163 = vmatprep.subr.mxu1 %v1446_v44  ;;  %v1653_v43 = vld [vmem:[%s4431_s3 + $0x320] sm:$0xff] }
  0xb5   : > { %3017 = vmatprep.mubr.f32.mxu0 %v1022_v0  ;;  %3076 = vmatprep.mubr.f32.mxu1 %v1024_v45  ;;  %v1654_v0 = vld [vmem:[%s4431_s3 + $0x328] sm:$0xff] }
  0xb6   : > { %3106 = vmatprep.subr.mxu0 %v1238_v46  ;;  %3164 = vmatpush3.msra.mxu1 %v1446_v44  ;;  %v1860_v44 = vld [vmem:[%s4431_s3 + $0x3a0] sm:$0xff] }
  0xb7   : > { %3018 = vmatmul.mubr.f32.gmra.mxu0 %v1023_v41  ;;  %3077 = vmatmul.mubr.f32.gmra.mxu1 %v1025_v47  ;;  %v4052_v41 = vld [vmem:[#allocation2 + $0x7c] sm:$0xff] }
  0xb8   : > { %3107 = vmatpush3.msra.mxu0 %v1238_v46  ;;  %3165 = vmatprep.subr.mxu1 %v1445_v48  ;;  %v4065_v46 = vld [vmem:[#allocation2 + $0x84] sm:$0xff] }
  0xb9   : > { %3108 = vmatprep.subr.mxu0 %v1237_v49  ;;  %3166 = vmatpush3.msra.mxu1 %v1445_v48  ;;  %v1232_v48 = vld [vmem:[#allocation2 + $0x8b] sm:$0xff] }
  0xba   : > { %3020 = vmatprep.mubr.f32.mxu0 %v1024_v45  ;;  %3167 = vmatprep.subr.mxu1 %v1444_v50  ;;  %v1231_v45 = vld [vmem:[#allocation2 + $0x83] sm:$0xff] }
  0xbb   : > { %3079 = vmatprep.mubr.f32.mxu1 %v1026_v51  ;;  %3109 = vmatpush3.msra.mxu0 %v1237_v49  ;;  %v4070_v49 = vld [vmem:[#allocation2 + $0x8c] sm:$0xff] }
  0xbc   : > { %3168 = vmatpush3.msra.mxu1 %v1444_v50  ;;  %3021 = vmatmul.mubr.f32.gmra.mxu0 %v1025_v47  ;;  %v1652_v47 = vld [vmem:[%s4431_s3 + $0x318] sm:$0xff]  ;;  %v1651_v51 = vld [vmem:[%s4431_s3 + $0x310] sm:$0xff] }
  0xbd   : > { %3080 = vmatmul.mubr.f32.gmra.mxu1 %v1027_v52  ;;  %3110 = vmatprep.subr.mxu0 %v1236_v53  ;;  %v1859_v50 = vld [vmem:[%s4431_s3 + $0x398] sm:$0xff] }
  0xbe   : > { %3169 = vmatprep.subr.mxu1 %v1443_v54  ;;  %3111 = vmatpush3.msra.mxu0 %v1236_v53  ;;  %v1233_v52 = vld [vmem:[#allocation2 + $0x93] sm:$0xff] }
  0xbf   : > { %3170 = vmatpush3.msra.mxu1 %v1443_v54  ;;  %3112 = vmatprep.subr.mxu0 %v1235_v55  ;;  %v1858_v53 = vld [vmem:[%s4431_s3 + $0x390] sm:$0xff] }
  0xc0   : > { %3171 = vmatprep.subr.mxu1 %v1442_v56  ;;  %3113 = vmatpush3.msra.mxu0 %v1235_v55  ;;  %v4083_v54 = vld [vmem:[#allocation2 + $0x94] sm:$0xff] }
  0xc1   : > { %3114 = vmatprep.mubr.f32.mxu0 %v1217_v57  ;;  %3172 = vmatpush3.msra.mxu1 %v1442_v56  ;;  %v1234_v55 = vld [vmem:[#allocation2 + $0x9b] sm:$0xff]  ;;  %v1650_v57 = vld [vmem:[%s4431_s3 + $0x308] sm:$0xff] }
  0xc2   : > { %3173 = vmatprep.mubr.f32.mxu1 %v1424_v58  ;;  %3115 = vmatmul.mubr.f32.vlgmr.msra.gmra.mxu0 %v1218_v59  ;;  %v4085_v56 = vld [vmem:[#allocation2 + $0x9c] sm:$0xff]  ;;  %v1857_v58 = vld [vmem:[%s4431_s3 + $0x388] sm:$0xff] }
  0xc3   : > { %3174 = vmatmul.mubr.f32.vlgmr.msra.gmra.mxu1 %v1425_v60  ;;  %3200 = vmatprep.subr.mxu0 %v1664_v61  ;;  %v1649_v59 = vld [vmem:[%s4431_s3 + $0x300] sm:$0xff] }
  0xc4   : > { %3117 = vmatprep.mubr.f32.mxu0 %v1219_v62  ;;  %3201 = vmatpush3.msra.mxu0 %v1664_v61  ;;  %v1856_v60 = vld [vmem:[%s4431_s3 + $0x380] sm:$0xff]  ;;  %v1839_v62 = vld [vmem:[#allocation2 + $0x2d] sm:$0xff] }
  0xc5   : > { %3176 = vmatprep.mubr.f32.mxu1 %v3960_v63  ;;  %3202 = vmatprep.subr.mxu0 %v1663_v3  ;;  %v1838_v61 = vld [vmem:[#allocation2 + $0x25] sm:$0xff] }
  0xc6   : > { %3259 = vmatprep.subr.mxu1 %v1871_v4  ;;  %3118 = vmatmul.mubr.f32.gmra.mxu0 %v1220_v5  ;;  %v2077_v5 = vld [vmem:[%s4431_s3 + $0x470] sm:$0xff] }
  0xc7   : > { %3177 = vmatmul.mubr.f32.gmra.mxu1 %v3968_v6  ;;  %3203 = vmatpush3.msra.mxu0 %v1663_v3  ;;  %v2078_v3 = vld [vmem:[%s4431_s3 + $0x478] sm:$0xff] }
  0xc8   : > { %3260 = vmatpush3.msra.mxu1 %v1871_v4  ;;  %3204 = vmatprep.subr.mxu0 %v1662_v7  ;;  %v1840_v4 = vld [vmem:[#allocation2 + $0x35] sm:$0xff] }
  0xc9   : > { %3261 = vmatprep.subr.mxu1 %v1870_v8  ;;  %3205 = vmatpush3.msra.mxu0 %v1662_v7  ;;  %v1841_v7 = vld [vmem:[#allocation2 + $0x3d] sm:$0xff] }
  0xca   : > { %3120 = vmatprep.mubr.f32.mxu0 %v1221_v9  ;;  %3179 = vmatprep.mubr.f32.mxu1 %v3978_v10  ;;  %v1843_v9 = vld [vmem:[#allocation2 + $0x4d] sm:$0xff] }
  0xcb   : > { %3206 = vmatprep.subr.mxu0 %v1661_v11  ;;  %3262 = vmatpush3.msra.mxu1 %v1870_v8  ;;  %v2075_v8 = vld [vmem:[%s4431_s3 + $0x460] sm:$0xff] }
  0xcc   : > { %3121 = vmatmul.mubr.f32.gmra.mxu0 %v1222_v12  ;;  %3180 = vmatmul.mubr.f32.gmra.mxu1 %v3983_v13  ;;  %v1845_v12 = vld [vmem:[#allocation2 + $0x5d] sm:$0xff] }
  0xcd   : > { %3207 = vmatpush3.msra.mxu0 %v1661_v11  ;;  %3263 = vmatprep.subr.mxu1 %v1869_v14  ;;  %v1844_v11 = vld [vmem:[#allocation2 + $0x55] sm:$0xff] }
  0xce   : > { %3208 = vmatprep.subr.mxu0 %v1660_v15  ;;  %3264 = vmatpush3.msra.mxu1 %v1869_v14  ;;  %v2072_v14 = vld [vmem:[%s4431_s3 + $0x448] sm:$0xff] }
  0xcf   : > { %3209 = vmatpush3.msra.mxu0 %v1660_v15  ;;  %3265 = vmatprep.subr.mxu1 %v1868_v16  ;;  %v1846_v15 = vld [vmem:[#allocation2 + $0x65] sm:$0xff] }
  0xd0   : > { %3123 = vmatprep.mubr.f32.mxu0 %v1223_v17  ;;  %3182 = vmatprep.mubr.f32.mxu1 %v3996_v18  ;;  %v2071_v17 = vld [vmem:[%s4431_s3 + $0x440] sm:$0xff] }
  0xd1   : > { %3266 = vmatpush3.msra.mxu1 %v1868_v16  ;;  %3124 = vmatmul.mubr.f32.gmra.mxu0 %v1224_v19  ;;  %v1847_v16 = vld [vmem:[#allocation2 + $0x6d] sm:$0xff]  ;;  %v1848_v19 = vld [vmem:[#allocation2 + $0x75] sm:$0xff] }
  0xd2   : > { %3183 = vmatmul.mubr.f32.gmra.mxu1 %v3998_v20  ;;  %3210 = vmatprep.subr.mxu0 %v1659_v21 }
  0xd3   : > { %3267 = vmatprep.subr.mxu1 %v1867_v22  ;;  %3211 = vmatpush3.msra.mxu0 %v1659_v21  ;;  %v2069_v21 = vld [vmem:[%s4431_s3 + $0x430] sm:$0xff] }
  0xd4   : > { %3268 = vmatpush3.msra.mxu1 %v1867_v22  ;;  %3212 = vmatprep.subr.mxu0 %v1658_v23  ;;  %v1850_v22 = vld [vmem:[#allocation2 + $0x85] sm:$0xff] }
  0xd5   : > { %3269 = vmatprep.subr.mxu1 %v1866_v24  ;;  %3126 = vmatprep.mubr.f32.mxu0 %v1225_v25  ;;  %v2067_v25 = vld [vmem:[%s4431_s3 + $0x420] sm:$0xff] }
  0xd6   : > { %3185 = vmatprep.mubr.f32.mxu1 %v4014_v26  ;;  %3213 = vmatpush3.msra.mxu0 %v1658_v23  ;;  %v2068_v23 = vld [vmem:[%s4431_s3 + $0x428] sm:$0xff] }
  0xd7   : > { %3270 = vmatpush3.msra.mxu1 %v1866_v24  ;;  %3127 = vmatmul.mubr.f32.gmra.mxu0 %v1226_v27  ;;  %v1851_v24 = vld [vmem:[#allocation2 + $0x8d] sm:$0xff]  ;;  %v2066_v27 = vld [vmem:[%s4431_s3 + $0x418] sm:$0xff] }
  0xd8   : > { %3186 = vmatmul.mubr.f32.gmra.mxu1 %v4016_v28  ;;  %3214 = vmatprep.subr.mxu0 %v1657_v29 }
  0xd9   : > { %3271 = vmatprep.subr.mxu1 %v1865_v30  ;;  %3215 = vmatpush3.msra.mxu0 %v1657_v29  ;;  %v2065_v29 = vld [vmem:[%s4431_s3 + $0x410] sm:$0xff] }
  0xda   : > { %3272 = vmatpush3.msra.mxu1 %v1865_v30  ;;  %3216 = vmatprep.subr.mxu0 %v1656_v31  ;;  %v1647_v30 = vld [vmem:[#allocation2 + $0xa4] sm:$0xff] }
  0xdb   : > { %3273 = vmatprep.subr.mxu1 %v1864_v32  ;;  %3129 = vmatprep.mubr.f32.mxu0 %v1227_v33  ;;  %v1855_v33 = vld [vmem:[#allocation2 + $0xad] sm:$0xff] }
  0xdc   : > { %3188 = vmatprep.mubr.f32.mxu1 %v4032_v1  ;;  %3217 = vmatpush3.msra.mxu0 %v1656_v31  ;;  %v1854_v31 = vld [vmem:[#allocation2 + $0xa5] sm:$0xff] }
  0xdd   : > { %3274 = vmatpush3.msra.mxu1 %v1864_v32  ;;  %3130 = vmatmul.mubr.f32.gmra.mxu0 %v1228_v2  ;;  %v1648_v32 = vld [vmem:[#allocation2 + $0xac] sm:$0xff] }
  0xde   : > { %3189 = vmatmul.mubr.f32.gmra.mxu1 %v4034_v34  ;;  %3275 = vmatprep.subr.mxu1 %v1863_v35 }
  0xdf   : > { %3218 = vmatprep.subr.mxu0 %v1655_v36  ;;  %3276 = vmatpush3.msra.mxu1 %v1863_v35 }
  0xe0   : > { %3219 = vmatpush3.msra.mxu0 %v1655_v36  ;;  %3277 = vmatprep.subr.mxu1 %v1862_v37  ;;  %v2063_v36 = vld [vmem:[%s4431_s3 + $0x400] sm:$0xff] }
  0xe1   : > { %3132 = vmatprep.mubr.f32.mxu0 %v1229_v38  ;;  %3191 = vmatprep.mubr.f32.mxu1 %v4047_v39 }
  0xe2   : > { %3220 = vmatprep.subr.mxu0 %v1654_v0  ;;  %3278 = vmatpush3.msra.mxu1 %v1862_v37 }
  0xe3   : > { %3133 = vmatmul.mubr.f32.gmra.mxu0 %v1230_v40  ;;  %3192 = vmatmul.mubr.f32.gmra.mxu1 %v4052_v41  ;;  %v2055_v40 = vld [vmem:[#allocation2 + $0x76] sm:$0xff] }
  0xe4   : > { %3221 = vmatpush3.msra.mxu0 %v1654_v0  ;;  %3279 = vmatprep.subr.mxu1 %v1861_v42  ;;  %v2045_v0 = vld [vmem:[#allocation2 + $0x26] sm:$0xff] }
  0xe5   : > { %3222 = vmatprep.subr.mxu0 %v1653_v43  ;;  %3280 = vmatpush3.msra.mxu1 %v1861_v42 }
  0xe6   : > { %3223 = vmatpush3.msra.mxu0 %v1653_v43  ;;  %3281 = vmatprep.subr.mxu1 %v1860_v44  ;;  %v2046_v43 = vld [vmem:[#allocation2 + $0x2e] sm:$0xff] }
  0xe7   : > { %3135 = vmatprep.mubr.f32.mxu0 %v1231_v45  ;;  %3194 = vmatprep.mubr.f32.mxu1 %v4065_v46 }
  0xe8   : > { %3224 = vmatprep.subr.mxu0 %v1652_v47  ;;  %3282 = vmatpush3.msra.mxu1 %v1860_v44  ;;  %v2056_v44 = vld [vmem:[#allocation2 + $0x7e] sm:$0xff] }
  0xe9   : > { %3136 = vmatmul.mubr.f32.gmra.mxu0 %v1232_v48  ;;  %3195 = vmatmul.mubr.f32.gmra.mxu1 %v4070_v49 }
  0xea   : > { %3225 = vmatpush3.msra.mxu0 %v1652_v47  ;;  %3283 = vmatprep.subr.mxu1 %v1859_v50  ;;  %v2057_v47 = vld [vmem:[#allocation2 + $0x86] sm:$0xff] }
  0xeb   : > { %3226 = vmatprep.subr.mxu0 %v1651_v51  ;;  %3284 = vmatpush3.msra.mxu1 %v1859_v50 }
  0xec   : > { %3138 = vmatprep.mubr.f32.mxu0 %v1233_v52  ;;  %3285 = vmatprep.subr.mxu1 %v1858_v53  ;;  %v2058_v52 = vld [vmem:[#allocation2 + $0x8e] sm:$0xff] }
  0xed   : > { %3197 = vmatprep.mubr.f32.mxu1 %v4083_v54  ;;  %3227 = vmatpush3.msra.mxu0 %v1651_v51  ;;  %v2048_v51 = vld [vmem:[#allocation2 + $0x3e] sm:$0xff] }
  0xee   : > { %3286 = vmatpush3.msra.mxu1 %v1858_v53  ;;  %3139 = vmatmul.mubr.f32.gmra.mxu0 %v1234_v55  ;;  %v2059_v55 = vld [vmem:[#allocation2 + $0x96] sm:$0xff] }
  0xef   : > { %3198 = vmatmul.mubr.f32.gmra.mxu1 %v4085_v56  ;;  %3228 = vmatprep.subr.mxu0 %v1650_v57 }
  0xf0   : > { %3287 = vmatprep.subr.mxu1 %v1857_v58  ;;  %3229 = vmatpush3.msra.mxu0 %v1650_v57 }
  0xf1   : > { %3288 = vmatpush3.msra.mxu1 %v1857_v58  ;;  %3230 = vmatprep.subr.mxu0 %v1649_v59 }
  0xf2   : > { %3289 = vmatprep.subr.mxu1 %v1856_v60  ;;  %3231 = vmatpush3.msra.mxu0 %v1649_v59 }
  0xf3   : > { %3232 = vmatprep.mubr.f32.mxu0 %v3960_v63  ;;  %3290 = vmatpush3.msra.mxu1 %v1856_v60  ;;  %v2076_v63 = vld [vmem:[%s4431_s3 + $0x468] sm:$0xff] }
  0xf4   : > { %3291 = vmatprep.mubr.f32.mxu1 %v1838_v61  ;;  %3233 = vmatmul.mubr.f32.vlgmr.msra.gmra.mxu0 %v3968_v6  ;;  %v1842_v6 = vld [vmem:[#allocation2 + $0x45] sm:$0xff]  ;;  %v2050_v60 = vld [vmem:[#allocation2 + $0x4e] sm:$0xff] }
  0xf5   : > { %3292 = vmatmul.mubr.f32.vlgmr.msra.gmra.mxu1 %v1839_v62  ;;  %3318 = vmatprep.subr.mxu0 %v2078_v3  ;;  %v2060_v61 = vld [vmem:[#allocation2 + $0x9e] sm:$0xff] }
  0xf6   : > { %3235 = vmatprep.mubr.f32.mxu0 %v3978_v10  ;;  %3319 = vmatpush3.msra.mxu0 %v2078_v3  ;;  %v2074_v10 = vld [vmem:[%s4431_s3 + $0x458] sm:$0xff] }
  0xf7   : > { %3294 = vmatprep.mubr.f32.mxu1 %v1840_v4  ;;  %3320 = vmatprep.subr.mxu0 %v2077_v5  ;;  %v2061_v4 = vld [vmem:[#allocation2 + $0xa6] sm:$0xff] }
  0xf8   : > { %3377 = vmatprep.subr.mxu1 %v2078_v3  ;;  %3236 = vmatmul.mubr.f32.gmra.mxu0 %v3983_v13  ;;  %v2073_v13 = vld [vmem:[%s4431_s3 + $0x450] sm:$0xff] }
  0xf9   : > { %3295 = vmatmul.mubr.f32.gmra.mxu1 %v1841_v7  ;;  %3321 = vmatpush3.msra.mxu0 %v2077_v5 }
  0xfa   : > { %3393 = vmatpush3.msra.mxu1 %v2078_v3  ;;  %3322 = vmatprep.subr.mxu0 %v2076_v63  ;;  %v2051_v3 = vld [vmem:[#allocation2 + $0x56] sm:$0xff] }
  0xfb   : > { %3378 = vmatprep.subr.mxu1 %v2077_v5  ;;  %3323 = vmatpush3.msra.mxu0 %v2076_v63 }
  0xfc   : > { %3238 = vmatprep.mubr.f32.mxu0 %v3996_v18  ;;  %3297 = vmatprep.mubr.f32.mxu1 %v1842_v6  ;;  %v2070_v18 = vld [vmem:[%s4431_s3 + $0x438] sm:$0xff] }
  0xfd   : > { %3394 = vmatpush3.msra.mxu1 %v2077_v5  ;;  %3324 = vmatprep.subr.mxu0 %v2075_v8  ;;  %v2052_v6 = vld [vmem:[#allocation2 + $0x5e] sm:$0xff] }
  0xfe   : > { %3239 = vmatmul.mubr.f32.gmra.mxu0 %v3998_v20  ;;  %3298 = vmatmul.mubr.f32.gmra.mxu1 %v1843_v9  ;;  %v1849_v20 = vld [vmem:[#allocation2 + $0x7d] sm:$0xff] }
  0xff   : > { %3379 = vmatprep.subr.mxu1 %v2076_v63  ;;  %3325 = vmatpush3.msra.mxu0 %v2075_v8 }
 0x100   : > { %3395 = vmatpush3.msra.mxu1 %v2076_v63  ;;  %3326 = vmatprep.subr.mxu0 %v2074_v10 }
 0x101   : > { %3380 = vmatprep.subr.mxu1 %v2075_v8  ;;  %3327 = vmatpush3.msra.mxu0 %v2074_v10 }
 0x102   : > { %3241 = vmatprep.mubr.f32.mxu0 %v4014_v26  ;;  %3300 = vmatprep.mubr.f32.mxu1 %v1844_v11  ;;  %v1852_v26 = vld [vmem:[#allocation2 + $0x95] sm:$0xff]  ;;  %v2053_v11 = vld [vmem:[#allocation2 + $0x66] sm:$0xff] }
 0x103   : > { %3396 = vmatpush3.msra.mxu1 %v2075_v8  ;;  %3242 = vmatmul.mubr.f32.gmra.mxu0 %v4016_v28  ;;  %v1853_v28 = vld [vmem:[#allocation2 + $0x9d] sm:$0xff]  ;;  %v2062_v8 = vld [vmem:[#allocation2 + $0xae] sm:$0xff] }
 0x104   : > { %3301 = vmatmul.mubr.f32.gmra.mxu1 %v1845_v12  ;;  %3381 = vmatprep.subr.mxu1 %v2074_v10 }
 0x105   : > { %3328 = vmatprep.subr.mxu0 %v2073_v13  ;;  %3397 = vmatpush3.msra.mxu1 %v2074_v10 }
 0x106   : > { %3329 = vmatpush3.msra.mxu0 %v2073_v13  ;;  %3382 = vmatprep.subr.mxu1 %v2073_v13 }
 0x107   : > { %3330 = vmatprep.subr.mxu0 %v2072_v14  ;;  %3244 = vmatprep.mubr.f32.mxu0 %v4032_v1  ;;  %v2064_v1 = vld [vmem:[%s4431_s3 + $0x408] sm:$0xff] }
 0x108   : > { %3303 = vmatprep.mubr.f32.mxu1 %v1846_v15  ;;  %3398 = vmatpush3.msra.mxu1 %v2073_v13  ;;  %v2054_v13 = vld [vmem:[#allocation2 + $0x6e] sm:$0xff] }
 0x109   : > { %3331 = vmatpush3.msra.mxu0 %v2072_v14  ;;  %3304 = vmatmul.mubr.f32.gmra.mxu1 %v1847_v16 }
 0x10a   : > { %3245 = vmatmul.mubr.f32.gmra.mxu0 %v4034_v34  ;;  %3383 = vmatprep.subr.mxu1 %v2072_v14 }
 0x10b   : > { %3332 = vmatprep.subr.mxu0 %v2071_v17  ;;  %3399 = vmatpush3.msra.mxu1 %v2072_v14 }
 0x10c   : > { %3333 = vmatpush3.msra.mxu0 %v2071_v17  ;;  %3384 = vmatprep.subr.mxu1 %v2071_v17 }
 0x10d   : > { %3334 = vmatprep.subr.mxu0 %v2070_v18  ;;  %3247 = vmatprep.mubr.f32.mxu0 %v4047_v39 }
 0x10e   : > { %3306 = vmatprep.mubr.f32.mxu1 %v1848_v19  ;;  %3400 = vmatpush3.msra.mxu1 %v2071_v17 }
 0x10f   : > { %3335 = vmatpush3.msra.mxu0 %v2070_v18  ;;  %3307 = vmatmul.mubr.f32.gmra.mxu1 %v1849_v20 }
 0x110   : > { %3248 = vmatmul.mubr.f32.gmra.mxu0 %v4052_v41  ;;  %3385 = vmatprep.subr.mxu1 %v2070_v18 }
 0x111   : > { %3336 = vmatprep.subr.mxu0 %v2069_v21  ;;  %3401 = vmatpush3.msra.mxu1 %v2070_v18 }
 0x112   : > { %3337 = vmatpush3.msra.mxu0 %v2069_v21  ;;  %3386 = vmatprep.subr.mxu1 %v2069_v21 }
 0x113   : > { %3250 = vmatprep.mubr.f32.mxu0 %v4065_v46  ;;  %3309 = vmatprep.mubr.f32.mxu1 %v1850_v22  ;;  %v2047_v46 = vld [vmem:[#allocation2 + $0x36] sm:$0xff] }
 0x114   : > { %3402 = vmatpush3.msra.mxu1 %v2069_v21  ;;  %3338 = vmatprep.subr.mxu0 %v2068_v23 }
 0x115   : > { %3251 = vmatmul.mubr.f32.gmra.mxu0 %v4070_v49  ;;  %3310 = vmatmul.mubr.f32.gmra.mxu1 %v1851_v24 }
 0x116   : > { %3387 = vmatprep.subr.mxu1 %v2068_v23  ;;  %3339 = vmatpush3.msra.mxu0 %v2068_v23 }
 0x117   : > { %3403 = vmatpush3.msra.mxu1 %v2068_v23  ;;  %3340 = vmatprep.subr.mxu0 %v2067_v25 }
 0x118   : > { %3388 = vmatprep.subr.mxu1 %v2067_v25  ;;  %3341 = vmatpush3.msra.mxu0 %v2067_v25 }
 0x119   : > { %3253 = vmatprep.mubr.f32.mxu0 %v4083_v54  ;;  %3312 = vmatprep.mubr.f32.mxu1 %v1852_v26  ;;  %v2049_v54 = vld [vmem:[#allocation2 + $0x46] sm:$0xff] }
 0x11a   : > { %3404 = vmatpush3.msra.mxu1 %v2067_v25  ;;  %3342 = vmatprep.subr.mxu0 %v2066_v27 }
 0x11b   : > { %3254 = vmatmul.mubr.f32.gmra.mxu0 %v4085_v56  ;;  %3313 = vmatmul.mubr.f32.gmra.mxu1 %v1853_v28 }
 0x11c   : > { %3389 = vmatprep.subr.mxu1 %v2066_v27  ;;  %3343 = vmatpush3.msra.mxu0 %v2066_v27 }
 0x11d   : > { %3405 = vmatpush3.msra.mxu1 %v2066_v27  ;;  %3344 = vmatprep.subr.mxu0 %v2065_v29 }
 0x11e   : > { %3390 = vmatprep.subr.mxu1 %v2065_v29  ;;  %3256 = vmatprep.mubr.f32.mxu0 %v1647_v30  ;;  %v2880_v2 = vpop.f32.mrf.mxu0 }
 0x11f   : > { %3315 = vmatprep.mubr.f32.mxu1 %v1854_v31  ;;  %v2939_v34 = vpop.f32.mrf.mxu1  ;;  %3345 = vmatpush3.msra.mxu0 %v2065_v29 }
 0x120   : > { %3406 = vmatpush3.msra.mxu1 %v2065_v29  ;;  %v4162_v35 = vadd.f32 %v2939_v34, %v2880_v2  ;;  %3257 = vmatmul.mubr.f32.gmra.mxu0 %v1648_v32  ;;  %v559_v37 = vpop.f32.mrf.mxu0 }
 0x121   : > { %3316 = vmatmul.mubr.f32.gmra.mxu1 %v1855_v33  ;;  %v714_v38 = vpop.f32.mrf.mxu1  ;;  %3346 = vmatprep.subr.mxu0 %v2064_v1 }
 0x122   : > { %3391 = vmatprep.subr.mxu1 %v2064_v1  ;;  %v4167_v39 = vadd.f32 %v714_v38, %v559_v37  ;;  %3347 = vmatpush3.msra.mxu0 %v2064_v1  ;;  %v2883_v41 = vpop.f32.mrf.mxu0 }
 0x123   : > { %3407 = vmatpush3.msra.mxu1 %v2064_v1  ;;  %v2942_v42 = vpop.f32.mrf.mxu1  ;;  %3348 = vmatprep.subr.mxu0 %v2063_v36 }
 0x124   : > { %3392 = vmatprep.subr.mxu1 %v2063_v36  ;;  %v4169_v45 = vadd.f32 %v2942_v42, %v2883_v41  ;;  %3349 = vmatpush3.msra.mxu0 %v2063_v36  ;;  %v569_v48 = vpop.f32.mrf.mxu0 }
 0x125   : > { %3408 = vmatpush3.msra.mxu1 %v2063_v36  ;;  %v724_v49 = vpop.f32.mrf.mxu1  ;;  %3350 = vmatprep.mubr.f32.mxu0 %v2045_v0 }
 0x126   : > { %3365 = vmatprep.mubr.f32.mxu1 %v2055_v40  ;;  %v4171_v50 = vadd.f32 %v724_v49, %v569_v48  ;;  %3351 = vmatmul.mubr.f32.vlgmr.msra.gmra.mxu0 %v2046_v43 }
 0x127   : > { %3366 = vmatmul.mubr.f32.vlgmr.msra.gmra.mxu1 %v2056_v44  ;;  %3353 = vmatprep.mubr.f32.mxu0 %v2047_v46 }
 0x128   : > { %3368 = vmatprep.mubr.f32.mxu1 %v2057_v47  ;;  %v2886_v53 = vpop.f32.mrf.mxu0  ;;  %v2945_v56 = vpop.f32.mrf.mxu1 }
 0x129   : > { %v4173_v57 = vadd.f32 %v2945_v56, %v2886_v53 }
 0x12a   : > { %v579_v58 = vpop.f32.mrf.mxu0  ;;  %3354 = vmatmul.mubr.f32.gmra.mxu0 %v2048_v51  ;;  %v734_v59 = vpop.f32.mrf.mxu1 }
 0x12b   : > { %3369 = vmatmul.mubr.f32.gmra.mxu1 %v2058_v52  ;;  %3356 = vmatprep.mubr.f32.mxu0 %v2049_v54  ;;  %v4175_v62 = vadd.f32 %v734_v59, %v579_v58 }
 0x12c   : > { %3371 = vmatprep.mubr.f32.mxu1 %v2059_v55 }
 0x12d   : > { %v2889_v5 = vpop.f32.mrf.mxu0 }
 0x12e   : > { %v2948_v7 = vpop.f32.mrf.mxu1  ;;  %3357 = vmatmul.mubr.f32.gmra.mxu0 %v2050_v60 }
 0x12f   : > { %3372 = vmatmul.mubr.f32.gmra.mxu1 %v2060_v61  ;;  %v4177_v63 = vadd.f32 %v2948_v7, %v2889_v5  ;;  %3359 = vmatprep.mubr.f32.mxu0 %v2051_v3  ;;  %v589_v9 = vpop.f32.mrf.mxu0 }
 0x130   : > { %3374 = vmatprep.mubr.f32.mxu1 %v2061_v4  ;;  %v744_v10 = vpop.f32.mrf.mxu1 }
 0x131   : > { %v4179_v12 = vadd.f32 %v744_v10, %v589_v9 }
 0x132   : > { %3360 = vmatmul.mubr.f32.gmra.mxu0 %v2052_v6 }
 0x133   : > { %3375 = vmatmul.mubr.f32.gmra.mxu1 %v2062_v8  ;;  %3362 = vmatprep.mubr.f32.mxu0 %v2053_v11  ;;  %v2892_v14 = vpop.f32.mrf.mxu0 }
 0x134   : > { %v2951_v15 = vpop.f32.mrf.mxu1 }
 0x135   : > { %v4181_v16 = vadd.f32 %v2951_v15, %v2892_v14  ;;  %v599_v17 = vpop.f32.mrf.mxu0 }
 0x136   : > { %v754_v18 = vpop.f32.mrf.mxu1  ;;  %3363 = vmatmul.mubr.f32.gmra.mxu0 %v2054_v13 }
 0x137   : > { %v4183_v19 = vadd.f32 %v754_v18, %v599_v17 }
 0x139   : > { %v2895_v20 = vpop.f32.mrf.mxu0 }
 0x13a   : > { %v2954_v21 = vpop.f32.mrf.mxu1 }
 0x13b   : > { %v4185_v22 = vadd.f32 %v2954_v21, %v2895_v20  ;;  %v609_v23 = vpop.f32.mrf.mxu0 }
 0x13c   : > { %v764_v24 = vpop.f32.mrf.mxu1 }
 0x13d   : > { %v4187_v25 = vadd.f32 %v764_v24, %v609_v23 }
 0x13f   : > { %v2898_v26 = vpop.f32.mrf.mxu0  ;;  %v2957_v27 = vpop.f32.mrf.mxu1 }
 0x140   : > { %v4189_v28 = vadd.f32 %v2957_v27, %v2898_v26 }
 0x141   : > { %v619_v29 = vpop.f32.mrf.mxu0  ;;  %v774_v30 = vpop.f32.mrf.mxu1 }
 0x142   : > { %v4191_v31 = vadd.f32 %v774_v30, %v619_v29 }
 0x145   : > { %v2901_v32 = vpop.f32.mrf.mxu0  ;;  %v2960_v33 = vpop.f32.mrf.mxu1 }
 0x146   : > { %v4193_v1 = vadd.f32 %v2960_v33, %v2901_v32 }
 0x147   : > { %v629_v2 = vpop.f32.mrf.mxu0  ;;  %v784_v34 = vpop.f32.mrf.mxu1 }
 0x148   : > { %v4195_v36 = vadd.f32 %v784_v34, %v629_v2 }
 0x14a   : > { %v2904_v37 = vpop.f32.mrf.mxu0 }
 0x14b   : > { %v2963_v38 = vpop.f32.mrf.mxu1 }
 0x14c   : > { %v4197_v0 = vadd.f32 %v2963_v38, %v2904_v37  ;;  %v639_v40 = vpop.f32.mrf.mxu0 }
 0x14d   : > { %v794_v41 = vpop.f32.mrf.mxu1 }
 0x14e   : > { %v4199_v42 = vadd.f32 %v794_v41, %v639_v40 }
 0x150   : > { %v2998_v43 = vpop.f32.mrf.mxu0 }
 0x151   : > { %v3057_v44 = vpop.f32.mrf.mxu1  ;;  %v993_v46 = vadd.f32 %v2998_v43, %v4162_v35 }
 0x152   : > { %v903_v47 = vpop.f32.mrf.mxu0 }
 0x153   : > { %v1110_v48 = vpop.f32.mrf.mxu1  ;;  %v4202_v49 = vadd.f32 %v3057_v44, %v993_v46  ;;  %v992_v51 = vadd.f32 %v903_v47, %v4167_v39 }
 0x154   : > { %v3001_v52 = vpop.f32.mrf.mxu0 }
 0x155   : > { %v3060_v53 = vpop.f32.mrf.mxu1  ;;  %v4205_v54 = vadd.f32 %v1110_v48, %v992_v51  ;;  %v995_v55 = vadd.f32 %v3001_v52, %v4169_v45 }
 0x156   : > { %v913_v56 = vpop.f32.mrf.mxu0 }
 0x157   : > { %v1120_v58 = vpop.f32.mrf.mxu1  ;;  %v4208_v59 = vadd.f32 %v3060_v53, %v995_v55  ;;  %v994_v60 = vadd.f32 %v913_v56, %v4171_v50 }
 0x159   : > { %v4211_v61 = vadd.f32 %v1120_v58, %v994_v60 }
 0x15a   : > { %v3004_v35 = vpop.f32.mrf.mxu0  ;;  %v3063_v4 = vpop.f32.mrf.mxu1 }
 0x15b   : > { %v997_v3 = vadd.f32 %v3004_v35, %v4173_v57 }
 0x15c   : > { %v923_v5 = vpop.f32.mrf.mxu0  ;;  %v1130_v6 = vpop.f32.mrf.mxu1 }
 0x15d   : > { %v4214_v39 = vadd.f32 %v3063_v4, %v997_v3  ;;  %v996_v7 = vadd.f32 %v923_v5, %v4175_v62 }
 0x15f   : > { %v4217_v8 = vadd.f32 %v1130_v6, %v996_v7  ;;  %v3007_v45 = vpop.f32.mrf.mxu0 }
 0x160   : > { %v3066_v9 = vpop.f32.mrf.mxu1  ;;  %v999_v10 = vadd.f32 %v3007_v45, %v4177_v63 }
 0x161   : > { %v933_v11 = vpop.f32.mrf.mxu0 }
 0x162   : > { %v1140_v50 = vpop.f32.mrf.mxu1  ;;  %v4220_v13 = vadd.f32 %v3066_v9, %v999_v10  ;;  %v998_v14 = vadd.f32 %v933_v11, %v4179_v12 }
 0x164   : > { %v4223_v57 = vadd.f32 %v1140_v50, %v998_v14 }
 0x165   : > { %v3010_v15 = vpop.f32.mrf.mxu0 }
 0x166   : > { %v3069_v17 = vpop.f32.mrf.mxu1  ;;  %v1001_v18 = vadd.f32 %v3010_v15, %v4181_v16 }
 0x167   : > { %v943_v62 = vpop.f32.mrf.mxu0 }
 0x168   : > { %v1150_v20 = vpop.f32.mrf.mxu1  ;;  %v4226_v21 = vadd.f32 %v3069_v17, %v1001_v18  ;;  %v1000_v23 = vadd.f32 %v943_v62, %v4183_v19 }
 0x16a   : > { %v4229_v24 = vadd.f32 %v1150_v20, %v1000_v23 }
 0x16b   : > { %v3013_v63 = vpop.f32.mrf.mxu0 }
 0x16c   : > { %v3072_v26 = vpop.f32.mrf.mxu1  ;;  %v1003_v27 = vadd.f32 %v3013_v63, %v4185_v22 }
 0x16d   : > { %v953_v29 = vpop.f32.mrf.mxu0 }
 0x16e   : > { %v1160_v12 = vpop.f32.mrf.mxu1  ;;  %v4232_v30 = vadd.f32 %v3072_v26, %v1003_v27  ;;  %v1002_v32 = vadd.f32 %v953_v29, %v4187_v25 }
 0x170   : > { %v4235_v33 = vadd.f32 %v1160_v12, %v1002_v32 }
 0x171   : > { %v3016_v16 = vpop.f32.mrf.mxu0  ;;  %v3075_v34 = vpop.f32.mrf.mxu1 }
 0x172   : > { %v1005_v2 = vadd.f32 %v3016_v16, %v4189_v28 }
 0x173   : > { %v963_v37 = vpop.f32.mrf.mxu0  ;;  %v1170_v40 = vpop.f32.mrf.mxu1 }
 0x174   : > { %v4238_v19 = vadd.f32 %v3075_v34, %v1005_v2  ;;  %v1004_v38 = vadd.f32 %v963_v37, %v4191_v31 }
 0x176   : > { %v4241_v41 = vadd.f32 %v1170_v40, %v1004_v38 }
 0x177   : > { %v3019_v22 = vpop.f32.mrf.mxu0  ;;  %v3078_v44 = vpop.f32.mrf.mxu1 }
 0x178   : > { %v1007_v43 = vadd.f32 %v3019_v22, %v4193_v1 }
 0x179   : > { %v973_v46 = vpop.f32.mrf.mxu0  ;;  %v1180_v48 = vpop.f32.mrf.mxu1 }
 0x17a   : > { %v4244_v25 = vadd.f32 %v3078_v44, %v1007_v43  ;;  %v1006_v47 = vadd.f32 %v973_v46, %v4195_v36 }
 0x17c   : > { %v4247_v28 = vadd.f32 %v1180_v48, %v1006_v47  ;;  %v3022_v51 = vpop.f32.mrf.mxu0 }
 0x17d   : > { %v3081_v52 = vpop.f32.mrf.mxu1  ;;  %v1009_v53 = vadd.f32 %v3022_v51, %v4197_v0 }
 0x17e   : > { %v983_v31 = vpop.f32.mrf.mxu0 }
 0x17f   : > { %v1190_v55 = vpop.f32.mrf.mxu1  ;;  %v4250_v56 = vadd.f32 %v3081_v52, %v1009_v53  ;;  %v1008_v58 = vadd.f32 %v983_v31, %v4199_v42 }
 0x181   : > { %v4253_v1 = vadd.f32 %v1190_v55, %v1008_v58 }
 0x182   : > { %v3116_v60 = vpop.f32.mrf.mxu0 }
 0x183   : > { %v3175_v35 = vpop.f32.mrf.mxu1  ;;  %v1407_v3 = vadd.f32 %v3116_v60, %v4202_v49 }
 0x184   : > { %v1317_v36 = vpop.f32.mrf.mxu0 }
 0x185   : > { %v1524_v4 = vpop.f32.mrf.mxu1  ;;  %v4256_v5 = vadd.f32 %v3175_v35, %v1407_v3  ;;  %v1406_v7 = vadd.f32 %v1317_v36, %v4205_v54 }
 0x186   : > { %v3119_v6 = vpop.f32.mrf.mxu0 }
 0x187   : > { %v3178_v0 = vpop.f32.mrf.mxu1  ;;  %v4259_v45 = vadd.f32 %v1524_v4, %v1406_v7  ;;  %v1409_v9 = vadd.f32 %v3119_v6, %v4208_v59 }
 0x188   : > { %v1327_v10 = vpop.f32.mrf.mxu0 }
 0x189   : > { %v1534_v42 = vpop.f32.mrf.mxu1  ;;  %v4262_v11 = vadd.f32 %v3178_v0, %v1409_v9  ;;  %v1408_v50 = vadd.f32 %v1327_v10, %v4211_v61 }
 0x18b   : > { %v4265_v14 = vadd.f32 %v1534_v42, %v1408_v50 }
 0x18c   : > { %v3122_v49 = vpop.f32.mrf.mxu0  ;;  %v3181_v17 = vpop.f32.mrf.mxu1 }
 0x18d   : > { %v1411_v15 = vadd.f32 %v3122_v49, %v4214_v39 }
 0x18e   : > { %v1337_v18 = vpop.f32.mrf.mxu0  ;;  %v1544_v20 = vpop.f32.mrf.mxu1 }
 0x18f   : > { %v4268_v54 = vadd.f32 %v3181_v17, %v1411_v15  ;;  %v1410_v62 = vadd.f32 %v1337_v18, %v4217_v8 }
 0x191   : > { %v4271_v23 = vadd.f32 %v1544_v20, %v1410_v62  ;;  %v3125_v59 = vpop.f32.mrf.mxu0 }
 0x192   : > { %v3184_v63 = vpop.f32.mrf.mxu1  ;;  %v1413_v26 = vadd.f32 %v3125_v59, %v4220_v13 }
 0x193   : > { %v1347_v27 = vpop.f32.mrf.mxu0 }
 0x194   : > { %v1554_v61 = vpop.f32.mrf.mxu1  ;;  %v4274_v29 = vadd.f32 %v3184_v63, %v1413_v26  ;;  %v1412_v12 = vadd.f32 %v1347_v27, %v4223_v57 }
 0x196   : > { %v4277_v39 = vadd.f32 %v1554_v61, %v1412_v12 }
 0x197   : > { %v3128_v32 = vpop.f32.mrf.mxu0 }
 0x198   : > { %4436 = vst [vmem:[#allocation5_spill] sm:$0xff] %v4277_v39  ;;  %v3187_v16 = vpop.f32.mrf.mxu1  ;;  %v1415_v2 = vadd.f32 %v3128_v32, %v4226_v21 }
 0x199   : > { %v1357_v8 = vpop.f32.mrf.mxu0 }
 0x19a   : > { %v1564_v34 = vpop.f32.mrf.mxu1  ;;  %v4280_v37 = vadd.f32 %v3187_v16, %v1415_v2  ;;  %v1414_v38 = vadd.f32 %v1357_v8, %v4229_v24 }
 0x19c   : > { %4437 = vst [vmem:[#allocation6_spill] sm:$0xff] %v4280_v37  ;;  %v4283_v40 = vadd.f32 %v1564_v34, %v1414_v38 }
 0x19d   : > { %v3131_v13 = vpop.f32.mrf.mxu0 }
 0x19e   : > { %4438 = vst [vmem:[#allocation7_spill] sm:$0xff] %v4283_v40  ;;  %v3190_v22 = vpop.f32.mrf.mxu1 }
 0x19f   : > { %v1367_v43 = vpop.f32.mrf.mxu0 }
 0x1a0   : > { %v1574_v44 = vpop.f32.mrf.mxu1 }
 0x1a3   : > { %v3134_v46 = vpop.f32.mrf.mxu0  ;;  %v3193_v57 = vpop.f32.mrf.mxu1 }
 0x1a5   : > { %v1377_v47 = vpop.f32.mrf.mxu0  ;;  %v1584_v48 = vpop.f32.mrf.mxu1 }
 0x1a6   : > { %v1418_v37 = vadd.f32 %v1377_v47, %v4241_v41 }
 0x1a9   : > { %v3137_v51 = vpop.f32.mrf.mxu0  ;;  %v3196_v52 = vpop.f32.mrf.mxu1 }
 0x1ab   : > { %v1387_v53 = vpop.f32.mrf.mxu0  ;;  %v1594_v21 = vpop.f32.mrf.mxu1 }
 0x1ae   : > { %v3140_v31 = vpop.f32.mrf.mxu0 }
 0x1af   : > { %v3199_v55 = vpop.f32.mrf.mxu1 }
 0x1b0   : > { %v1397_v58 = vpop.f32.mrf.mxu0 }
 0x1b1   : > { %v4285_v60 = vpop.f32.mrf.mxu1  ;;  %v1422_v41 = vadd.f32 %v1397_v58, %v4253_v1 }
 0x1b4   : > { %v3234_v24 = vpop.f32.mrf.mxu0 }
 0x1b5   : > { %v3293_v35 = vpop.f32.mrf.mxu1 }
 0x1b6   : > { %v1731_v3 = vpop.f32.mrf.mxu0 }
 0x1b7   : > { %v4287_v36 = vpop.f32.mrf.mxu1 }
 0x1b8   : > { %v3237_v4 = vpop.f32.mrf.mxu0 }
 0x1b9   : > { %v4289_v7 = vpop.f32.mrf.mxu1 }
 0x1ba   : > { %v1741_v6 = vpop.f32.mrf.mxu0 }
 0x1bb   : > { %v4291_v0 = vpop.f32.mrf.mxu1 }
 0x1be   : > { %v3240_v9 = vpop.f32.mrf.mxu0  ;;  %v4293_v10 = vpop.f32.mrf.mxu1 }
 0x1c0   : > { %v1751_v42 = vpop.f32.mrf.mxu0  ;;  %v4295_v50 = vpop.f32.mrf.mxu1 }
 0x1c3   : > { %v3243_v49 = vpop.f32.mrf.mxu0 }
 0x1c4   : > { %v4297_v15 = vpop.f32.mrf.mxu1 }
 0x1c5   : > { %4439 = vst [vmem:[#allocation8_spill] sm:$0xff] %v4297_v15  ;;  %v4299_v17 = vpop.f32.mrf.mxu0 }
 0x1c6   : > { %4440 = vst [vmem:[#allocation9_spill] sm:$0xff] %v4299_v17  ;;  %v4301_v18 = vpop.f32.mrf.mxu1 }
 0x1c7   : > { %4441 = vst [vmem:[#allocation10_spill] sm:$0xff] %v4301_v18  ;;  %v1421_v18 = vadd.f32 %v3137_v51, %v4244_v25  ;;  %v1820_v25 = vadd.f32 %v1731_v3, %v4259_v45 }
 0x1c9   : > { %v4305_v20 = vpop.f32.mrf.mxu1  ;;  %v1628_v47 = vadd.f32 %v3196_v52, %v1421_v18 }
 0x1ca   : > { %v4303_v62 = vpop.f32.mrf.mxu0  ;;  %4443 = vst [vmem:[#allocation12_spill] sm:$0xff] %v4305_v20 }
 0x1cb   : > { %4442 = vst [vmem:[#allocation11_spill] sm:$0xff] %v4303_v62  ;;  %v4309_v63 = vpop.f32.mrf.mxu1  ;;  %v1416_v62 = vadd.f32 %v1367_v43, %v4235_v33  ;;  %v1423_v43 = vadd.f32 %v3140_v31, %v4250_v56  ;;  %v1825_v56 = vadd.f32 %v3240_v9, %v4268_v54  ;;  %v1824_v31 = vadd.f32 %v1751_v42, %v4271_v23 }
 0x1cc   : > { %v4307_v59 = vpop.f32.mrf.mxu0  ;;  %4445 = vst [vmem:[#allocation14_spill] sm:$0xff] %v4309_v63  ;;  %v1419_v63 = vadd.f32 %v3134_v46, %v4238_v19  ;;  %v1625_v46 = vadd.f32 %v1584_v48, %v1418_v37  ;;  %v1629_v37 = vadd.f32 %v4285_v60, %v1422_v41 }
 0x1cd   : > { %4444 = vst [vmem:[#allocation13_spill] sm:$0xff] %v4307_v59  ;;  %v1417_v59 = vadd.f32 %v3131_v13, %v4232_v30  ;;  %v1623_v15 = vadd.f32 %v1574_v44, %v1416_v62  ;;  %v1823_v44 = vadd.f32 %v3237_v4, %v4262_v11  ;;  %v2027_v11 = vadd.f32 %v4287_v36, %v1820_v25  ;;  %v4450_v62 = vld [vmem:[#allocation5_spill] sm:$0xff] }
 0x1ce   : > { %v1626_v19 = vadd.f32 %v3193_v57, %v1419_v63  ;;  %v2031_v36 = vadd.f32 %v4295_v50, %v1824_v31  ;;  %v4457_v31 = vld [vmem:[#allocation7_spill] sm:$0xff] }
 0x1cf   : > { %v3308_v27 = vpop.f32.mrf.mxu1  ;;  %v1624_v33 = vadd.f32 %v3190_v22, %v1417_v59  ;;  %v1630_v22 = vadd.f32 %v3199_v55, %v1423_v43  ;;  %v4451_v59 = vld [vmem:[#allocation9_spill] sm:$0xff] }
 0x1d0   : > { %v3249_v26 = vpop.f32.mrf.mxu0  ;;  %v1826_v63 = vadd.f32 %v4451_v59, %v4450_v62 }
 0x1d1   : > { %v1988_v12 = vpop.f32.mrf.mxu1  ;;  %v1831_v51 = vadd.f32 %v3249_v26, %v1624_v33 }
 0x1d2   : > { %v1781_v61 = vpop.f32.mrf.mxu0 }
 0x1d3   : > { %v1830_v13 = vadd.f32 %v1781_v61, %v1623_v15  ;;  %v2038_v54 = vadd.f32 %v3308_v27, %v1831_v51  ;;  %v4454_v51 = vld [vmem:[#allocation10_spill] sm:$0xff] }
 0x1d4   : > { %v4461_v62 = vld [vmem:[#allocation14_spill] sm:$0xff] }
 0x1d5   : > { %v3252_v32 = vpop.f32.mrf.mxu0  ;;  %v3311_v16 = vpop.f32.mrf.mxu1  ;;  %v2037_v48 = vadd.f32 %v1988_v12, %v1830_v13 }
 0x1d6   : > { %v1833_v57 = vadd.f32 %v3252_v32, %v1626_v19 }
 0x1d7   : > { %v1791_v2 = vpop.f32.mrf.mxu0  ;;  %v1998_v8 = vpop.f32.mrf.mxu1 }
 0x1d8   : > { %v2040_v4 = vadd.f32 %v3311_v16, %v1833_v57 }
 0x1db   : > { %v3255_v34 = vpop.f32.mrf.mxu0  ;;  %v4311_v38 = vpop.f32.mrf.mxu1 }
 0x1dc   : > { %4446 = vst [vmem:[#allocation15_spill] sm:$0xff] %v4311_v38  ;;  %v1420_v38 = vadd.f32 %v1387_v53, %v4247_v28 }
 0x1dd   : > { %v4313_v40 = vpop.f32.mrf.mxu0  ;;  %v4316_v20 = vpop.f32.mrf.mxu1 }
 0x1de   : > { %4447 = vst [vmem:[#allocation16_spill] sm:$0xff] %v4313_v40  ;;  %4448 = vst [vmem:[#allocation17_spill] sm:$0xff] %v4316_v20  ;;  %v1821_v40 = vadd.f32 %v3234_v24, %v4256_v5  ;;  %v1627_v28 = vadd.f32 %v1594_v21, %v1420_v38  ;;  %v1822_v5 = vadd.f32 %v1741_v6, %v4265_v14 }
 0x1df   : > { %v1832_v24 = vadd.f32 %v1791_v2, %v1625_v46  ;;  %v1827_v14 = vadd.f32 %v3243_v49, %v4274_v29  ;;  %v1835_v21 = vadd.f32 %v3255_v34, %v1628_v47 }
 0x1e0   : > { %v4322_v17 = vpop.f32.mrf.mxu0  ;;  %v2028_v53 = vadd.f32 %v3293_v35, %v1821_v40  ;;  %v2030_v40 = vadd.f32 %v4289_v7, %v1823_v44  ;;  %v2029_v58 = vadd.f32 %v4291_v0, %v1822_v5  ;;  %v2032_v35 = vadd.f32 %v4293_v10, %v1825_v56  ;;  %v4449_v10 = vld [vmem:[#allocation8_spill] sm:$0xff]  ;;  %v4456_v5 = vld [vmem:[#allocation11_spill] sm:$0xff] }
 0x1e1   : > { %v4324_v39 = vpop.f32.mrf.mxu1  ;;  %v2039_v7 = vadd.f32 %v1998_v8, %v1832_v24  ;;  %v2034_v18 = vadd.f32 %v4449_v10, %v1827_v14  ;;  %v1837_v38 = vadd.f32 %v4322_v17, %v1630_v22  ;;  %v4458_v17 = vld [vmem:[#allocation13_spill] sm:$0xff] }
 0x1e2   : > { %v1811_v20 = vpop.f32.mrf.mxu0 }
 0x1e3   : > { %v4329_v30 = vpop.f32.mrf.mxu1  ;;  %v4452_v26 = vld [vmem:[#allocation15_spill] sm:$0xff]  ;;  %v1836_v33 = vadd.f32 %v1811_v20, %v1629_v37  ;;  %v1828_v20 = vadd.f32 %v4458_v17, %v4457_v31 }
 0x1e4   : > { %v2042_v50 = vadd.f32 %v4452_v26, %v1835_v21 }
 0x1e5   : > { %v4453_v32 = vld [vmem:[#allocation16_spill] sm:$0xff]  ;;  %v2035_v59 = vadd.f32 %v4461_v62, %v1828_v20 }
 0x1e6   : > { %v3352_v1 = vpop.f32.mrf.mxu0  ;;  %v1834_v16 = vadd.f32 %v4453_v32, %v1627_v28  ;;  %v4455_v28 = vld [vmem:[#allocation6_spill] sm:$0xff] }
 0x1e7   : > { %v3367_v45 = vpop.f32.mrf.mxu1  ;;  %v2235_v52 = vadd.f32 %v3352_v1, %v2028_v53  ;;  %v2033_v53 = vadd.f32 %v4454_v51, %v1826_v63  ;;  %v1829_v56 = vadd.f32 %v4456_v5, %v4455_v28  ;;  %v4459_v1 = vld [vmem:[#allocation17_spill] sm:$0xff] }
 0x1e8   : > { %v2145_v55 = vpop.f32.mrf.mxu0  ;;  %v2245_v6 = vadd.f32 %v3367_v45, %v2038_v54  ;;  %v2041_v45 = vadd.f32 %v4459_v1, %v1834_v16 }
 0x1e9   : > { %v2195_v23 = vpop.f32.mrf.mxu1  ;;  %2373 = vst [vmem:[%s3568_s14 + $0x8] sm:$0xff] %v2235_v52  ;;  %v2234_v60 = vadd.f32 %v2145_v55, %v2027_v11  ;;  %v2333_v42 = vmul.f32 %v2235_v52, %v2235_v52 }
 0x1ea   : > { %v4344_v3 = vadd.f32 %v2195_v23, %v2037_v48  ;;  %v3355_v29 = vpop.f32.mrf.mxu0  ;;  %v2286_v43 = vrot.slane %v2245_v6, 2 }
 0x1eb   : > { %v3370_v9 = vpop.f32.mrf.mxu1  ;;  %v2311_v49 = vadd.f32 %v2235_v52, %v2234_v60  ;;  %v2332_v15 = vmul.f32 %v2234_v60, %v2234_v60  ;;  %2372 = vst [vmem:[%s3568_s14] sm:$0xff] %v2234_v60  ;;  %v4350_v0 = vadd.f32 %v3355_v29, %v2030_v40  ;;  %v2044_v52 = vadd.f32 %v4324_v39, %v1837_v38 }
 0x1ec   : > { %2381 = vst [vmem:[%s3568_s14 + $0x48] sm:$0xff] %v4344_v3  ;;  %v2247_v27 = vadd.f32 %v3370_v9, %v2040_v4  ;;  %v2155_v61 = vpop.f32.mrf.mxu0  ;;  %v2043_v40 = vadd.f32 %v4329_v30, %v1836_v33 }
 0x1ed   : > { %v2205_v12 = vpop.f32.mrf.mxu1  ;;  %v2348_v2 = vadd.f32 %v2333_v42, %v2332_v15  ;;  %v2236_v8 = vadd.f32 %v2155_v61, %v2029_v58  ;;  %v2257_v19 = vrot.slane %v4350_v0, 2  ;;  %v4460_v0 = vld [vmem:[#allocation12_spill] sm:$0xff] }
 0x1ee   : > { %v2246_v34 = vadd.f32 %v2205_v12, %v2039_v7  ;;  %v3358_v41 = vpop.f32.mrf.mxu0  ;;  %v2289_v13 = vrot.slane %v2247_v27, 2  ;;  %v2295_v23 = vrot.slane %v2247_v27, 4  ;;  %v2036_v10 = vadd.f32 %v4460_v0, %v1829_v56 }
 0x1ef   : > { %v3373_v25 = vpop.f32.mrf.mxu1  ;;  %v2256_v46 = vrot.slane %v2236_v8, 2  ;;  %v4359_v44 = vadd.f32 %v3358_v41, %v2032_v35 }
 0x1f0   : > { %v2287_v47 = vrot.slane %v2246_v34, 2  ;;  %v2249_v22 = vadd.f32 %v3373_v25, %v2042_v50  ;;  %v2165_v57 = vpop.f32.mrf.mxu0 }
 0x1f1   : > { %v2215_v24 = vpop.f32.mrf.mxu1  ;;  %v2258_v37 = vsel %vm2255_vm0, %v2256_v46, %v2257_v19  ;;  %v2267_v58 = vrot.slane %v4359_v44, 4  ;;  %v2238_v35 = vadd.f32 %v2165_v57, %v2031_v36 }
 0x1f2   : > { %v4369_v11 = vsel %vm2255_vm0, %v2286_v43, %v2287_v47  ;;  %v4372_v48 = vsel %vm2255_vm0, %v2287_v47, %v2289_v13  ;;  %v2312_v14 = vadd.f32 %v2311_v49, %v2258_v37  ;;  %v2334_v54 = vmul.f32 %v2258_v37, %v2258_v37  ;;  %2374 = vst [vmem:[%s3568_s14 + $0x10] sm:$0xff] %v2258_v37  ;;  %v3361_v21 = vpop.f32.mrf.mxu0 }
 0x1f3   : > { %2382 = vst [vmem:[%s3568_s14 + $0x50] sm:$0xff] %v4369_v11  ;;  %2383 = vst [vmem:[%s3568_s14 + $0x58] sm:$0xff] %v4372_v48  ;;  %v3376_v55 = vpop.f32.mrf.mxu1  ;;  %v2248_v60 = vadd.f32 %v2215_v24, %v2041_v45  ;;  %v2298_v7 = vrot.slane %v2249_v22, 4  ;;  %v2241_v6 = vadd.f32 %v3361_v21, %v2034_v18  ;;  %v2259_v9 = vrot.slane %v2238_v35, 2 }
 0x1f4   : > { %v2349_v4 = vadd.f32 %v2348_v2, %v2334_v54  ;;  %v2251_v39 = vadd.f32 %v3376_v55, %v2044_v52  ;;  %v2175_v29 = vpop.f32.mrf.mxu0  ;;  %v2266_v42 = vrot.slane %v2238_v35, 4  ;;  %v2304_v36 = vrot.slane %v2249_v22, 6 }
 0x1f5   : > { %v2225_v30 = vpop.f32.mrf.mxu1  ;;  %v2296_v49 = vrot.slane %v2248_v60, 4  ;;  %v2240_v15 = vadd.f32 %v2175_v29, %v2033_v53  ;;  %v2260_v18 = vsel %vm2255_vm0, %v2257_v19, %v2259_v9  ;;  %v2277_v16 = vrot.slane %v2241_v6, 6 }
 0x1f6   : > { %v2250_v63 = vadd.f32 %v2225_v30, %v2043_v40  ;;  %v3364_v26 = vpop.f32.mrf.mxu0  ;;  %v2268_v50 = vsel %vm2265_vm1, %v2266_v42, %v2267_v58  ;;  %v2313_v12 = vadd.f32 %v2312_v14, %v2260_v18  ;;  %v2335_v32 = vmul.f32 %v2260_v18, %v2260_v18  ;;  %2375 = vst [vmem:[%s3568_s14 + $0x18] sm:$0xff] %v2260_v18 }
 0x1f7   : > { %v2297_v27 = vsel %vm2265_vm1, %v2295_v23, %v2296_v49  ;;  %v2299_v61 = vsel %vm2265_vm1, %v2296_v49, %v2298_v7  ;;  %2376 = vst [vmem:[%s3568_s14 + $0x20] sm:$0xff] %v2268_v50  ;;  %v2307_v2 = vrot.slane %v2251_v39, 6  ;;  %v2336_v34 = vmul.f32 %v2268_v50, %v2268_v50 }
 0x1f8   : > { %2384 = vst [vmem:[%s3568_s14 + $0x60] sm:$0xff] %v2297_v27  ;;  %2385 = vst [vmem:[%s3568_s14 + $0x68] sm:$0xff] %v2299_v61  ;;  %v2185_v8 = vpop.f32.mrf.mxu0  ;;  %v2269_v38 = vrot.slane %v2240_v15, 4  ;;  %v2276_v33 = vrot.slane %v2240_v15, 6  ;;  %v2305_v43 = vrot.slane %v2250_v63, 6  ;;  %v2314_v19 = vadd.f32 %v2313_v12, %v2268_v50 }
 0x1f9   : > { %v2350_v41 = vadd.f32 %v2349_v4, %v2335_v32  ;;  %v2243_v25 = vadd.f32 %v3364_v26, %v2036_v10  ;;  %v2242_v13 = vadd.f32 %v2185_v8, %v2035_v59  ;;  %v2341_v40 = vmul.f32 %v4344_v3, %v4344_v3 }
 0x1fa   : > { %v2270_v46 = vsel %vm2265_vm1, %v2267_v58, %v2269_v38  ;;  %v2278_v47 = vsel %vm2275_vm2, %v2276_v33, %v2277_v16  ;;  %v2306_v44 = vsel %vm2275_vm2, %v2304_v36, %v2305_v43  ;;  %v2308_v51 = vsel %vm2275_vm2, %v2305_v43, %v2307_v2 }
 0x1fb   : > { %v2351_v53 = vadd.f32 %v2350_v41, %v2336_v34  ;;  %v2315_v28 = vadd.f32 %v2314_v19, %v2270_v46  ;;  %v2337_v5 = vmul.f32 %v2270_v46, %v2270_v46  ;;  %2377 = vst [vmem:[%s3568_s14 + $0x28] sm:$0xff] %v2270_v46  ;;  %2378 = vst [vmem:[%s3568_s14 + $0x30] sm:$0xff] %v2278_v47  ;;  %v2279_v56 = vrot.slane %v2242_v13, 6 }
 0x1fc   : > { %2386 = vst [vmem:[%s3568_s14 + $0x70] sm:$0xff] %v2306_v44  ;;  %2387 = vst [vmem:[%s3568_s14 + $0x78] sm:$0xff] %v2308_v51  ;;  %v2338_v17 = vmul.f32 %v2278_v47, %v2278_v47  ;;  %v2340_v45 = vmul.f32 %v2243_v25, %v2243_v25  ;;  %v2342_v21 = vmul.f32 %v4369_v11, %v4369_v11 }
 0x1fd   : > { %2380 = vst [vmem:[%s3568_s14 + $0x40] sm:$0xff] %v2243_v25  ;;  %v2316_v31 = vadd.f32 %v2315_v28, %v2278_v47  ;;  %v2352_v20 = vadd.f32 %v2351_v53, %v2337_v5  ;;  %v2280_v22 = vsel %vm2275_vm2, %v2277_v16, %v2279_v56  ;;  %v2343_v58 = vmul.f32 %v4372_v48, %v4372_v48 }
 0x1fe   : > { %v2339_v1 = vmul.f32 %v2280_v22, %v2280_v22  ;;  %2379 = vst [vmem:[%s3568_s14 + $0x38] sm:$0xff] %v2280_v22  ;;  %v2344_v4 = vmul.f32 %v2297_v27, %v2297_v27  ;;  %v2345_v39 = vmul.f32 %v2299_v61, %v2299_v61  ;;  %v2347_v49 = vmul.f32 %v2308_v51, %v2308_v51 }
 0x1ff   : > { %v2353_v57 = vadd.f32 %v2352_v20, %v2338_v17  ;;  %v2317_v24 = vadd.f32 %v2316_v31, %v2280_v22 }
 0x201   : > { %v2318_v37 = vadd.f32 %v2317_v24, %v2243_v25  ;;  %v2354_v52 = vadd.f32 %v2353_v57, %v2339_v1 }
 0x203   : > { %v2319_v14 = vadd.f32 %v2318_v37, %v4344_v3  ;;  %v2355_v54 = vadd.f32 %v2354_v52, %v2340_v45  ;;  %v2346_v3 = vmul.f32 %v2306_v44, %v2306_v44 }
 0x205   : > { %v2320_v55 = vadd.f32 %v2319_v14, %v4369_v11  ;;  %v2356_v23 = vadd.f32 %v2355_v54, %v2341_v40 }
 0x207   : > { %v2321_v35 = vadd.f32 %v2320_v55, %v4372_v48  ;;  %v2357_v60 = vadd.f32 %v2356_v23, %v2342_v21 }
 0x209   : > { %v2322_v7 = vadd.f32 %v2321_v35, %v2297_v27  ;;  %v2358_v6 = vadd.f32 %v2357_v60, %v2343_v58 }
 0x20b   : > { %v2323_v29 = vadd.f32 %v2322_v7, %v2299_v61  ;;  %v2359_v30 = vadd.f32 %v2358_v6, %v2344_v4 }
 0x20d   : > { %v2324_v9 = vadd.f32 %v2323_v29, %v2306_v44  ;;  %v2360_v42 = vadd.f32 %v2359_v30, %v2345_v39 }
 0x20f   : > { %v2325_v15 = vadd.f32 %v2324_v9, %v2308_v51  ;;  %v2361_v0 = vadd.f32 %v2360_v42, %v2346_v3 }
 0x211   : > { %v2326_v11 = vrot.slane %v2325_v15, 4  ;;  %v2362_v10 = vadd.f32 %v2361_v0, %v2347_v49 }
 0x213   : > { %v2327_v62 = vadd.f32 %v2326_v11, %v2325_v15  ;;  %v2363_v59 = vrot.slane %v2362_v10, 4 }
 0x215   : > { %v2328_v36 = vrot.slane %v2327_v62, 2  ;;  %v2364_v48 = vadd.f32 %v2363_v59, %v2362_v10 }
 0x217   : > { %v2329_v63 = vadd.f32 %v2328_v36, %v2327_v62  ;;  %v2365_v26 = vrot.slane %v2364_v48, 2 }
 0x219   : > { %v2330_v18 = vrot.slane %v2329_v63, 1  ;;  %v2366_v50 = vadd.f32 %v2365_v26, %v2364_v48 }
 0x21b   : > { %v2367_v27 = vrot.slane %v2366_v50, 1  ;;  %v2331_v61 = vadd.f32 %v2330_v18, %v2329_v63 }
 0x21d   : > { %v2368_v12 = vadd.f32 %v2367_v27, %v2366_v50 }
 0x21f   : > { %v2370_v32 = vsel %vm2369_vm3, %v2331_v61, %v2368_v12 }
 0x220   : > { %2371 = vst [vmem:[%s3578_s23] sm:$0x3] %v2370_v32 }
 0x221 PF: > { %s16_s22 = sadd.s32 1, %s3491_s22   ;;  %s4462_s14 = sld [smem:[#allocation3_spill]] }
 0x222   : > { %p13_p9 = scmp.ge.s32.totalorder %s16_s22, 6   ;;  %s4463_s9 = sld [smem:[#allocation4_spill]] }
 0x223   : > { %s4464_s18 = smov %s3483_s20  ;;  %s4465_s19 = smov %s3487_s21 }
 0x224   :  { %15 = sbr.rel (!%p13_p9) target bundleno = 3 (0x3), region = 87 }
 0x227   : > { %s4466_s20 = smov %s4462_s14 }
 0x228   : > { %s4467_s21 = smov %s4463_s9 }

</bundles_post_ra>
